<compile_context>
chip_gen: v5e
topology: v5e:2x2
jax: 0.10.0
libtpu: 0.0.40
codegen_flags: <defaults>
</compile_context>

<pallas_src>
import functools

import jax
import jax.numpy as jnp
from jax import lax
from jax.experimental import pallas as pl
from jax.experimental.pallas import tpu as pltpu

EPS = 1e-5  # nn.BatchNorm2d default eps


def _repconv_kernel(x_ref, w_ref, b_ref, o_ref, *, wp, tile_l, nc, approx_silu):
    """Fused (reparameterized) 3x3 conv + bias + SiLU for one image.

    x_ref: (1, Lp, C1)  zero-padded image, spatial flattened row-major,
                        Lp = (H+3)*(W+2)   (1 top / 2 bottom / 1 left / 1 right pad)
    w_ref: (9, C1, C2)  equivalent 3x3 kernel, tap-major (t = dy*3 + dx)
    b_ref: (1, C2)      equivalent bias (f32)
    o_ref: (1, L, C2)   L = H*(W+2); cols W..W+1 of each row are junk, dropped
                        by the wrapper.
    """
    L, C2 = o_ref.shape[1], o_ref.shape[2]

    def do_chunk(start):
        # 9 shifted *contiguous* slices of the flat padded image; each tap is a
        # (tile_l, C1) @ (C1, C2) MXU matmul accumulated in f32 registers.
        acc = jnp.zeros((tile_l, C2), jnp.float32)
        for t in range(9):
            off = (t // 3) * wp + (t % 3)
            xt = x_ref[0, pl.ds(start + off, tile_l), :]
            acc = acc + jnp.dot(xt, w_ref[t], preferred_element_type=jnp.float32)
        # fused epilogue: bias + SiLU, one store per chunk.
        z = acc + b_ref[...]
        denom = 1.0 + jnp.exp(-z)                              # EUP exp
        sig = pl.reciprocal(denom, approx=True) if approx_silu else 1.0 / denom
        o_ref[0, pl.ds(start, tile_l), :] = (z * sig).astype(o_ref.dtype)

    if nc == 1:
        do_chunk(0)
    else:
        def body(c, carry):
            # Clamp the last chunk so all accesses stay in bounds; the small
            # overlap recomputes identical values (idempotent store).
            do_chunk(jnp.minimum(c * tile_l, L - tile_l))
            return carry
        lax.fori_loop(0, nc, body, 0)


def _fuse_bn(gamma, beta, mean, var):
    scale = gamma / jnp.sqrt(var + EPS)
    return scale, beta - mean * scale


def _equivalent_kernel_bias(params, c1, c2):
    """Fold 3x3+BN, 1x1+BN and identity-BN into one 3x3 kernel + bias (f32),
    same algebra as RepConv.get_equivalent_kernel_bias."""
    s3, b3 = _fuse_bn(*params["bn3"])
    s1, b1 = _fuse_bn(*params["bn1"])
    w_eq = params["w3"].astype(jnp.float32) * s3[:, None, None, None]    # (C2,C1,3,3)
    w_eq = w_eq.at[:, :, 1, 1].add(
        params["w1"][:, :, 0, 0].astype(jnp.float32) * s1[:, None])
    bias = b3 + b1
    bnid = params.get("bnid", None)
    if bnid is not None:                      # identity branch (c1 == c2, s == 1)
        sid, bid = _fuse_bn(*bnid)
        w_eq = w_eq.at[:, :, 1, 1].add(jnp.eye(c2, c1, dtype=jnp.float32)
                                       * sid[:, None])
        bias = bias + bid
    return w_eq, bias


def repconv_forward(x_nchw, params, *, compute_dtype=jnp.bfloat16, tile_rows=256):
    """RepConv forward. x_nchw: (N, C1, H, W) float32 -> (N, C2, H, W) float32."""
    N, C1, H, W = x_nchw.shape
    C2 = params["w3"].shape[0]
    Wp = W + 2
    L = H * Wp              # flat output rows per image (incl. 2 junk cols/row)
    Lp = (H + 3) * Wp       # flat padded rows (extra bottom pad row keeps all
                            # shifted tap reads in bounds)

    # ---- fold BN into one equivalent 3x3 kernel + bias in f32, then cast ----
    w_eq_oihw, b_eq = _equivalent_kernel_bias(params, C1, C2)
    w_eq = (jnp.transpose(w_eq_oihw, (2, 3, 1, 0))        # OIHW -> HWIO
            .reshape(9, C1, C2).astype(compute_dtype))
    b_eq = b_eq.reshape(1, C2).astype(jnp.float32)

    # ---- layout glue: NCHW -> NHWC, zero-pad, flatten (one fused XLA copy) ----
    x_nhwc = jnp.transpose(x_nchw, (0, 2, 3, 1))
    x_pad = jnp.pad(x_nhwc, ((0, 0), (1, 2), (1, 1), (0, 0)))
    x_flat = x_pad.reshape(N, Lp, C1).astype(compute_dtype)
    # TODO(synk): pad/flatten (and the final NCHW transpose) still cost an HBM
    # round trip outside the kernel; in-kernel halo masking + overlapping
    # H-strip grid tiling (needed for very large H*W on v7x's 64 MiB VMEM) is
    # left out here for robustness.

    # ---- spatial chunking so the f32 accumulator + epilogue stay in vregs ----
    # (tile_rows is a tunable: shrink it for very large C2.)
    tile_l = min(L, max(8, tile_rows))
    nc = (L + tile_l - 1) // tile_l

    # ---- explicit VMEM budget (default scoped limit is only 16/32 MiB) ----
    it = jnp.dtype(compute_dtype).itemsize
    rnd = lambda r, c, sz: (-(-r // 8) * 8) * (-(-c // 128) * 128) * sz
    est = (2 * (rnd(Lp, C1, it) + rnd(L, C2, 4))           # double-buffered I/O
           + 2 * (9 * rnd(C1, C2, it) + rnd(1, C2, 4))     # weights + bias
           + 8 * rnd(tile_l, C2, 4)                        # accumulator / temps
           + (2 << 20))
    vmem_limit = int(min(110 * 2 ** 20, max(32 * 2 ** 20, est)))

    kernel = functools.partial(_repconv_kernel, wp=Wp, tile_l=tile_l, nc=nc,
                               approx_silu=(compute_dtype != jnp.float32))

    out_flat = pl.pallas_call(
        kernel,
        out_shape=jax.ShapeDtypeStruct((N, L, C2), jnp.float32),
        grid_spec=pltpu.PrefetchScalarGridSpec(
            num_scalar_prefetch=0,
            grid=(N,),
            in_specs=[
                pl.BlockSpec((1, Lp, C1), lambda n: (n, 0, 0)),
                pl.BlockSpec((9, C1, C2), lambda n: (0, 0, 0)),
                pl.BlockSpec((1, C2), lambda n: (0, 0)),
            ],
            out_specs=pl.BlockSpec((1, L, C2), lambda n: (n, 0, 0)),
        ),
        compiler_params=pltpu.CompilerParams(
            dimension_semantics=("parallel",),
            vmem_limit_bytes=vmem_limit),
    )(x_flat, w_eq, b_eq)

    # drop the 2 junk columns per row and return NCHW (one fused XLA copy)
    out = out_flat.reshape(N, H, Wp, C2)[:, :, :W, :]
    return jnp.transpose(out, (0, 3, 1, 2))


# ---------------- pure-JAX reference (per-branch, matches PyTorch) ----------------
def repconv_reference(x, params):
    def bn(y, p):
        g, b, m, v = p
        scale = g / jnp.sqrt(v + EPS)
        return y * scale[None, :, None, None] + (b - m * scale)[None, :, None, None]

    dn = ("NCHW", "OIHW", "NCHW")
    dense = lax.conv_general_dilated(x, params["w3"], (1, 1),
                                     ((1, 1), (1, 1)), dimension_numbers=dn)
    one = lax.conv_general_dilated(x, params["w1"], (1, 1),
                                   ((0, 0), (0, 0)), dimension_numbers=dn)
    z = bn(dense, params["bn3"]) + bn(one, params["bn1"]) + bn(x, params["bnid"])
    return z * jax.nn.sigmoid(z)


def make_params(key, c1, c2):
    ks = jax.random.split(key, 10)
    w3 = jax.random.normal(ks[0], (c2, c1, 3, 3), jnp.float32) * 0.1
    w1 = jax.random.normal(ks[1], (c2, c1, 1, 1), jnp.float32) * 0.1

    def bn_params(k, c):
        a, b, c_, d = jax.random.split(k, 4)
        gamma = 1.0 + 0.1 * jax.random.normal(a, (c,), jnp.float32)
        beta = 0.1 * jax.random.normal(b, (c,), jnp.float32)
        mean = 0.1 * jax.random.normal(c_, (c,), jnp.float32)
        var = jnp.abs(jax.random.normal(d, (c,), jnp.float32)) + 0.5
        return (gamma, beta, mean, var)

    return {
        "w3": w3,
        "w1": w1,
        "bn3": bn_params(ks[2], c2),
        "bn1": bn_params(ks[3], c2),
        "bnid": bn_params(ks[4], c1),   # identity branch active since c1 == c2, s == 1
    }


if __name__ == "__main__":
    key = jax.random.PRNGKey(0)
    kx, kp = jax.random.split(key)

    N, C, H, W = 2, 4, 16, 16   # c1 == c2 so the identity(BN) branch is active
    x = jax.random.normal(kx, (N, C, H, W), jnp.float32)
    params = make_params(kp, C, C)

    y_ref = repconv_reference(x, params)

    # exact-path check: float32 MXU operands, exact SiLU
    y32 = jax.block_until_ready(
        repconv_forward(x, params, compute_dtype=jnp.float32))
    assert y32.shape == (N, C, H, W)
    assert jnp.allclose(y32, y_ref, atol=1e-4, rtol=1e-4), (
        float(jnp.max(jnp.abs(y32 - y_ref))))

    # fast-path check: bf16 MXU operands (f32 accumulation), EUP approx SiLU.
    # Tolerance reflects bf16 input/weight rounding.
    ybf = jax.block_until_ready(
        repconv_forward(x, params, compute_dtype=jnp.bfloat16))
    assert ybf.shape == (N, C, H, W)
    assert jnp.allclose(ybf, y_ref, atol=1e-1, rtol=1e-1), (
        float(jnp.max(jnp.abs(ybf - y_ref))))

    print("KERNEL_OK")
</pallas_src>

<mosaic_0001>
module attributes {stable_mosaic.version = 11 : i64} {
  func.func @_repconv_kernel(%arg0: i32, %arg1: memref<1x342x4xf32, #tpu.memory_space<vmem>>, %arg2: memref<9x4x4xf32, #tpu.memory_space<vmem>>, %arg3: memref<1x4xf32, #tpu.memory_space<vmem>>, %arg4: memref<1x288x4xf32, #tpu.memory_space<vmem>>) attributes {dimension_semantics = [#tpu.dimension_semantics<parallel>], iteration_bounds = array<i64: 2>, scalar_prefetch = 0 : i64, scratch_operands = 0 : i64, tpu.core_type = #tpu.core_type<tc>, window_params = [{transform_indices = @transform_0, window_bounds = array<i64: 1, 342, 4>}, {pipeline_mode = #tpu.pipeline_mode<synchronous>, transform_indices = @transform_1, window_bounds = array<i64: 9, 4, 4>}, {pipeline_mode = #tpu.pipeline_mode<synchronous>, transform_indices = @transform_2, window_bounds = array<i64: 1, 4>}, {transform_indices = @transform_3, window_bounds = array<i64: 1, 288, 4>}]} {
    %c0_i32 = arith.constant 0 : i32
    %c2_i32 = arith.constant 2 : i32
    %0 = arith.addi %c0_i32, %c2_i32 : i32
    %c1_i32 = arith.constant 1 : i32
    scf.for %arg5 = %c0_i32 to %0 step %c1_i32  : i32 {
      %c256_i32 = arith.constant 256 : i32
      %1 = arith.muli %arg5, %c256_i32 : i32
      %c32_i32 = arith.constant 32 : i32
      %2 = arith.minsi %1, %c32_i32 : i32
      %cst = arith.constant 0.000000e+00 : f32
      %3 = vector.broadcast %cst : f32 to vector<256x4xf32>
      %c0_i32_1 = arith.constant 0 : i32
      %4 = arith.addi %2, %c0_i32_1 : i32
      %c0 = arith.constant 0 : index
      %5 = arith.index_cast %4 : i32 to index
      %c0_2 = arith.constant 0 : index
      %6 = vector.load %arg1[%c0, %5, %c0_2] : memref<1x342x4xf32, #tpu.memory_space<vmem>>, vector<1x256x4xf32>
      %7 = vector.shape_cast %6 : vector<1x256x4xf32> to vector<256x4xf32>
      %c0_3 = arith.constant 0 : index
      %c0_4 = arith.constant 0 : index
      %c0_5 = arith.constant 0 : index
      %8 = vector.load %arg2[%c0_3, %c0_4, %c0_5] : memref<9x4x4xf32, #tpu.memory_space<vmem>>, vector<1x4x4xf32>
      %9 = vector.shape_cast %8 : vector<1x4x4xf32> to vector<4x4xf32>
      %cst_6 = arith.constant dense<0.000000e+00> : vector<256x4xf32>
      %10 = tpu.matmul %7, %9, %cst_6 {dimension_numbers = #tpu.dot_dimension_numbers<[1], [0], [0], [1], [0, 0, 1, 1], [], []>} : vector<256x4xf32>, vector<4x4xf32>, vector<256x4xf32> -> vector<256x4xf32>
      %11 = arith.addf %3, %10 : vector<256x4xf32>
      %c1_i32_7 = arith.constant 1 : i32
      %12 = arith.addi %2, %c1_i32_7 : i32
      %c0_8 = arith.constant 0 : index
      %13 = arith.index_cast %12 : i32 to index
      %c0_9 = arith.constant 0 : index
      %14 = vector.load %arg1[%c0_8, %13, %c0_9] : memref<1x342x4xf32, #tpu.memory_space<vmem>>, vector<1x256x4xf32>
      %15 = vector.shape_cast %14 : vector<1x256x4xf32> to vector<256x4xf32>
      %c1 = arith.constant 1 : index
      %c0_10 = arith.constant 0 : index
      %c0_11 = arith.constant 0 : index
      %16 = vector.load %arg2[%c1, %c0_10, %c0_11] : memref<9x4x4xf32, #tpu.memory_space<vmem>>, vector<1x4x4xf32>
      %17 = vector.shape_cast %16 : vector<1x4x4xf32> to vector<4x4xf32>
      %cst_12 = arith.constant dense<0.000000e+00> : vector<256x4xf32>
      %18 = tpu.matmul %15, %17, %cst_12 {dimension_numbers = #tpu.dot_dimension_numbers<[1], [0], [0], [1], [0, 0, 1, 1], [], []>} : vector<256x4xf32>, vector<4x4xf32>, vector<256x4xf32> -> vector<256x4xf32>
      %19 = arith.addf %11, %18 : vector<256x4xf32>
      %c2_i32_13 = arith.constant 2 : i32
      %20 = arith.addi %2, %c2_i32_13 : i32
      %c0_14 = arith.constant 0 : index
      %21 = arith.index_cast %20 : i32 to index
      %c0_15 = arith.constant 0 : index
      %22 = vector.load %arg1[%c0_14, %21, %c0_15] : memref<1x342x4xf32, #tpu.memory_space<vmem>>, vector<1x256x4xf32>
      %23 = vector.shape_cast %22 : vector<1x256x4xf32> to vector<256x4xf32>
      %c2 = arith.constant 2 : index
      %c0_16 = arith.constant 0 : index
      %c0_17 = arith.constant 0 : index
      %24 = vector.load %arg2[%c2, %c0_16, %c0_17] : memref<9x4x4xf32, #tpu.memory_space<vmem>>, vector<1x4x4xf32>
      %25 = vector.shape_cast %24 : vector<1x4x4xf32> to vector<4x4xf32>
      %cst_18 = arith.constant dense<0.000000e+00> : vector<256x4xf32>
      %26 = tpu.matmul %23, %25, %cst_18 {dimension_numbers = #tpu.dot_dimension_numbers<[1], [0], [0], [1], [0, 0, 1, 1], [], []>} : vector<256x4xf32>, vector<4x4xf32>, vector<256x4xf32> -> vector<256x4xf32>
      %27 = arith.addf %19, %26 : vector<256x4xf32>
      %c18_i32 = arith.constant 18 : i32
      %28 = arith.addi %2, %c18_i32 : i32
      %c0_19 = arith.constant 0 : index
      %29 = arith.index_cast %28 : i32 to index
      %c0_20 = arith.constant 0 : index
      %30 = vector.load %arg1[%c0_19, %29, %c0_20] : memref<1x342x4xf32, #tpu.memory_space<vmem>>, vector<1x256x4xf32>
      %31 = vector.shape_cast %30 : vector<1x256x4xf32> to vector<256x4xf32>
      %c3 = arith.constant 3 : index
      %c0_21 = arith.constant 0 : index
      %c0_22 = arith.constant 0 : index
      %32 = vector.load %arg2[%c3, %c0_21, %c0_22] : memref<9x4x4xf32, #tpu.memory_space<vmem>>, vector<1x4x4xf32>
      %33 = vector.shape_cast %32 : vector<1x4x4xf32> to vector<4x4xf32>
      %cst_23 = arith.constant dense<0.000000e+00> : vector<256x4xf32>
      %34 = tpu.matmul %31, %33, %cst_23 {dimension_numbers = #tpu.dot_dimension_numbers<[1], [0], [0], [1], [0, 0, 1, 1], [], []>} : vector<256x4xf32>, vector<4x4xf32>, vector<256x4xf32> -> vector<256x4xf32>
      %35 = arith.addf %27, %34 : vector<256x4xf32>
      %c19_i32 = arith.constant 19 : i32
      %36 = arith.addi %2, %c19_i32 : i32
      %c0_24 = arith.constant 0 : index
      %37 = arith.index_cast %36 : i32 to index
      %c0_25 = arith.constant 0 : index
      %38 = vector.load %arg1[%c0_24, %37, %c0_25] : memref<1x342x4xf32, #tpu.memory_space<vmem>>, vector<1x256x4xf32>
      %39 = vector.shape_cast %38 : vector<1x256x4xf32> to vector<256x4xf32>
      %c4 = arith.constant 4 : index
      %c0_26 = arith.constant 0 : index
      %c0_27 = arith.constant 0 : index
      %40 = vector.load %arg2[%c4, %c0_26, %c0_27] : memref<9x4x4xf32, #tpu.memory_space<vmem>>, vector<1x4x4xf32>
      %41 = vector.shape_cast %40 : vector<1x4x4xf32> to vector<4x4xf32>
      %cst_28 = arith.constant dense<0.000000e+00> : vector<256x4xf32>
      %42 = tpu.matmul %39, %41, %cst_28 {dimension_numbers = #tpu.dot_dimension_numbers<[1], [0], [0], [1], [0, 0, 1, 1], [], []>} : vector<256x4xf32>, vector<4x4xf32>, vector<256x4xf32> -> vector<256x4xf32>
      %43 = arith.addf %35, %42 : vector<256x4xf32>
      %c20_i32 = arith.constant 20 : i32
      %44 = arith.addi %2, %c20_i32 : i32
      %c0_29 = arith.constant 0 : index
      %45 = arith.index_cast %44 : i32 to index
      %c0_30 = arith.constant 0 : index
      %46 = vector.load %arg1[%c0_29, %45, %c0_30] : memref<1x342x4xf32, #tpu.memory_space<vmem>>, vector<1x256x4xf32>
      %47 = vector.shape_cast %46 : vector<1x256x4xf32> to vector<256x4xf32>
      %c5 = arith.constant 5 : index
      %c0_31 = arith.constant 0 : index
      %c0_32 = arith.constant 0 : index
      %48 = vector.load %arg2[%c5, %c0_31, %c0_32] : memref<9x4x4xf32, #tpu.memory_space<vmem>>, vector<1x4x4xf32>
      %49 = vector.shape_cast %48 : vector<1x4x4xf32> to vector<4x4xf32>
      %cst_33 = arith.constant dense<0.000000e+00> : vector<256x4xf32>
      %50 = tpu.matmul %47, %49, %cst_33 {dimension_numbers = #tpu.dot_dimension_numbers<[1], [0], [0], [1], [0, 0, 1, 1], [], []>} : vector<256x4xf32>, vector<4x4xf32>, vector<256x4xf32> -> vector<256x4xf32>
      %51 = arith.addf %43, %50 : vector<256x4xf32>
      %c36_i32 = arith.constant 36 : i32
      %52 = arith.addi %2, %c36_i32 : i32
      %c0_34 = arith.constant 0 : index
      %53 = arith.index_cast %52 : i32 to index
      %c0_35 = arith.constant 0 : index
      %54 = vector.load %arg1[%c0_34, %53, %c0_35] : memref<1x342x4xf32, #tpu.memory_space<vmem>>, vector<1x256x4xf32>
      %55 = vector.shape_cast %54 : vector<1x256x4xf32> to vector<256x4xf32>
      %c6 = arith.constant 6 : index
      %c0_36 = arith.constant 0 : index
      %c0_37 = arith.constant 0 : index
      %56 = vector.load %arg2[%c6, %c0_36, %c0_37] : memref<9x4x4xf32, #tpu.memory_space<vmem>>, vector<1x4x4xf32>
      %57 = vector.shape_cast %56 : vector<1x4x4xf32> to vector<4x4xf32>
      %cst_38 = arith.constant dense<0.000000e+00> : vector<256x4xf32>
      %58 = tpu.matmul %55, %57, %cst_38 {dimension_numbers = #tpu.dot_dimension_numbers<[1], [0], [0], [1], [0, 0, 1, 1], [], []>} : vector<256x4xf32>, vector<4x4xf32>, vector<256x4xf32> -> vector<256x4xf32>
      %59 = arith.addf %51, %58 : vector<256x4xf32>
      %c37_i32 = arith.constant 37 : i32
      %60 = arith.addi %2, %c37_i32 : i32
      %c0_39 = arith.constant 0 : index
      %61 = arith.index_cast %60 : i32 to index
      %c0_40 = arith.constant 0 : index
      %62 = vector.load %arg1[%c0_39, %61, %c0_40] : memref<1x342x4xf32, #tpu.memory_space<vmem>>, vector<1x256x4xf32>
      %63 = vector.shape_cast %62 : vector<1x256x4xf32> to vector<256x4xf32>
      %c7 = arith.constant 7 : index
      %c0_41 = arith.constant 0 : index
      %c0_42 = arith.constant 0 : index
      %64 = vector.load %arg2[%c7, %c0_41, %c0_42] : memref<9x4x4xf32, #tpu.memory_space<vmem>>, vector<1x4x4xf32>
      %65 = vector.shape_cast %64 : vector<1x4x4xf32> to vector<4x4xf32>
      %cst_43 = arith.constant dense<0.000000e+00> : vector<256x4xf32>
      %66 = tpu.matmul %63, %65, %cst_43 {dimension_numbers = #tpu.dot_dimension_numbers<[1], [0], [0], [1], [0, 0, 1, 1], [], []>} : vector<256x4xf32>, vector<4x4xf32>, vector<256x4xf32> -> vector<256x4xf32>
      %67 = arith.addf %59, %66 : vector<256x4xf32>
      %c38_i32 = arith.constant 38 : i32
      %68 = arith.addi %2, %c38_i32 : i32
      %c0_44 = arith.constant 0 : index
      %69 = arith.index_cast %68 : i32 to index
      %c0_45 = arith.constant 0 : index
      %70 = vector.load %arg1[%c0_44, %69, %c0_45] : memref<1x342x4xf32, #tpu.memory_space<vmem>>, vector<1x256x4xf32>
      %71 = vector.shape_cast %70 : vector<1x256x4xf32> to vector<256x4xf32>
      %c8 = arith.constant 8 : index
      %c0_46 = arith.constant 0 : index
      %c0_47 = arith.constant 0 : index
      %72 = vector.load %arg2[%c8, %c0_46, %c0_47] : memref<9x4x4xf32, #tpu.memory_space<vmem>>, vector<1x4x4xf32>
      %73 = vector.shape_cast %72 : vector<1x4x4xf32> to vector<4x4xf32>
      %cst_48 = arith.constant dense<0.000000e+00> : vector<256x4xf32>
      %74 = tpu.matmul %71, %73, %cst_48 {dimension_numbers = #tpu.dot_dimension_numbers<[1], [0], [0], [1], [0, 0, 1, 1], [], []>} : vector<256x4xf32>, vector<4x4xf32>, vector<256x4xf32> -> vector<256x4xf32>
      %75 = arith.addf %67, %74 : vector<256x4xf32>
      %c0_49 = arith.constant 0 : index
      %c0_50 = arith.constant 0 : index
      %76 = vector.load %arg3[%c0_49, %c0_50] : memref<1x4xf32, #tpu.memory_space<vmem>>, vector<1x4xf32>
      %77 = vector.broadcast %76 : vector<1x4xf32> to vector<256x4xf32>
      %78 = arith.addf %75, %77 : vector<256x4xf32>
      %cst_51 = arith.constant 0.000000e+00 : f32
      %79 = vector.broadcast %cst_51 : f32 to vector<256x4xf32>
      %80 = arith.subf %79, %78 : vector<256x4xf32>
      %81 = math.exp %80 : vector<256x4xf32>
      %cst_52 = arith.constant 1.000000e+00 : f32
      %82 = vector.broadcast %cst_52 : f32 to vector<256x4xf32>
      %83 = arith.addf %82, %81 : vector<256x4xf32>
      %cst_53 = arith.constant 1.000000e+00 : f32
      %84 = vector.broadcast %cst_53 : f32 to vector<256x4xf32>
      %85 = arith.divf %84, %83 : vector<256x4xf32>
      %86 = arith.mulf %78, %85 : vector<256x4xf32>
      %c0_54 = arith.constant 0 : index
      %87 = arith.index_cast %2 : i32 to index
      %c0_55 = arith.constant 0 : index
      %88 = vector.load %arg4[%c0_54, %87, %c0_55] : memref<1x288x4xf32, #tpu.memory_space<vmem>>, vector<1x256x4xf32>
      %89 = vector.shape_cast %88 : vector<1x256x4xf32> to vector<256x4xf32>
      %90 = vector.shape_cast %86 : vector<256x4xf32> to vector<1x256x4xf32>
      tpu.vector_store %arg4[%c0_54, %87, %c0_55], %90 {strides = array<i32>} : memref<1x288x4xf32, #tpu.memory_space<vmem>>, vector<1x256x4xf32>,
    }
    %c2_i32_0 = arith.constant 2 : i32
    return
  }
  func.func @transform_0(%arg0: i32) -> (i32, i32, i32) {
    %c0_i32 = arith.constant 0 : i32
    %c0_i32_0 = arith.constant 0 : i32
    %c0_i32_1 = arith.constant 0 : i32
    return %arg0, %c0_i32, %c0_i32_0 : i32, i32, i32
  }
  func.func @transform_1(%arg0: i32) -> (i32, i32, i32) {
    %c0_i32 = arith.constant 0 : i32
    %c0_i32_0 = arith.constant 0 : i32
    %c0_i32_1 = arith.constant 0 : i32
    %c0_i32_2 = arith.constant 0 : i32
    return %c0_i32, %c0_i32_0, %c0_i32_1 : i32, i32, i32
  }
  func.func @transform_2(%arg0: i32) -> (i32, i32) {
    %c0_i32 = arith.constant 0 : i32
    %c0_i32_0 = arith.constant 0 : i32
    %c0_i32_1 = arith.constant 0 : i32
    return %c0_i32, %c0_i32_0 : i32, i32
  }
  func.func @transform_3(%arg0: i32) -> (i32, i32, i32) {
    %c0_i32 = arith.constant 0 : i32
    %c0_i32_0 = arith.constant 0 : i32
    %c0_i32_1 = arith.constant 0 : i32
    return %arg0, %c0_i32, %c0_i32_0 : i32, i32, i32
  }
}

</mosaic_0001>

<bundles_post_ra>
// kernel: tpu_custom_call.1
= control target key start
LH: loop header
LB: loop body
LE: loop exit
PB: predicated region body
PF: predicated region fallthrough
CT: control target
= control target key end

     0   :  { %s4181_s12 = smov 0   ;;  %s5458_s0 = inlined_call_operand.vmem [shape: f32[2,342,4], index: 0, kind: input, shape index: {}]   ;;  %s5459_s1 = inlined_call_operand.vmem [shape: f32[9,4,4], index: 1, kind: input, shape index: {}]   ;;  %s5460_s2 = inlined_call_operand.vmem [shape: f32[1,4], index: 2, kind: input, shape index: {}]   ;;  %s5461_s3 = inlined_call_operand.vmem [shape: f32[2,288,4], index: 3, kind: output, shape index: {}]  }
   0x1 LB: > { %s3423_s13 = sadd.s32 4294967295, %s4155_s12   ;;  %p3427_p0 = scmp.ge.s32.totalorder %s4155_s12, 1  ;;  %s4155_s12 = sphi %s4181_s12, %s13_s12  }
   0x2   : > { %p137_p1 = scmp.lt.s32.totalorder %s4155_s12, 3 }
   0x4   : > { %p138_p2 = pnand %p3427_p0, %p137_p1 }
   0x5   : > { %p161_p3 = scmp.lt.s32.totalorder (!%p138_p2), %s3423_s13, 1  ;;  %s4199_s22 = smov (!%p138_p2), 0  }
   0x6   : > { %141 = sbr.rel (%p138_p2) target bundleno = 765 (0x2fd), region = 32 }
   0xb   : > { %s5473_s13 = smov (!%p161_p3, %s3423_s13), 1 }
   0xc   : > { %s3997_s14 = smul.u32 344, %s5473_s13 }
   0xd   : > { %s3998_s15 = smul.u32 288, %s5473_s13 }
   0xe   : > { %s4192_s18 = scalar_lea.vmem %s5458_s0, %s3997_s14 }
   0xf   : > { %s4197_s21 = scalar_lea.vmem %s5461_s3, %s3998_s15 }
  0x10 LB: >> { %v3463_v0 = vld [vmem:[%s5459_s1 + $0x4] sm:$0xf]  ;;  %vm347_vm0 = vcmask 1043456   ;;  %v3562_v1 = vld [vmem:[%s5459_s1 + $0x8] sm:$0xf]  ;;  %s3430_s4 = sshll.u32 %s4159_s22, 8  ;;  %s4159_s22 = sphi %s4199_s22, %s176_s22  }
  0x11   : >> { %3994 = vmatpush.msk.msra.mxu1 %vm347_vm0, %v3463_v0  ;;  %3995 = vmatpush.msk.msra.mxu2 %vm347_vm0, %v3463_v0  ;;  %v3628_v2 = vld [vmem:[%s5459_s1 + $0xc] sm:$0xf]  ;;  %v213_v3 = vld [vmem:[%s5459_s1] sm:$0xf]  ;;  %v3694_v4 = vld [vmem:[%s5459_s1 + $0x10] sm:$0xf] }
  0x12   : >> { %3996 = vmatpush.msk.msra.mxu3 %vm347_vm0, %v3463_v0  ;;  %p178_p4 = scmp.lt.s32.totalorder %s3430_s4, 32  ;;  %3464 = vmatpush.msk.msra.mxu0 %vm347_vm0, %v3463_v0  ;;  %vm250_vm1 = vcmask 31744   ;;  %v3826_v25 = vld [vmem:[%s5459_s1 + $0x18] sm:$0xf]  ;;  %v3892_v26 = vld [vmem:[%s5459_s1 + $0x1c] sm:$0xf] }
  0x13   : >> { %3563 = vmatpush.msk.msrb.mxu2 %vm347_vm0, %v3562_v1  ;;  %3497 = vmatpush.msk.msrb.mxu1 %vm347_vm0, %v213_v3  ;;  %v3760_v27 = vld [vmem:[%s5459_s1 + $0x14] sm:$0xf]  ;;  %v3958_v32 = vld [vmem:[%s5459_s1 + $0x20] sm:$0xf]  ;;  %s176_s22 = sadd.s32 1, %s4159_s22  }
  0x14   : >> { %3629 = vmatpush.msk.msrb.mxu3 %vm347_vm0, %v3628_v2  ;;  %s5475_s4 = smov (!%p178_p4, %s3430_s4), 32  ;;  %3695 = vmatpush.msk.msrb.mxu0 %vm347_vm0, %v3694_v4  ;;  %p173_p5 = scmp.ge.s32.totalorder %s176_s22, 2  }
  0x15   : >> { %s4232_s7 = scalar_lea.vmem %s4192_s18, %s5475_s4  ;;  %s4899_s20 = scalar_lea.vmem %s4197_s21, %s5475_s4 }
  0x16   : >> { %v3439_v5 = vld [vmem:[%s4232_s7 + $0x41] sm:$0xff]  ;;  %v3440_v9 = vld [vmem:[%s4232_s7 + $0x49] sm:$0xff]  ;;  %v3441_v13 = vld [vmem:[%s4232_s7 + $0x51] sm:$0xff] }
  0x17   : >> { %v3447_v6 = vld [vmem:[%s4232_s7 + $0x81] sm:$0xff]  ;;  %3473 = vmatmul.msk.f32.vlgmr.msra.gmra.mxu1 %vm250_vm1, %v3439_v5  ;;  %v3448_v10 = vld [vmem:[%s4232_s7 + $0x89] sm:$0xff]  ;;  %v3449_v14 = vld [vmem:[%s4232_s7 + $0x91] sm:$0xff] }
  0x18   : >> { %v3455_v7 = vld [vmem:[%s4232_s7 + $0xc1] sm:$0xff]  ;;  %3481 = vmatmul.msk.f32.vlgmr.msra.gmra.mxu2 %vm250_vm1, %v3447_v6  ;;  %v3456_v11 = vld [vmem:[%s4232_s7 + $0xc9] sm:$0xff]  ;;  %v3457_v15 = vld [vmem:[%s4232_s7 + $0xd1] sm:$0xff]  ;;  %3761 = vmatpush.msk.msra.mxu1 %vm347_vm0, %v3760_v27 }
  0x19   : >> { %v3431_v8 = vld [vmem:[%s4232_s7 + $0x1] sm:$0xff]  ;;  %3489 = vmatmul.msk.f32.vlgmr.msra.gmra.mxu3 %vm250_vm1, %v3455_v7  ;;  %v3432_v12 = vld [vmem:[%s4232_s7 + $0x9] sm:$0xff]  ;;  %v3433_v16 = vld [vmem:[%s4232_s7 + $0x11] sm:$0xff]  ;;  %3827 = vmatpush.msk.msra.mxu2 %vm347_vm0, %v3826_v25 }
  0x1a   : >> { %3465 = vmatmul.msk.f32.vlgmr.msra.gmra.mxu0 %vm250_vm1, %v3431_v8  ;;  %v3442_v17 = vld [vmem:[%s4232_s7 + $0x59] sm:$0xff]  ;;  %v3443_v21 = vld [vmem:[%s4232_s7 + $0x61] sm:$0xff]  ;;  %3893 = vmatpush.msk.msra.mxu3 %vm347_vm0, %v3892_v26  ;;  %v3444_v28 = vld [vmem:[%s4232_s7 + $0x69] sm:$0xff] }
  0x1b   : >> { %v3450_v18 = vld [vmem:[%s4232_s7 + $0x99] sm:$0xff]  ;;  %v3451_v22 = vld [vmem:[%s4232_s7 + $0xa1] sm:$0xff]  ;;  %v3452_v29 = vld [vmem:[%s4232_s7 + $0xa9] sm:$0xff]  ;;  %3959 = vmatpush.msk.msra.mxu0 %vm347_vm0, %v3958_v32 }
  0x1c   : >> { %v3458_v19 = vld [vmem:[%s4232_s7 + $0xd9] sm:$0xff]  ;;  %v3459_v23 = vld [vmem:[%s4232_s7 + $0xe1] sm:$0xff]  ;;  %v3460_v30 = vld [vmem:[%s4232_s7 + $0xe9] sm:$0xff] }
  0x1d   : >> { %v3434_v20 = vld [vmem:[%s4232_s7 + $0x19] sm:$0xff]  ;;  %v3435_v24 = vld [vmem:[%s4232_s7 + $0x21] sm:$0xff]  ;;  %v3436_v31 = vld [vmem:[%s4232_s7 + $0x29] sm:$0xff] }
  0x1e   : >> { %v3445_v33 = vld [vmem:[%s4232_s7 + $0x71] sm:$0xff]  ;;  %v3446_v37 = vld [vmem:[%s4232_s7 + $0x79] sm:$0xff]  ;;  %v3530_v42 = vld [vmem:[%s4232_s7 + $0x2] sm:$0xff] }
  0x1f   : >> { %3474 = vmatmul.msk.f32.gmra.mxu1 %vm250_vm1, %v3440_v9  ;;  %v3453_v34 = vld [vmem:[%s4232_s7 + $0xb1] sm:$0xff]  ;;  %v3454_v38 = vld [vmem:[%s4232_s7 + $0xb9] sm:$0xff]  ;;  %v182_v45 = vld [vmem:[%s4232_s7 + $0x8] sm:$0xff] }
  0x20   : >> { %3482 = vmatmul.msk.f32.gmra.mxu2 %vm250_vm1, %v3448_v10  ;;  %v3461_v35 = vld [vmem:[%s4232_s7 + $0xf1] sm:$0xff]  ;;  %v3462_v39 = vld [vmem:[%s4232_s7 + $0xf9] sm:$0xff]  ;;  %v3598_v50 = vld [vmem:[%s4232_s7 + $0x22] sm:$0xff] }
  0x21   : >> { %3490 = vmatmul.msk.f32.gmra.mxu3 %vm250_vm1, %v3456_v11  ;;  %v3437_v36 = vld [vmem:[%s4232_s7 + $0x31] sm:$0xff]  ;;  %v3438_v40 = vld [vmem:[%s4232_s7 + $0x39] sm:$0xff]  ;;  %v3664_v51 = vld [vmem:[%s4232_s7 + $0x23] sm:$0xff] }
  0x22   : >> { %3466 = vmatmul.msk.f32.gmra.mxu0 %vm250_vm1, %v3432_v12  ;;  %v181_v41 = vld [vmem:[%s4232_s7] sm:$0xff]  ;;  %v3596_v43 = vld [vmem:[%s4232_s7 + $0x12] sm:$0xff]  ;;  %v3531_v46 = vld [vmem:[%s4232_s7 + $0xa] sm:$0xff] }
  0x23   : >> { %v3662_v44 = vld [vmem:[%s4232_s7 + $0x13] sm:$0xff]  ;;  %v3663_v48 = vld [vmem:[%s4232_s7 + $0x1b] sm:$0xff]  ;;  %v3599_v53 = vld [vmem:[%s4232_s7 + $0x2a] sm:$0xff] }
  0x24   : >> { %v3597_v47 = vld [vmem:[%s4232_s7 + $0x1a] sm:$0xff]  ;;  %v183_v49 = vld [vmem:[%s4232_s7 + $0x10] sm:$0xff]  ;;  %v186_v58 = vld [vmem:[%s4232_s7 + $0x28] sm:$0xff] }
  0x25   : >> { %v184_v52 = vld [vmem:[%s4232_s7 + $0x18] sm:$0xff]  ;;  %v3665_v54 = vld [vmem:[%s4232_s7 + $0x2b] sm:$0xff]  ;;  %v185_v55 = vld [vmem:[%s4232_s7 + $0x20] sm:$0xff] }
  0x26   : >> { %v3600_v56 = vld [vmem:[%s4232_s7 + $0x32] sm:$0xff]  ;;  %v3601_v59 = vld [vmem:[%s4232_s7 + $0x3a] sm:$0xff]  ;;  %v3602_v62 = vld [vmem:[%s4232_s7 + $0x42] sm:$0xff] }
  0x27   : >> { %3475 = vmatmul.msk.f32.gmra.mxu1 %vm250_vm1, %v3441_v13  ;;  %v3666_v57 = vld [vmem:[%s4232_s7 + $0x33] sm:$0xff]  ;;  %v3667_v60 = vld [vmem:[%s4232_s7 + $0x3b] sm:$0xff]  ;;  %v3668_v63 = vld [vmem:[%s4232_s7 + $0x43] sm:$0xff] }
  0x28   : >> { %3483 = vmatmul.msk.f32.gmra.mxu2 %vm250_vm1, %v3449_v14  ;;  %v187_v61 = vld [vmem:[%s4232_s7 + $0x30] sm:$0xff]  ;;  %v188_v0 = vld [vmem:[%s4232_s7 + $0x38] sm:$0xff]  ;;  %v189_v4 = vld [vmem:[%s4232_s7 + $0x40] sm:$0xff] }
  0x29   : >> { %3491 = vmatmul.msk.f32.gmra.mxu3 %vm250_vm1, %v3457_v15  ;;  %v3603_v1 = vld [vmem:[%s4232_s7 + $0x4a] sm:$0xff]  ;;  %v3604_v5 = vld [vmem:[%s4232_s7 + $0x52] sm:$0xff]  ;;  %v3605_v12 = vld [vmem:[%s4232_s7 + $0x5a] sm:$0xff] }
  0x2a   : >> { %3467 = vmatmul.msk.f32.gmra.mxu0 %vm250_vm1, %v3433_v16  ;;  %v3669_v2 = vld [vmem:[%s4232_s7 + $0x4b] sm:$0xff]  ;;  %v3670_v7 = vld [vmem:[%s4232_s7 + $0x53] sm:$0xff]  ;;  %v3671_v14 = vld [vmem:[%s4232_s7 + $0x5b] sm:$0xff] }
  0x2b   : >> { %v190_v11 = vld [vmem:[%s4232_s7 + $0x48] sm:$0xff]  ;;  %v192_v25 = vld [vmem:[%s4232_s7 + $0x58] sm:$0xff]  ;;  %v193_v32 = vld [vmem:[%s4232_s7 + $0x60] sm:$0xff] }
  0x2c   : >> { %v3607_v26 = vld [vmem:[%s4232_s7 + $0x6a] sm:$0xff] }
  0x2f   : >> { %3476 = vmatmul.msk.f32.gmra.mxu1 %vm250_vm1, %v3442_v17 }
  0x30   : >> { %3484 = vmatmul.msk.f32.gmra.mxu2 %vm250_vm1, %v3450_v18  ;;  %v191_v18 = vld [vmem:[%s4232_s7 + $0x50] sm:$0xff] }
  0x31   : >> { %3492 = vmatmul.msk.f32.gmra.mxu3 %vm250_vm1, %v3458_v19  ;;  %v3606_v19 = vld [vmem:[%s4232_s7 + $0x62] sm:$0xff] }
  0x32   : >> { %3468 = vmatmul.msk.f32.gmra.mxu0 %vm250_vm1, %v3434_v20 }
  0x37   : >> { %3477 = vmatmul.msk.f32.gmra.mxu1 %vm250_vm1, %v3443_v21  ;;  %v3672_v21 = vld [vmem:[%s4232_s7 + $0x63] sm:$0xff] }
  0x38   : >> { %3485 = vmatmul.msk.f32.gmra.mxu2 %vm250_vm1, %v3451_v22 }
  0x39   : >> { %3493 = vmatmul.msk.f32.gmra.mxu3 %vm250_vm1, %v3459_v23 }
  0x3a   : >> { %3469 = vmatmul.msk.f32.gmra.mxu0 %vm250_vm1, %v3435_v24 }
  0x3f   : >> { %3478 = vmatmul.msk.f32.gmra.mxu1 %vm250_vm1, %v3444_v28  ;;  %v3673_v28 = vld [vmem:[%s4232_s7 + $0x6b] sm:$0xff] }
  0x40   : >> { %3486 = vmatmul.msk.f32.gmra.mxu2 %vm250_vm1, %v3452_v29 }
  0x41   : >> { %3494 = vmatmul.msk.f32.gmra.mxu3 %vm250_vm1, %v3460_v30 }
  0x42   : >> { %3470 = vmatmul.msk.f32.gmra.mxu0 %vm250_vm1, %v3436_v31 }
  0x47   : >> { %3479 = vmatmul.msk.f32.gmra.mxu1 %vm250_vm1, %v3445_v33  ;;  %v3608_v33 = vld [vmem:[%s4232_s7 + $0x72] sm:$0xff] }
  0x48   : >> { %3487 = vmatmul.msk.f32.gmra.mxu2 %vm250_vm1, %v3453_v34 }
  0x49   : >> { %3495 = vmatmul.msk.f32.gmra.mxu3 %vm250_vm1, %v3461_v35  ;;  %v3674_v35 = vld [vmem:[%s4232_s7 + $0x73] sm:$0xff] }
  0x4a   : >> { %3471 = vmatmul.msk.f32.gmra.mxu0 %vm250_vm1, %v3437_v36 }
  0x4f   : >> { %3480 = vmatmul.msk.f32.gmra.mxu1 %vm250_vm1, %v3446_v37 }
  0x50   : >> { %3488 = vmatmul.msk.f32.gmra.mxu2 %vm250_vm1, %v3454_v38 }
  0x51   : >> { %3496 = vmatmul.msk.f32.gmra.mxu3 %vm250_vm1, %v3462_v39  ;;  %v194_v39 = vld [vmem:[%s4232_s7 + $0x68] sm:$0xff] }
  0x52   : >> { %3472 = vmatmul.msk.f32.gmra.mxu0 %vm250_vm1, %v3438_v40  ;;  %v3609_v40 = vld [vmem:[%s4232_s7 + $0x7a] sm:$0xff] }
  0x57   : >> { %3498 = vmatmul.msk.f32.vlgmr.msrb.gmra.mxu1 %vm250_vm1, %v181_v41 }
  0x58   : >> { %3564 = vmatmul.msk.f32.vlgmr.msrb.gmra.mxu2 %vm250_vm1, %v3530_v42  ;;  %v3675_v42 = vld [vmem:[%s4232_s7 + $0x7b] sm:$0xff] }
  0x59   : >> { %3630 = vmatmul.msk.f32.vlgmr.msrb.gmra.mxu3 %vm250_vm1, %v3596_v43 }
  0x5a   : >> { %3696 = vmatmul.msk.f32.vlgmr.msrb.gmra.mxu0 %vm250_vm1, %v3662_v44 }
  0x5f   : >> { %3499 = vmatmul.msk.f32.gmra.mxu1 %vm250_vm1, %v182_v45 }
  0x60   : >> { %3565 = vmatmul.msk.f32.gmra.mxu2 %vm250_vm1, %v3531_v46  ;;  %v195_v46 = vld [vmem:[%s4232_s7 + $0x70] sm:$0xff] }
  0x61   : >> { %3631 = vmatmul.msk.f32.gmra.mxu3 %vm250_vm1, %v3597_v47 }
  0x62   : >> { %3697 = vmatmul.msk.f32.gmra.mxu0 %vm250_vm1, %v3663_v48 }
  0x67   : >> { %3500 = vmatmul.msk.f32.gmra.mxu1 %vm250_vm1, %v183_v49  ;;  %v3676_v49 = vld [vmem:[%s4232_s7 + $0x83] sm:$0xff] }
  0x68   : >> { %3566 = vmatmul.msk.f32.gmra.mxu2 %vm250_vm1, %v3596_v43 }
  0x69   : >> { %3632 = vmatmul.msk.f32.gmra.mxu3 %vm250_vm1, %v3598_v50 }
  0x6a   : >> { %3698 = vmatmul.msk.f32.gmra.mxu0 %vm250_vm1, %v3664_v51 }
  0x6f   : >> { %3501 = vmatmul.msk.f32.gmra.mxu1 %vm250_vm1, %v184_v52 }
  0x70   : >> { %3567 = vmatmul.msk.f32.gmra.mxu2 %vm250_vm1, %v3597_v47  ;;  %v3610_v47 = vld [vmem:[%s4232_s7 + $0x82] sm:$0xff] }
  0x71   : >> { %3633 = vmatmul.msk.f32.gmra.mxu3 %vm250_vm1, %v3599_v53 }
  0x72   : >> { %3699 = vmatmul.msk.f32.gmra.mxu0 %vm250_vm1, %v3665_v54  ;;  %v3611_v54 = vld [vmem:[%s4232_s7 + $0x8a] sm:$0xff] }
  0x77   : >> { %3502 = vmatmul.msk.f32.gmra.mxu1 %vm250_vm1, %v185_v55 }
  0x78   : >> { %3568 = vmatmul.msk.f32.gmra.mxu2 %vm250_vm1, %v3598_v50 }
  0x79   : >> { %3634 = vmatmul.msk.f32.gmra.mxu3 %vm250_vm1, %v3600_v56 }
  0x7a   : >> { %3700 = vmatmul.msk.f32.gmra.mxu0 %vm250_vm1, %v3666_v57 }
  0x7f   : >> { %3503 = vmatmul.msk.f32.gmra.mxu1 %vm250_vm1, %v186_v58 }
  0x80   : >> { %3569 = vmatmul.msk.f32.gmra.mxu2 %vm250_vm1, %v3599_v53  ;;  %v196_v53 = vld [vmem:[%s4232_s7 + $0x78] sm:$0xff] }
  0x81   : >> { %3635 = vmatmul.msk.f32.gmra.mxu3 %vm250_vm1, %v3601_v59 }
  0x82   : >> { %3701 = vmatmul.msk.f32.gmra.mxu0 %vm250_vm1, %v3667_v60  ;;  %v197_v60 = vld [vmem:[%s4232_s7 + $0x80] sm:$0xff] }
  0x87   : >> { %3504 = vmatmul.msk.f32.gmra.mxu1 %vm250_vm1, %v187_v61  ;;  %v3612_v61 = vld [vmem:[%s4232_s7 + $0x92] sm:$0xff] }
  0x88   : >> { %3570 = vmatmul.msk.f32.gmra.mxu2 %vm250_vm1, %v3600_v56  ;;  %v3677_v56 = vld [vmem:[%s4232_s7 + $0x8b] sm:$0xff] }
  0x89   : >> { %3636 = vmatmul.msk.f32.gmra.mxu3 %vm250_vm1, %v3602_v62 }
  0x8a   : >> { %3702 = vmatmul.msk.f32.gmra.mxu0 %vm250_vm1, %v3668_v63  ;;  %v3678_v63 = vld [vmem:[%s4232_s7 + $0x93] sm:$0xff] }
  0x8f   : >> { %3505 = vmatmul.msk.f32.gmra.mxu1 %vm250_vm1, %v188_v0 }
  0x90   : >> { %3571 = vmatmul.msk.f32.gmra.mxu2 %vm250_vm1, %v3601_v59 }
  0x91   : >> { %3637 = vmatmul.msk.f32.gmra.mxu3 %vm250_vm1, %v3603_v1 }
  0x92   : >> { %3703 = vmatmul.msk.f32.gmra.mxu0 %vm250_vm1, %v3669_v2 }
  0x94   : >> { %v4372_v3 = vpop.f32.mrf.mxu1 }
  0x97   : >> { %v4376_v6 = vpop.f32.mrf.mxu0  ;;  %3506 = vmatmul.msk.f32.gmra.mxu1 %vm250_vm1, %v189_v4 }
  0x98   : >> { %3572 = vmatmul.msk.f32.gmra.mxu2 %vm250_vm1, %v3602_v62 }
  0x99   : >> { %3638 = vmatmul.msk.f32.gmra.mxu3 %vm250_vm1, %v3604_v5 }
  0x9a   : >> { %3704 = vmatmul.msk.f32.gmra.mxu0 %vm250_vm1, %v3670_v7  ;;  %v198_v7 = vld [vmem:[%s4232_s7 + $0x88] sm:$0xff] }
  0x9b   : >> { %v4383_v8 = vpop.f32.mrf.mxu2 }
  0x9c   : >> { %v4385_v9 = vpop.f32.mrf.mxu3  ;;  %v4387_v10 = vpop.f32.mrf.mxu1 }
  0x9f   : >> { %v4391_v13 = vpop.f32.mrf.mxu0  ;;  %3507 = vmatmul.msk.f32.gmra.mxu1 %vm250_vm1, %v190_v11 }
  0xa0   : >> { %3573 = vmatmul.msk.f32.gmra.mxu2 %vm250_vm1, %v3603_v1 }
  0xa1   : >> { %3639 = vmatmul.msk.f32.gmra.mxu3 %vm250_vm1, %v3605_v12 }
  0xa2   : >> { %3705 = vmatmul.msk.f32.gmra.mxu0 %vm250_vm1, %v3671_v14 }
  0xa3   : >> { %v4398_v15 = vpop.f32.mrf.mxu2 }
  0xa4   : >> { %v4400_v16 = vpop.f32.mrf.mxu3  ;;  %v4402_v17 = vpop.f32.mrf.mxu1 }
  0xa7   : >> { %v4406_v20 = vpop.f32.mrf.mxu0  ;;  %3508 = vmatmul.msk.f32.gmra.mxu1 %vm250_vm1, %v191_v18  ;;  %v3679_v18 = vld [vmem:[%s4232_s7 + $0x9b] sm:$0xff] }
  0xa8   : >> { %3574 = vmatmul.msk.f32.gmra.mxu2 %vm250_vm1, %v3604_v5 }
  0xa9   : >> { %3640 = vmatmul.msk.f32.gmra.mxu3 %vm250_vm1, %v3606_v19 }
  0xaa   : >> { %3706 = vmatmul.msk.f32.gmra.mxu0 %vm250_vm1, %v3672_v21 }
  0xab   : >> { %v4413_v22 = vpop.f32.mrf.mxu2 }
  0xac   : >> { %v4415_v23 = vpop.f32.mrf.mxu3  ;;  %v4417_v24 = vpop.f32.mrf.mxu1 }
  0xaf   : >> { %v4421_v27 = vpop.f32.mrf.mxu0  ;;  %3509 = vmatmul.msk.f32.gmra.mxu1 %vm250_vm1, %v192_v25 }
  0xb0   : >> { %3575 = vmatmul.msk.f32.gmra.mxu2 %vm250_vm1, %v3605_v12  ;;  %v3613_v12 = vld [vmem:[%s4232_s7 + $0x9a] sm:$0xff] }
  0xb1   : >> { %3641 = vmatmul.msk.f32.gmra.mxu3 %vm250_vm1, %v3607_v26 }
  0xb2   : >> { %3707 = vmatmul.msk.f32.gmra.mxu0 %vm250_vm1, %v3673_v28 }
  0xb3   : >> { %v4428_v29 = vpop.f32.mrf.mxu2 }
  0xb4   : >> { %v4430_v30 = vpop.f32.mrf.mxu3  ;;  %v4432_v31 = vpop.f32.mrf.mxu1 }
  0xb7   : >> { %v4436_v34 = vpop.f32.mrf.mxu0  ;;  %3510 = vmatmul.msk.f32.gmra.mxu1 %vm250_vm1, %v193_v32  ;;  %v199_v32 = vld [vmem:[%s4232_s7 + $0x90] sm:$0xff] }
  0xb8   : >> { %3576 = vmatmul.msk.f32.gmra.mxu2 %vm250_vm1, %v3606_v19 }
  0xb9   : >> { %3642 = vmatmul.msk.f32.gmra.mxu3 %vm250_vm1, %v3608_v33 }
  0xba   : >> { %3708 = vmatmul.msk.f32.gmra.mxu0 %vm250_vm1, %v3674_v35  ;;  %v3614_v35 = vld [vmem:[%s4232_s7 + $0xa2] sm:$0xff] }
  0xbb   : >> { %v4443_v36 = vpop.f32.mrf.mxu2 }
  0xbc   : >> { %v4445_v37 = vpop.f32.mrf.mxu3  ;;  %v4447_v38 = vpop.f32.mrf.mxu1 }
  0xbf   : >> { %v4451_v41 = vpop.f32.mrf.mxu0  ;;  %3511 = vmatmul.msk.f32.gmra.mxu1 %vm250_vm1, %v194_v39 }
  0xc0   : >> { %3577 = vmatmul.msk.f32.gmra.mxu2 %vm250_vm1, %v3607_v26 }
  0xc1   : >> { %3643 = vmatmul.msk.f32.gmra.mxu3 %vm250_vm1, %v3609_v40 }
  0xc2   : >> { %3709 = vmatmul.msk.f32.gmra.mxu0 %vm250_vm1, %v3675_v42 }
  0xc3   : >> { %v4458_v43 = vpop.f32.mrf.mxu2 }
  0xc4   : >> { %v4460_v44 = vpop.f32.mrf.mxu3  ;;  %v4462_v45 = vpop.f32.mrf.mxu1 }
  0xc7   : >> { %v4466_v48 = vpop.f32.mrf.mxu0  ;;  %3512 = vmatmul.msk.f32.gmra.mxu1 %vm250_vm1, %v195_v46 }
  0xc8   : >> { %3578 = vmatmul.msk.f32.gmra.mxu2 %vm250_vm1, %v3608_v33 }
  0xc9   : >> { %3644 = vmatmul.msk.f32.gmra.mxu3 %vm250_vm1, %v3610_v47 }
  0xca   : >> { %3710 = vmatmul.msk.f32.gmra.mxu0 %vm250_vm1, %v3676_v49 }
  0xcb   : >> { %v4473_v50 = vpop.f32.mrf.mxu2 }
  0xcc   : >> { %v4475_v51 = vpop.f32.mrf.mxu3  ;;  %v4477_v52 = vpop.f32.mrf.mxu1 }
  0xcf   : >> { %v4481_v55 = vpop.f32.mrf.mxu0  ;;  %3513 = vmatmul.msk.f32.gmra.mxu1 %vm250_vm1, %v196_v53 }
  0xd0   : >> { %3579 = vmatmul.msk.f32.gmra.mxu2 %vm250_vm1, %v3609_v40  ;;  %v3680_v40 = vld [vmem:[%s4232_s7 + $0xa3] sm:$0xff] }
  0xd1   : >> { %3645 = vmatmul.msk.f32.gmra.mxu3 %vm250_vm1, %v3611_v54 }
  0xd2   : >> { %3711 = vmatmul.msk.f32.gmra.mxu0 %vm250_vm1, %v3677_v56 }
  0xd3   : >> { %v4488_v57 = vpop.f32.mrf.mxu2 }
  0xd4   : >> { %v4490_v58 = vpop.f32.mrf.mxu3  ;;  %v580_v59 = vpop.f32.mrf.mxu1 }
  0xd5   : >> { %v581_v0 = vadd.f32 %v580_v59, %v4376_v6  ;;  %v3615_v59 = vld [vmem:[%s4232_s7 + $0xaa] sm:$0xff] }
  0xd7   : >> { %v1388_v62 = vpop.f32.mrf.mxu0  ;;  %3514 = vmatmul.msk.f32.gmra.mxu1 %vm250_vm1, %v197_v60 }
  0xd8   : >> { %3580 = vmatmul.msk.f32.gmra.mxu2 %vm250_vm1, %v3610_v47 }
  0xd9   : >> { %3646 = vmatmul.msk.f32.gmra.mxu3 %vm250_vm1, %v3612_v61 }
  0xda   : >> { %3712 = vmatmul.msk.f32.gmra.mxu0 %vm250_vm1, %v3678_v63 }
  0xdb   : >> { %v828_v1 = vpop.f32.mrf.mxu2 }
  0xdc   : >> { %v924_v2 = vadd.f32 %v828_v1, %v581_v0  ;;  %v1108_v4 = vpop.f32.mrf.mxu3  ;;  %v583_v5 = vpop.f32.mrf.mxu1 }
  0xdd   : >> { %v584_v6 = vadd.f32 %v583_v5, %v4391_v13 }
  0xde   : >> { %v1204_v11 = vadd.f32 %v1108_v4, %v924_v2  ;;  %v201_v4 = vld [vmem:[%s4232_s7 + $0xa0] sm:$0xff] }
  0xdf   : >> { %v1391_v14 = vpop.f32.mrf.mxu0  ;;  %3515 = vmatmul.msk.f32.gmra.mxu1 %vm250_vm1, %v198_v7  ;;  %v3616_v7 = vld [vmem:[%s4232_s7 + $0xb2] sm:$0xff] }
  0xe0   : >> { %v4503_v19 = vadd.f32 %v1388_v62, %v1204_v11  ;;  %3581 = vmatmul.msk.f32.gmra.mxu2 %vm250_vm1, %v3611_v54  ;;  %v200_v54 = vld [vmem:[%s4232_s7 + $0x98] sm:$0xff]  ;;  %v3681_v62 = vld [vmem:[%s4232_s7 + $0xab] sm:$0xff] }
  0xe1   : >> { %3647 = vmatmul.msk.f32.gmra.mxu3 %vm250_vm1, %v3613_v12 }
  0xe2   : >> { %3713 = vmatmul.msk.f32.gmra.mxu0 %vm250_vm1, %v3679_v18 }
  0xe3   : >> { %v831_v21 = vpop.f32.mrf.mxu2 }
  0xe4   : >> { %v925_v25 = vadd.f32 %v831_v21, %v584_v6  ;;  %v1111_v26 = vpop.f32.mrf.mxu3  ;;  %v586_v28 = vpop.f32.mrf.mxu1 }
  0xe5   : >> { %v587_v13 = vadd.f32 %v586_v28, %v4406_v20 }
  0xe6   : >> { %v1205_v33 = vadd.f32 %v1111_v26, %v925_v25  ;;  %v202_v26 = vld [vmem:[%s4232_s7 + $0xa8] sm:$0xff] }
  0xe7   : >> { %v1394_v39 = vpop.f32.mrf.mxu0  ;;  %3516 = vmatmul.msk.f32.gmra.mxu1 %vm250_vm1, %v199_v32  ;;  %v3617_v32 = vld [vmem:[%s4232_s7 + $0xba] sm:$0xff] }
  0xe8   : >> { %v4513_v42 = vadd.f32 %v1391_v14, %v1205_v33  ;;  %3582 = vmatmul.msk.f32.gmra.mxu2 %vm250_vm1, %v3612_v61  ;;  %v3682_v14 = vld [vmem:[%s4232_s7 + $0xb3] sm:$0xff] }
  0xe9   : >> { %3648 = vmatmul.msk.f32.gmra.mxu3 %vm250_vm1, %v3614_v35 }
  0xea   : >> { %3714 = vmatmul.msk.f32.gmra.mxu0 %vm250_vm1, %v3680_v40 }
  0xeb   : >> { %v834_v46 = vpop.f32.mrf.mxu2 }
  0xec   : >> { %v926_v47 = vadd.f32 %v834_v46, %v587_v13  ;;  %v1114_v49 = vpop.f32.mrf.mxu3  ;;  %v589_v53 = vpop.f32.mrf.mxu1 }
  0xed   : >> { %v590_v20 = vadd.f32 %v589_v53, %v4421_v27 }
  0xee   : >> { %v1206_v56 = vadd.f32 %v1114_v49, %v926_v47  ;;  %v203_v49 = vld [vmem:[%s4232_s7 + $0xb0] sm:$0xff] }
  0xef   : >> { %v1397_v60 = vpop.f32.mrf.mxu0  ;;  %3517 = vmatmul.msk.f32.gmra.mxu1 %vm250_vm1, %v200_v54  ;;  %v3618_v54 = vld [vmem:[%s4232_s7 + $0xc2] sm:$0xff] }
  0xf0   : >> { %v4523_v63 = vadd.f32 %v1394_v39, %v1206_v56  ;;  %3583 = vmatmul.msk.f32.gmra.mxu2 %vm250_vm1, %v3613_v12  ;;  %v3683_v39 = vld [vmem:[%s4232_s7 + $0xbb] sm:$0xff] }
  0xf1   : >> { %3649 = vmatmul.msk.f32.gmra.mxu3 %vm250_vm1, %v3615_v59 }
  0xf2   : >> { %3715 = vmatmul.msk.f32.gmra.mxu0 %vm250_vm1, %v3681_v62 }
  0xf3   : >> { %v837_v61 = vpop.f32.mrf.mxu2 }
  0xf4   : >> { %v927_v0 = vadd.f32 %v837_v61, %v590_v20  ;;  %v1117_v1 = vpop.f32.mrf.mxu3  ;;  %v592_v2 = vpop.f32.mrf.mxu1 }
  0xf5   : >> { %v593_v27 = vadd.f32 %v592_v2, %v4436_v34 }
  0xf6   : >> { %v1207_v5 = vadd.f32 %v1117_v1, %v927_v0  ;;  %v204_v1 = vld [vmem:[%s4232_s7 + $0xb8] sm:$0xff] }
  0xf7   : >> { %v1400_v11 = vpop.f32.mrf.mxu0  ;;  %3518 = vmatmul.msk.f32.gmra.mxu1 %vm250_vm1, %v201_v4  ;;  %v3619_v4 = vld [vmem:[%s4232_s7 + $0xca] sm:$0xff] }
  0xf8   : >> { %v4533_v18 = vadd.f32 %v1397_v60, %v1207_v5  ;;  %3584 = vmatmul.msk.f32.gmra.mxu2 %vm250_vm1, %v3614_v35  ;;  %v3684_v60 = vld [vmem:[%s4232_s7 + $0xc3] sm:$0xff] }
  0xf9   : >> { %3650 = vmatmul.msk.f32.gmra.mxu3 %vm250_vm1, %v3616_v7 }
  0xfa   : >> { %3716 = vmatmul.msk.f32.gmra.mxu0 %vm250_vm1, %v3682_v14 }
  0xfb   : >> { %v840_v12 = vpop.f32.mrf.mxu2 }
  0xfc   : >> { %v928_v6 = vadd.f32 %v840_v12, %v593_v27  ;;  %v1120_v21 = vpop.f32.mrf.mxu3  ;;  %v595_v25 = vpop.f32.mrf.mxu1 }
  0xfd   : >> { %v596_v34 = vadd.f32 %v595_v25, %v4451_v41 }
  0xfe   : >> { %v1208_v28 = vadd.f32 %v1120_v21, %v928_v6  ;;  %v205_v21 = vld [vmem:[%s4232_s7 + $0xc0] sm:$0xff] }
  0xff   : >> { %v1403_v33 = vpop.f32.mrf.mxu0  ;;  %3519 = vmatmul.msk.f32.gmra.mxu1 %vm250_vm1, %v202_v26  ;;  %v3620_v26 = vld [vmem:[%s4232_s7 + $0xd2] sm:$0xff] }
 0x100   : >> { %v4543_v40 = vadd.f32 %v1400_v11, %v1208_v28  ;;  %3585 = vmatmul.msk.f32.gmra.mxu2 %vm250_vm1, %v3615_v59  ;;  %v3685_v11 = vld [vmem:[%s4232_s7 + $0xcb] sm:$0xff] }
 0x101   : >> { %3651 = vmatmul.msk.f32.gmra.mxu3 %vm250_vm1, %v3617_v32 }
 0x102   : >> { %3717 = vmatmul.msk.f32.gmra.mxu0 %vm250_vm1, %v3683_v39 }
 0x103   : >> { %v843_v35 = vpop.f32.mrf.mxu2 }
 0x104   : >> { %v929_v13 = vadd.f32 %v843_v35, %v596_v34  ;;  %v1123_v46 = vpop.f32.mrf.mxu3  ;;  %v598_v47 = vpop.f32.mrf.mxu1 }
 0x105   : >> { %v599_v41 = vadd.f32 %v598_v47, %v4466_v48 }
 0x106   : >> { %v1209_v53 = vadd.f32 %v1123_v46, %v929_v13  ;;  %v206_v46 = vld [vmem:[%s4232_s7 + $0xc8] sm:$0xff] }
 0x107   : >> { %v1406_v56 = vpop.f32.mrf.mxu0  ;;  %3520 = vmatmul.msk.f32.gmra.mxu1 %vm250_vm1, %v203_v49  ;;  %v3621_v49 = vld [vmem:[%s4232_s7 + $0xda] sm:$0xff] }
 0x108   : >> { %v4553_v62 = vadd.f32 %v1403_v33, %v1209_v53  ;;  %3586 = vmatmul.msk.f32.gmra.mxu2 %vm250_vm1, %v3616_v7  ;;  %v3686_v33 = vld [vmem:[%s4232_s7 + $0xd3] sm:$0xff] }
 0x109   : >> { %3652 = vmatmul.msk.f32.gmra.mxu3 %vm250_vm1, %v3618_v54 }
 0x10a   : >> { %3718 = vmatmul.msk.f32.gmra.mxu0 %vm250_vm1, %v3684_v60 }
 0x10b   : >> { %v846_v59 = vpop.f32.mrf.mxu2 }
 0x10c   : >> { %v930_v20 = vadd.f32 %v846_v59, %v599_v41  ;;  %v1126_v61 = vpop.f32.mrf.mxu3  ;;  %v601_v0 = vpop.f32.mrf.mxu1 }
 0x10d   : >> { %v602_v48 = vadd.f32 %v601_v0, %v4481_v55 }
 0x10e   : >> { %v1210_v2 = vadd.f32 %v1126_v61, %v930_v20  ;;  %v207_v61 = vld [vmem:[%s4232_s7 + $0xd0] sm:$0xff] }
 0x10f   : >> { %v1409_v5 = vpop.f32.mrf.mxu0  ;;  %3521 = vmatmul.msk.f32.gmra.mxu1 %vm250_vm1, %v204_v1  ;;  %v3622_v1 = vld [vmem:[%s4232_s7 + $0xe2] sm:$0xff] }
 0x110   : >> { %v4563_v14 = vadd.f32 %v1406_v56, %v1210_v2  ;;  %3587 = vmatmul.msk.f32.gmra.mxu2 %vm250_vm1, %v3617_v32  ;;  %v3687_v56 = vld [vmem:[%s4232_s7 + $0xdb] sm:$0xff] }
 0x111   : >> { %3653 = vmatmul.msk.f32.gmra.mxu3 %vm250_vm1, %v3619_v4 }
 0x112   : >> { %3719 = vmatmul.msk.f32.gmra.mxu0 %vm250_vm1, %v3685_v11 }
 0x113   : >> { %v849_v7 = vpop.f32.mrf.mxu2 }
 0x114   : >> { %v931_v27 = vadd.f32 %v849_v7, %v602_v48  ;;  %v1129_v12 = vpop.f32.mrf.mxu3  ;;  %v604_v6 = vpop.f32.mrf.mxu1 }
 0x115   : >> { %v605_v55 = vadd.f32 %v604_v6, %v4372_v3 }
 0x116   : >> { %v1211_v25 = vadd.f32 %v1129_v12, %v931_v27  ;;  %v208_v12 = vld [vmem:[%s4232_s7 + $0xd8] sm:$0xff] }
 0x117   : >> { %v1412_v28 = vpop.f32.mrf.mxu0  ;;  %3522 = vmatmul.msk.f32.gmra.mxu1 %vm250_vm1, %v205_v21  ;;  %v3623_v21 = vld [vmem:[%s4232_s7 + $0xea] sm:$0xff] }
 0x118   : >> { %v4573_v39 = vadd.f32 %v1409_v5, %v1211_v25  ;;  %3588 = vmatmul.msk.f32.gmra.mxu2 %vm250_vm1, %v3618_v54  ;;  %v3688_v5 = vld [vmem:[%s4232_s7 + $0xe3] sm:$0xff] }
 0x119   : >> { %3654 = vmatmul.msk.f32.gmra.mxu3 %vm250_vm1, %v3620_v26 }
 0x11a   : >> { %3720 = vmatmul.msk.f32.gmra.mxu0 %vm250_vm1, %v3686_v33 }
 0x11b   : >> { %v852_v32 = vpop.f32.mrf.mxu2 }
 0x11c   : >> { %v932_v34 = vadd.f32 %v852_v32, %v605_v55  ;;  %v1132_v35 = vpop.f32.mrf.mxu3  ;;  %v607_v13 = vpop.f32.mrf.mxu1 }
 0x11d   : >> { %v608_v3 = vadd.f32 %v607_v13, %v4387_v10 }
 0x11e   : >> { %v1212_v47 = vadd.f32 %v1132_v35, %v932_v34  ;;  %v209_v35 = vld [vmem:[%s4232_s7 + $0xe0] sm:$0xff] }
 0x11f   : >> { %v1415_v53 = vpop.f32.mrf.mxu0  ;;  %3523 = vmatmul.msk.f32.gmra.mxu1 %vm250_vm1, %v206_v46  ;;  %v3624_v46 = vld [vmem:[%s4232_s7 + $0xf2] sm:$0xff] }
 0x120   : >> { %v4583_v60 = vadd.f32 %v1412_v28, %v1212_v47  ;;  %3589 = vmatmul.msk.f32.gmra.mxu2 %vm250_vm1, %v3619_v4  ;;  %v3689_v28 = vld [vmem:[%s4232_s7 + $0xeb] sm:$0xff] }
 0x121   : >> { %3655 = vmatmul.msk.f32.gmra.mxu3 %vm250_vm1, %v3621_v49 }
 0x122   : >> { %3721 = vmatmul.msk.f32.gmra.mxu0 %vm250_vm1, %v3687_v56 }
 0x123   : >> { %v855_v54 = vpop.f32.mrf.mxu2 }
 0x124   : >> { %v933_v41 = vadd.f32 %v855_v54, %v608_v3  ;;  %v1135_v59 = vpop.f32.mrf.mxu3  ;;  %v610_v20 = vpop.f32.mrf.mxu1 }
 0x125   : >> { %v611_v10 = vadd.f32 %v610_v20, %v4402_v17 }
 0x126   : >> { %v1213_v0 = vadd.f32 %v1135_v59, %v933_v41  ;;  %v210_v59 = vld [vmem:[%s4232_s7 + $0xe8] sm:$0xff] }
 0x127   : >> { %v1418_v2 = vpop.f32.mrf.mxu0  ;;  %3524 = vmatmul.msk.f32.gmra.mxu1 %vm250_vm1, %v207_v61  ;;  %v3625_v61 = vld [vmem:[%s4232_s7 + $0xfa] sm:$0xff] }
 0x128   : >> { %v4593_v11 = vadd.f32 %v1415_v53, %v1213_v0  ;;  %3590 = vmatmul.msk.f32.gmra.mxu2 %vm250_vm1, %v3620_v26  ;;  %v3690_v53 = vld [vmem:[%s4232_s7 + $0xf3] sm:$0xff] }
 0x129   : >> { %3656 = vmatmul.msk.f32.gmra.mxu3 %vm250_vm1, %v3622_v1 }
 0x12a   : >> { %3722 = vmatmul.msk.f32.gmra.mxu0 %vm250_vm1, %v3688_v5 }
 0x12b   : >> { %v858_v4 = vpop.f32.mrf.mxu2 }
 0x12c   : >> { %v934_v48 = vadd.f32 %v858_v4, %v611_v10  ;;  %v1138_v7 = vpop.f32.mrf.mxu3  ;;  %v613_v27 = vpop.f32.mrf.mxu1 }
 0x12d   : >> { %v614_v17 = vadd.f32 %v613_v27, %v4417_v24 }
 0x12e   : >> { %v1214_v6 = vadd.f32 %v1138_v7, %v934_v48  ;;  %v211_v7 = vld [vmem:[%s4232_s7 + $0xf0] sm:$0xff] }
 0x12f   : >> { %v1421_v25 = vpop.f32.mrf.mxu0  ;;  %3525 = vmatmul.msk.f32.gmra.mxu1 %vm250_vm1, %v208_v12  ;;  %v3626_v12 = vld [vmem:[%s4232_s7 + $0x102] sm:$0xff] }
 0x130   : >> { %v4603_v33 = vadd.f32 %v1418_v2, %v1214_v6  ;;  %3591 = vmatmul.msk.f32.gmra.mxu2 %vm250_vm1, %v3621_v49  ;;  %v3691_v2 = vld [vmem:[%s4232_s7 + $0xfb] sm:$0xff] }
 0x131   : >> { %3657 = vmatmul.msk.f32.gmra.mxu3 %vm250_vm1, %v3623_v21 }
 0x132   : >> { %3723 = vmatmul.msk.f32.gmra.mxu0 %vm250_vm1, %v3689_v28 }
 0x133   : >> { %v861_v26 = vpop.f32.mrf.mxu2 }
 0x134   : >> { %v935_v55 = vadd.f32 %v861_v26, %v614_v17  ;;  %v1141_v32 = vpop.f32.mrf.mxu3  ;;  %v616_v34 = vpop.f32.mrf.mxu1 }
 0x135   : >> { %v617_v24 = vadd.f32 %v616_v34, %v4432_v31 }
 0x136   : >> { %v1215_v13 = vadd.f32 %v1141_v32, %v935_v55  ;;  %v212_v32 = vld [vmem:[%s4232_s7 + $0xf8] sm:$0xff] }
 0x137   : >> { %v1424_v47 = vpop.f32.mrf.mxu0  ;;  %3526 = vmatmul.msk.f32.gmra.mxu1 %vm250_vm1, %v209_v35  ;;  %v3627_v35 = vld [vmem:[%s4232_s7 + $0x10a] sm:$0xff] }
 0x138   : >> { %v4613_v56 = vadd.f32 %v1421_v25, %v1215_v13  ;;  %3592 = vmatmul.msk.f32.gmra.mxu2 %vm250_vm1, %v3622_v1  ;;  %v3692_v25 = vld [vmem:[%s4232_s7 + $0x103] sm:$0xff] }
 0x139   : >> { %3658 = vmatmul.msk.f32.gmra.mxu3 %vm250_vm1, %v3624_v46 }
 0x13a   : >> { %3724 = vmatmul.msk.f32.gmra.mxu0 %vm250_vm1, %v3690_v53 }
 0x13b   : >> { %v864_v49 = vpop.f32.mrf.mxu2 }
 0x13c   : >> { %v936_v3 = vadd.f32 %v864_v49, %v617_v24  ;;  %v1144_v54 = vpop.f32.mrf.mxu3  ;;  %v619_v41 = vpop.f32.mrf.mxu1 }
 0x13d   : >> { %v620_v31 = vadd.f32 %v619_v41, %v4447_v38  ;;  %v3794_v41 = vld [vmem:[%s4232_s7 + $0x24] sm:$0xff] }
 0x13e   : >> { %v1216_v20 = vadd.f32 %v1144_v54, %v936_v3  ;;  %v3728_v54 = vld [vmem:[%s4232_s7 + $0x14] sm:$0xff] }
 0x13f   : >> { %v1427_v0 = vpop.f32.mrf.mxu0  ;;  %3527 = vmatmul.msk.f32.gmra.mxu1 %vm250_vm1, %v210_v59 }
 0x140   : >> { %v4623_v5 = vadd.f32 %v1424_v47, %v1216_v20  ;;  %3593 = vmatmul.msk.f32.gmra.mxu2 %vm250_vm1, %v3623_v21  ;;  %v3693_v47 = vld [vmem:[%s4232_s7 + $0x10b] sm:$0xff] }
 0x141   : >> { %3659 = vmatmul.msk.f32.gmra.mxu3 %vm250_vm1, %v3625_v61  ;;  %v3860_v20 = vld [vmem:[%s4232_s7 + $0x25] sm:$0xff] }
 0x142   : >> { %3725 = vmatmul.msk.f32.gmra.mxu0 %vm250_vm1, %v3691_v2  ;;  %v3926_v2 = vld [vmem:[%s4232_s7 + $0x26] sm:$0xff] }
 0x143   : >> { %v867_v1 = vpop.f32.mrf.mxu2 }
 0x144   : >> { %v937_v10 = vadd.f32 %v867_v1, %v620_v31  ;;  %v1147_v4 = vpop.f32.mrf.mxu3  ;;  %v622_v48 = vpop.f32.mrf.mxu1 }
 0x145   : >> { %v623_v38 = vadd.f32 %v622_v48, %v4462_v45  ;;  %v3729_v48 = vld [vmem:[%s4232_s7 + $0x1c] sm:$0xff] }
 0x146   : >> { %v1217_v27 = vadd.f32 %v1147_v4, %v937_v10 }
 0x147   : >> { %v1430_v6 = vpop.f32.mrf.mxu0  ;;  %3528 = vmatmul.msk.f32.gmra.mxu1 %vm250_vm1, %v211_v7  ;;  %v3795_v7 = vld [vmem:[%s4232_s7 + $0x2c] sm:$0xff] }
 0x148   : >> { %v4633_v28 = vadd.f32 %v1427_v0, %v1217_v27  ;;  %3594 = vmatmul.msk.f32.gmra.mxu2 %vm250_vm1, %v3624_v46 }
 0x149   : >> { %3660 = vmatmul.msk.f32.gmra.mxu3 %vm250_vm1, %v3626_v12  ;;  %v3861_v12 = vld [vmem:[%s4232_s7 + $0x2d] sm:$0xff] }
 0x14a   : >> { %3726 = vmatmul.msk.f32.gmra.mxu0 %vm250_vm1, %v3692_v25  ;;  %v3927_v25 = vld [vmem:[%s4232_s7 + $0x2e] sm:$0xff] }
 0x14b   : >> { %v870_v21 = vpop.f32.mrf.mxu2 }
 0x14c   : >> { %v938_v17 = vadd.f32 %v870_v21, %v623_v38  ;;  %v1150_v26 = vpop.f32.mrf.mxu3  ;;  %v625_v55 = vpop.f32.mrf.mxu1 }
 0x14d   : >> { %v626_v45 = vadd.f32 %v625_v55, %v4477_v52 }
 0x14e   : >> { %v1218_v34 = vadd.f32 %v1150_v26, %v938_v17 }
 0x14f   : >> { %v1433_v13 = vpop.f32.mrf.mxu0  ;;  %3529 = vmatmul.msk.f32.gmra.mxu1 %vm250_vm1, %v212_v32  ;;  %v3796_v32 = vld [vmem:[%s4232_s7 + $0x34] sm:$0xff] }
 0x150   : >> { %v4643_v46 = vadd.f32 %v1430_v6, %v1218_v34  ;;  %3595 = vmatmul.msk.f32.gmra.mxu2 %vm250_vm1, %v3625_v61 }
 0x151   : >> { %3661 = vmatmul.msk.f32.gmra.mxu3 %vm250_vm1, %v3627_v35  ;;  %v3862_v35 = vld [vmem:[%s4232_s7 + $0x35] sm:$0xff] }
 0x152   : >> { %3727 = vmatmul.msk.f32.gmra.mxu0 %vm250_vm1, %v3693_v47  ;;  %v3928_v47 = vld [vmem:[%s4232_s7 + $0x36] sm:$0xff] }
 0x153   : >> { %v873_v53 = vpop.f32.mrf.mxu2 }
 0x154   : >> { %v939_v24 = vadd.f32 %v873_v53, %v626_v45  ;;  %v1153_v49 = vpop.f32.mrf.mxu3  ;;  %v628_v3 = vpop.f32.mrf.mxu1 }
 0x155   : >> { %v629_v52 = vadd.f32 %v628_v3, %v4383_v8 }
 0x156   : >> { %v1219_v59 = vadd.f32 %v1153_v49, %v939_v24 }
 0x157   : >> { %v1436_v0 = vpop.f32.mrf.mxu0  ;;  %3762 = vmatmul.msk.f32.vlgmr.msra.gmra.mxu1 %vm250_vm1, %v3728_v54  ;;  %v3797_v54 = vld [vmem:[%s4232_s7 + $0x3c] sm:$0xff] }
 0x158   : >> { %v4654_v61 = vadd.f32 %v1433_v13, %v1219_v59  ;;  %3828 = vmatmul.msk.f32.vlgmr.msra.gmra.mxu2 %vm250_vm1, %v3794_v41 }
 0x159   : >> { %3894 = vmatmul.msk.f32.vlgmr.msra.gmra.mxu3 %vm250_vm1, %v3860_v20  ;;  %v3863_v20 = vld [vmem:[%s4232_s7 + $0x3d] sm:$0xff] }
 0x15a   : >> { %3960 = vmatmul.msk.f32.vlgmr.msra.gmra.mxu0 %vm250_vm1, %v3926_v2 }
 0x15b   : >> { %v876_v31 = vpop.f32.mrf.mxu2 }
 0x15c   : >> { %v940_v1 = vadd.f32 %v876_v31, %v629_v52  ;;  %v1156_v10 = vpop.f32.mrf.mxu3  ;;  %v631_v4 = vpop.f32.mrf.mxu1 }
 0x15d   : >> { %v632_v8 = vadd.f32 %v631_v4, %v4398_v15  ;;  %v3798_v4 = vld [vmem:[%s4232_s7 + $0x44] sm:$0xff] }
 0x15e   : >> { %v1220_v27 = vadd.f32 %v1156_v10, %v940_v1 }
 0x15f   : >> { %v1439_v6 = vpop.f32.mrf.mxu0  ;;  %3763 = vmatmul.msk.f32.gmra.mxu1 %vm250_vm1, %v3729_v48 }
 0x160   : >> { %v4665_v38 = vadd.f32 %v1436_v0, %v1220_v27  ;;  %3829 = vmatmul.msk.f32.gmra.mxu2 %vm250_vm1, %v3795_v7  ;;  %v3864_v27 = vld [vmem:[%s4232_s7 + $0x45] sm:$0xff] }
 0x161   : >> { %3895 = vmatmul.msk.f32.gmra.mxu3 %vm250_vm1, %v3861_v12 }
 0x162   : >> { %3961 = vmatmul.msk.f32.gmra.mxu0 %vm250_vm1, %v3927_v25 }
 0x163   : >> { %v879_v21 = vpop.f32.mrf.mxu2 }
 0x164   : >> { %v941_v17 = vadd.f32 %v879_v21, %v632_v8  ;;  %v1159_v26 = vpop.f32.mrf.mxu3  ;;  %v634_v55 = vpop.f32.mrf.mxu1 }
 0x165   : >> { %v635_v15 = vadd.f32 %v634_v55, %v4413_v22 }
 0x166   : >> { %v1221_v34 = vadd.f32 %v1159_v26, %v941_v17  ;;  %v3799_v26 = vld [vmem:[%s4232_s7 + $0x4c] sm:$0xff] }
 0x167   : >> { %v1442_v13 = vpop.f32.mrf.mxu0  ;;  %3764 = vmatmul.msk.f32.gmra.mxu1 %vm250_vm1, %v3794_v41  ;;  %v3929_v41 = vld [vmem:[%s4232_s7 + $0x3e] sm:$0xff] }
 0x168   : >> { %v4675_v45 = vadd.f32 %v1439_v6, %v1221_v34  ;;  %3830 = vmatmul.msk.f32.gmra.mxu2 %vm250_vm1, %v3796_v32  ;;  %v3865_v34 = vld [vmem:[%s4232_s7 + $0x4d] sm:$0xff] }
 0x169   : >> { %3896 = vmatmul.msk.f32.gmra.mxu3 %vm250_vm1, %v3862_v35 }
 0x16a   : >> { %3962 = vmatmul.msk.f32.gmra.mxu0 %vm250_vm1, %v3928_v47 }
 0x16b   : >> { %v882_v53 = vpop.f32.mrf.mxu2 }
 0x16c   : >> { %v942_v24 = vadd.f32 %v882_v53, %v635_v15  ;;  %v1162_v49 = vpop.f32.mrf.mxu3  ;;  %v637_v3 = vpop.f32.mrf.mxu1 }
 0x16d   : >> { %v638_v22 = vadd.f32 %v637_v3, %v4428_v29 }
 0x16e   : >> { %v1222_v59 = vadd.f32 %v1162_v49, %v942_v24  ;;  %v3800_v49 = vld [vmem:[%s4232_s7 + $0x54] sm:$0xff] }
 0x16f   : >> { %v1445_v0 = vpop.f32.mrf.mxu0  ;;  %3765 = vmatmul.msk.f32.gmra.mxu1 %vm250_vm1, %v3795_v7  ;;  %v3930_v7 = vld [vmem:[%s4232_s7 + $0x46] sm:$0xff] }
 0x170   : >> { %v4685_v2 = vadd.f32 %v1442_v13, %v1222_v59  ;;  %3831 = vmatmul.msk.f32.gmra.mxu2 %vm250_vm1, %v3797_v54  ;;  %v3866_v59 = vld [vmem:[%s4232_s7 + $0x55] sm:$0xff] }
 0x171   : >> { %3897 = vmatmul.msk.f32.gmra.mxu3 %vm250_vm1, %v3863_v20 }
 0x172   : >> { %3963 = vmatmul.msk.f32.gmra.mxu0 %vm250_vm1, %v3929_v41 }
 0x173   : >> { %v885_v52 = vpop.f32.mrf.mxu2 }
 0x174   : >> { %v943_v31 = vadd.f32 %v885_v52, %v638_v22  ;;  %v1165_v1 = vpop.f32.mrf.mxu3  ;;  %v640_v10 = vpop.f32.mrf.mxu1 }
 0x175   : >> { %v641_v29 = vadd.f32 %v640_v10, %v4443_v36 }
 0x176   : >> { %v1223_v48 = vadd.f32 %v1165_v1, %v943_v31  ;;  %v3801_v1 = vld [vmem:[%s4232_s7 + $0x5c] sm:$0xff] }
 0x177   : >> { %v1448_v12 = vpop.f32.mrf.mxu0  ;;  %3766 = vmatmul.msk.f32.gmra.mxu1 %vm250_vm1, %v3796_v32  ;;  %v3931_v32 = vld [vmem:[%s4232_s7 + $0x4e] sm:$0xff] }
 0x178   : >> { %v4695_v6 = vadd.f32 %v1445_v0, %v1223_v48  ;;  %3832 = vmatmul.msk.f32.gmra.mxu2 %vm250_vm1, %v3798_v4  ;;  %v3867_v48 = vld [vmem:[%s4232_s7 + $0x5d] sm:$0xff] }
 0x179   : >> { %3898 = vmatmul.msk.f32.gmra.mxu3 %vm250_vm1, %v3864_v27 }
 0x17a   : >> { %3964 = vmatmul.msk.f32.gmra.mxu0 %vm250_vm1, %v3930_v7 }
 0x17b   : >> { %v888_v25 = vpop.f32.mrf.mxu2 }
 0x17c   : >> { %v944_v8 = vadd.f32 %v888_v25, %v641_v29  ;;  %v1168_v21 = vpop.f32.mrf.mxu3  ;;  %v643_v17 = vpop.f32.mrf.mxu1 }
 0x17d   : >> { %v644_v36 = vadd.f32 %v643_v17, %v4458_v43 }
 0x17e   : >> { %v1224_v55 = vadd.f32 %v1168_v21, %v944_v8  ;;  %v3802_v21 = vld [vmem:[%s4232_s7 + $0x64] sm:$0xff] }
 0x17f   : >> { %v1451_v35 = vpop.f32.mrf.mxu0  ;;  %3767 = vmatmul.msk.f32.gmra.mxu1 %vm250_vm1, %v3797_v54  ;;  %v3932_v54 = vld [vmem:[%s4232_s7 + $0x56] sm:$0xff] }
 0x180   : >> { %v4705_v13 = vadd.f32 %v1448_v12, %v1224_v55  ;;  %3833 = vmatmul.msk.f32.gmra.mxu2 %vm250_vm1, %v3799_v26  ;;  %v3868_v55 = vld [vmem:[%s4232_s7 + $0x65] sm:$0xff] }
 0x181   : >> { %3899 = vmatmul.msk.f32.gmra.mxu3 %vm250_vm1, %v3865_v34 }
 0x182   : >> { %3965 = vmatmul.msk.f32.gmra.mxu0 %vm250_vm1, %v3931_v32 }
 0x183   : >> { %v891_v47 = vpop.f32.mrf.mxu2 }
 0x184   : >> { %v945_v15 = vadd.f32 %v891_v47, %v644_v36  ;;  %v1171_v53 = vpop.f32.mrf.mxu3  ;;  %v646_v24 = vpop.f32.mrf.mxu1 }
 0x185   : >> { %v647_v43 = vadd.f32 %v646_v24, %v4473_v50 }
 0x186   : >> { %v1225_v3 = vadd.f32 %v1171_v53, %v945_v15  ;;  %v3803_v53 = vld [vmem:[%s4232_s7 + $0x6c] sm:$0xff] }
 0x187   : >> { %v1454_v20 = vpop.f32.mrf.mxu0  ;;  %3768 = vmatmul.msk.f32.gmra.mxu1 %vm250_vm1, %v3798_v4  ;;  %v3933_v4 = vld [vmem:[%s4232_s7 + $0x5e] sm:$0xff] }
 0x188   : >> { %v4715_v0 = vadd.f32 %v1451_v35, %v1225_v3  ;;  %3834 = vmatmul.msk.f32.gmra.mxu2 %vm250_vm1, %v3800_v49  ;;  %v3869_v3 = vld [vmem:[%s4232_s7 + $0x6d] sm:$0xff] }
 0x189   : >> { %3900 = vmatmul.msk.f32.gmra.mxu3 %vm250_vm1, %v3866_v59 }
 0x18a   : >> { %3966 = vmatmul.msk.f32.gmra.mxu0 %vm250_vm1, %v3932_v54 }
 0x18b   : >> { %v894_v41 = vpop.f32.mrf.mxu2 }
 0x18c   : >> { %v946_v22 = vadd.f32 %v894_v41, %v647_v43  ;;  %v1174_v52 = vpop.f32.mrf.mxu3  ;;  %v649_v31 = vpop.f32.mrf.mxu1 }
 0x18d   : >> { %v650_v50 = vadd.f32 %v649_v31, %v4488_v57 }
 0x18e   : >> { %v1226_v10 = vadd.f32 %v1174_v52, %v946_v22  ;;  %v3804_v52 = vld [vmem:[%s4232_s7 + $0x74] sm:$0xff] }
 0x18f   : >> { %v1457_v27 = vpop.f32.mrf.mxu0  ;;  %3769 = vmatmul.msk.f32.gmra.mxu1 %vm250_vm1, %v3799_v26  ;;  %v3934_v26 = vld [vmem:[%s4232_s7 + $0x66] sm:$0xff] }
 0x190   : >> { %v4725_v12 = vadd.f32 %v1454_v20, %v1226_v10  ;;  %3835 = vmatmul.msk.f32.gmra.mxu2 %vm250_vm1, %v3801_v1  ;;  %v3870_v10 = vld [vmem:[%s4232_s7 + $0x75] sm:$0xff] }
 0x191   : >> { %3901 = vmatmul.msk.f32.gmra.mxu3 %vm250_vm1, %v3867_v48 }
 0x192   : >> { %3967 = vmatmul.msk.f32.gmra.mxu0 %vm250_vm1, %v3933_v4 }
 0x193   : >> { %v897_v7 = vpop.f32.mrf.mxu2 }
 0x194   : >> { %v947_v29 = vadd.f32 %v897_v7, %v650_v50  ;;  %v1177_v25 = vpop.f32.mrf.mxu3  ;;  %v652_v8 = vpop.f32.mrf.mxu1 }
 0x195   : >> { %v653_v57 = vadd.f32 %v652_v8, %v4385_v9 }
 0x196   : >> { %v1227_v17 = vadd.f32 %v1177_v25, %v947_v29  ;;  %v3805_v25 = vld [vmem:[%s4232_s7 + $0x7c] sm:$0xff] }
 0x197   : >> { %v1460_v34 = vpop.f32.mrf.mxu0  ;;  %3770 = vmatmul.msk.f32.gmra.mxu1 %vm250_vm1, %v3800_v49  ;;  %v3935_v49 = vld [vmem:[%s4232_s7 + $0x6e] sm:$0xff] }
 0x198   : >> { %v4735_v35 = vadd.f32 %v1457_v27, %v1227_v17  ;;  %3836 = vmatmul.msk.f32.gmra.mxu2 %vm250_vm1, %v3802_v21  ;;  %v3871_v17 = vld [vmem:[%s4232_s7 + $0x7d] sm:$0xff] }
 0x199   : >> { %3902 = vmatmul.msk.f32.gmra.mxu3 %vm250_vm1, %v3868_v55 }
 0x19a   : >> { %3968 = vmatmul.msk.f32.gmra.mxu0 %vm250_vm1, %v3934_v26 }
 0x19b   : >> { %v900_v32 = vpop.f32.mrf.mxu2 }
 0x19c   : >> { %v948_v36 = vadd.f32 %v900_v32, %v653_v57  ;;  %v1180_v47 = vpop.f32.mrf.mxu3  ;;  %v655_v15 = vpop.f32.mrf.mxu1 }
 0x19d   : >> { %v656_v9 = vadd.f32 %v655_v15, %v4400_v16 }
 0x19e   : >> { %v1228_v24 = vadd.f32 %v1180_v47, %v948_v36  ;;  %v3806_v47 = vld [vmem:[%s4232_s7 + $0x84] sm:$0xff] }
 0x19f   : >> { %v1463_v59 = vpop.f32.mrf.mxu0  ;;  %3771 = vmatmul.msk.f32.gmra.mxu1 %vm250_vm1, %v3801_v1  ;;  %v3936_v1 = vld [vmem:[%s4232_s7 + $0x76] sm:$0xff] }
 0x1a0   : >> { %v4745_v20 = vadd.f32 %v1460_v34, %v1228_v24  ;;  %3837 = vmatmul.msk.f32.gmra.mxu2 %vm250_vm1, %v3803_v53  ;;  %v3872_v24 = vld [vmem:[%s4232_s7 + $0x85] sm:$0xff] }
 0x1a1   : >> { %3903 = vmatmul.msk.f32.gmra.mxu3 %vm250_vm1, %v3869_v3 }
 0x1a2   : >> { %3969 = vmatmul.msk.f32.gmra.mxu0 %vm250_vm1, %v3935_v49 }
 0x1a3   : >> { %v903_v54 = vpop.f32.mrf.mxu2 }
 0x1a4   : >> { %v949_v43 = vadd.f32 %v903_v54, %v656_v9  ;;  %v1183_v41 = vpop.f32.mrf.mxu3  ;;  %v658_v22 = vpop.f32.mrf.mxu1 }
 0x1a5   : >> { %v659_v16 = vadd.f32 %v658_v22, %v4415_v23 }
 0x1a6   : >> { %v1229_v31 = vadd.f32 %v1183_v41, %v949_v43  ;;  %v3807_v41 = vld [vmem:[%s4232_s7 + $0x8c] sm:$0xff] }
 0x1a7   : >> { %v1466_v48 = vpop.f32.mrf.mxu0  ;;  %3772 = vmatmul.msk.f32.gmra.mxu1 %vm250_vm1, %v3802_v21  ;;  %v3937_v21 = vld [vmem:[%s4232_s7 + $0x7e] sm:$0xff] }
 0x1a8   : >> { %v4755_v27 = vadd.f32 %v1463_v59, %v1229_v31  ;;  %3838 = vmatmul.msk.f32.gmra.mxu2 %vm250_vm1, %v3804_v52  ;;  %v3873_v31 = vld [vmem:[%s4232_s7 + $0x8d] sm:$0xff] }
 0x1a9   : >> { %3904 = vmatmul.msk.f32.gmra.mxu3 %vm250_vm1, %v3870_v10 }
 0x1aa   : >> { %3970 = vmatmul.msk.f32.gmra.mxu0 %vm250_vm1, %v3936_v1 }
 0x1ab   : >> { %v906_v4 = vpop.f32.mrf.mxu2 }
 0x1ac   : >> { %v950_v50 = vadd.f32 %v906_v4, %v659_v16  ;;  %v1186_v7 = vpop.f32.mrf.mxu3  ;;  %v661_v29 = vpop.f32.mrf.mxu1 }
 0x1ad   : >> { %v662_v23 = vadd.f32 %v661_v29, %v4430_v30 }
 0x1ae   : >> { %v1230_v8 = vadd.f32 %v1186_v7, %v950_v50  ;;  %v3808_v7 = vld [vmem:[%s4232_s7 + $0x94] sm:$0xff] }
 0x1af   : >> { %v1469_v55 = vpop.f32.mrf.mxu0  ;;  %3773 = vmatmul.msk.f32.gmra.mxu1 %vm250_vm1, %v3803_v53  ;;  %v3938_v53 = vld [vmem:[%s4232_s7 + $0x86] sm:$0xff] }
 0x1b0   : >> { %v4765_v34 = vadd.f32 %v1466_v48, %v1230_v8  ;;  %3839 = vmatmul.msk.f32.gmra.mxu2 %vm250_vm1, %v3805_v25  ;;  %v3874_v8 = vld [vmem:[%s4232_s7 + $0x95] sm:$0xff] }
 0x1b1   : >> { %3905 = vmatmul.msk.f32.gmra.mxu3 %vm250_vm1, %v3871_v17 }
 0x1b2   : >> { %3971 = vmatmul.msk.f32.gmra.mxu0 %vm250_vm1, %v3937_v21 }
 0x1b3   : >> { %v909_v26 = vpop.f32.mrf.mxu2 }
 0x1b4   : >> { %v951_v57 = vadd.f32 %v909_v26, %v662_v23  ;;  %v1189_v32 = vpop.f32.mrf.mxu3  ;;  %v664_v36 = vpop.f32.mrf.mxu1 }
 0x1b5   : >> { %v665_v30 = vadd.f32 %v664_v36, %v4445_v37 }
 0x1b6   : >> { %v1231_v15 = vadd.f32 %v1189_v32, %v951_v57  ;;  %v3809_v32 = vld [vmem:[%s4232_s7 + $0x9c] sm:$0xff] }
 0x1b7   : >> { %v1472_v3 = vpop.f32.mrf.mxu0  ;;  %3774 = vmatmul.msk.f32.gmra.mxu1 %vm250_vm1, %v3804_v52  ;;  %v3939_v52 = vld [vmem:[%s4232_s7 + $0x8e] sm:$0xff] }
 0x1b8   : >> { %v4775_v59 = vadd.f32 %v1469_v55, %v1231_v15  ;;  %3840 = vmatmul.msk.f32.gmra.mxu2 %vm250_vm1, %v3806_v47  ;;  %v3875_v15 = vld [vmem:[%s4232_s7 + $0x9d] sm:$0xff] }
 0x1b9   : >> { %3906 = vmatmul.msk.f32.gmra.mxu3 %vm250_vm1, %v3872_v24 }
 0x1ba   : >> { %3972 = vmatmul.msk.f32.gmra.mxu0 %vm250_vm1, %v3938_v53 }
 0x1bb   : >> { %v912_v49 = vpop.f32.mrf.mxu2 }
 0x1bc   : >> { %v952_v9 = vadd.f32 %v912_v49, %v665_v30  ;;  %v1192_v54 = vpop.f32.mrf.mxu3  ;;  %v667_v43 = vpop.f32.mrf.mxu1 }
 0x1bd   : >> { %v668_v37 = vadd.f32 %v667_v43, %v4460_v44 }
 0x1be   : >> { %v1232_v22 = vadd.f32 %v1192_v54, %v952_v9  ;;  %v3810_v54 = vld [vmem:[%s4232_s7 + $0xa4] sm:$0xff] }
 0x1bf   : >> { %v1475_v10 = vpop.f32.mrf.mxu0  ;;  %3775 = vmatmul.msk.f32.gmra.mxu1 %vm250_vm1, %v3805_v25  ;;  %v3940_v25 = vld [vmem:[%s4232_s7 + $0x96] sm:$0xff] }
 0x1c0   : >> { %v4785_v48 = vadd.f32 %v1472_v3, %v1232_v22  ;;  %3841 = vmatmul.msk.f32.gmra.mxu2 %vm250_vm1, %v3807_v41  ;;  %v3876_v22 = vld [vmem:[%s4232_s7 + $0xa5] sm:$0xff] }
 0x1c1   : >> { %3907 = vmatmul.msk.f32.gmra.mxu3 %vm250_vm1, %v3873_v31 }
 0x1c2   : >> { %3973 = vmatmul.msk.f32.gmra.mxu0 %vm250_vm1, %v3939_v52 }
 0x1c3   : >> { %v915_v1 = vpop.f32.mrf.mxu2 }
 0x1c4   : >> { %v953_v16 = vadd.f32 %v915_v1, %v668_v37  ;;  %v1195_v4 = vpop.f32.mrf.mxu3  ;;  %v670_v50 = vpop.f32.mrf.mxu1 }
 0x1c5   : >> { %v671_v44 = vadd.f32 %v670_v50, %v4475_v51 }
 0x1c6   : >> { %v1233_v29 = vadd.f32 %v1195_v4, %v953_v16  ;;  %v3811_v4 = vld [vmem:[%s4232_s7 + $0xac] sm:$0xff] }
 0x1c7   : >> { %v1478_v17 = vpop.f32.mrf.mxu0  ;;  %3776 = vmatmul.msk.f32.gmra.mxu1 %vm250_vm1, %v3806_v47  ;;  %v3941_v47 = vld [vmem:[%s4232_s7 + $0x9e] sm:$0xff] }
 0x1c8   : >> { %v4795_v55 = vadd.f32 %v1475_v10, %v1233_v29  ;;  %3842 = vmatmul.msk.f32.gmra.mxu2 %vm250_vm1, %v3808_v7  ;;  %v3942_v10 = vld [vmem:[%s4232_s7 + $0xa6] sm:$0xff]  ;;  %v4826_v29 = vld [vmem:[%s5460_s2] ss:$0 sm:$0xff] }
 0x1c9   : >> { %3908 = vmatmul.msk.f32.gmra.mxu3 %vm250_vm1, %v3874_v8 }
 0x1ca   : >> { %3974 = vmatmul.msk.f32.gmra.mxu0 %vm250_vm1, %v3940_v25 }
 0x1cb   : >> { %v918_v21 = vpop.f32.mrf.mxu2 }
 0x1cc   : >> { %v954_v23 = vadd.f32 %v918_v21, %v671_v44  ;;  %v1198_v26 = vpop.f32.mrf.mxu3  ;;  %v673_v57 = vpop.f32.mrf.mxu1 }
 0x1cd   : >> { %v674_v51 = vadd.f32 %v673_v57, %v4490_v58 }
 0x1ce   : >> { %v1234_v36 = vadd.f32 %v1198_v26, %v954_v23 }
 0x1cf   : >> { %v1481_v24 = vpop.f32.mrf.mxu0  ;;  %3777 = vmatmul.msk.f32.gmra.mxu1 %vm250_vm1, %v3807_v41 }
 0x1d0   : >> { %v4805_v3 = vadd.f32 %v1478_v17, %v1234_v36  ;;  %3843 = vmatmul.msk.f32.gmra.mxu2 %vm250_vm1, %v3809_v32  ;;  %v3943_v17 = vld [vmem:[%s4232_s7 + $0xae] sm:$0xff] }
 0x1d1   : >> { %3909 = vmatmul.msk.f32.gmra.mxu3 %vm250_vm1, %v3875_v15  ;;  %v3812_v15 = vld [vmem:[%s4232_s7 + $0xb4] sm:$0xff] }
 0x1d2   : >> { %3975 = vmatmul.msk.f32.gmra.mxu0 %vm250_vm1, %v3941_v47  ;;  %v3878_v47 = vld [vmem:[%s4232_s7 + $0xb5] sm:$0xff] }
 0x1d3   : >> { %v921_v53 = vpop.f32.mrf.mxu2 }
 0x1d4   : >> { %v955_v30 = vadd.f32 %v921_v53, %v674_v51  ;;  %v1201_v49 = vpop.f32.mrf.mxu3  ;;  %v1668_v9 = vpop.f32.mrf.mxu1  ;;  %v3944_v53 = vld [vmem:[%s4232_s7 + $0xb6] sm:$0xff] }
 0x1d5   : >> { %v1764_v58 = vadd.f32 %v1668_v9, %v4503_v19 }
 0x1d6   : >> { %v1235_v43 = vadd.f32 %v1201_v49, %v955_v30 }
 0x1d7   : >> { %v2508_v31 = vpop.f32.mrf.mxu0  ;;  %3778 = vmatmul.msk.f32.gmra.mxu1 %vm250_vm1, %v3808_v7  ;;  %v3877_v7 = vld [vmem:[%s4232_s7 + $0xad] sm:$0xff] }
 0x1d8   : >> { %v4815_v41 = vadd.f32 %v1481_v24, %v1235_v43  ;;  %3844 = vmatmul.msk.f32.gmra.mxu2 %vm250_vm1, %v3810_v54 }
 0x1d9   : >> { %3910 = vmatmul.msk.f32.gmra.mxu3 %vm250_vm1, %v3876_v22 }
 0x1da   : >> { %3976 = vmatmul.msk.f32.gmra.mxu0 %vm250_vm1, %v3942_v10 }
 0x1db   : >> { %v1948_v52 = vpop.f32.mrf.mxu2 }
 0x1dc   : >> { %v2044_v37 = vadd.f32 %v1948_v52, %v1764_v58  ;;  %v2228_v1 = vpop.f32.mrf.mxu3  ;;  %v1671_v16 = vpop.f32.mrf.mxu1  ;;  %v4852_v58 = vld [vmem:[%s4232_s7 + $0xbc] sm:$0xff] }
 0x1dd   : >> { %v1765_v19 = vadd.f32 %v1671_v16, %v4513_v42 }
 0x1de   : >> { %v2324_v50 = vadd.f32 %v2228_v1, %v2044_v37  ;;  %v3879_v1 = vld [vmem:[%s4232_s7 + $0xbd] sm:$0xff] }
 0x1df   : >> { %v2511_v8 = vpop.f32.mrf.mxu0  ;;  %3779 = vmatmul.msk.f32.gmra.mxu1 %vm250_vm1, %v3809_v32 }
 0x1e0   : >> { %v2604_v25 = vadd.f32 %v2508_v31, %v2324_v50  ;;  %3845 = vmatmul.msk.f32.gmra.mxu2 %vm250_vm1, %v3811_v4  ;;  %v3945_v50 = vld [vmem:[%s4232_s7 + $0xbe] sm:$0xff] }
 0x1e1   : >> { %3911 = vmatmul.msk.f32.gmra.mxu3 %vm250_vm1, %v3877_v7 }
 0x1e2   : >> { %3977 = vmatmul.msk.f32.gmra.mxu0 %vm250_vm1, %v3943_v17  ;;  %v4836_v44 = vadd.f32 %v4826_v29, %v2604_v25 }
 0x1e3   : >> { %v1951_v21 = vpop.f32.mrf.mxu2 }
 0x1e4   : >> { %v2672_v23 = vsub.f32 0.0, %v4836_v44  ;;  %v2045_v26 = vadd.f32 %v1951_v21, %v1765_v19  ;;  %v2231_v57 = vpop.f32.mrf.mxu3  ;;  %v1674_v36 = vpop.f32.mrf.mxu1 }
 0x1e5   : >> { %v1766_v42 = vadd.f32 %v1674_v36, %v4523_v63 }
 0x1e6   : >> { %v2704_v32 = vmul.f32 1.442695, %v2672_v23  ;;  %v2325_v24 = vadd.f32 %v2231_v57, %v2045_v26  ;;  %v4867_v26 = vld [vmem:[%s4232_s7 + $0xc4] sm:$0xff] }
 0x1e7   : >> { %v2514_v51 = vpop.f32.mrf.mxu0  ;;  %3780 = vmatmul.msk.f32.gmra.mxu1 %vm250_vm1, %v3810_v54 }
 0x1e8   : >> { %4016 = vpow2.f32 %v2704_v32  ;;  %v2605_v30 = vadd.f32 %v2511_v8, %v2325_v24  ;;  %3846 = vmatmul.msk.f32.gmra.mxu2 %vm250_vm1, %v3812_v15  ;;  %v3880_v24 = vld [vmem:[%s4232_s7 + $0xc5] sm:$0xff] }
 0x1e9   : >> { %3912 = vmatmul.msk.f32.gmra.mxu3 %vm250_vm1, %v3878_v47 }
 0x1ea   : >> { %3978 = vmatmul.msk.f32.gmra.mxu0 %vm250_vm1, %v3944_v53  ;;  %v4848_v49 = vadd.f32 %v4826_v29, %v2605_v30 }
 0x1eb   : >> { %v1954_v9 = vpop.f32.mrf.mxu2 }
 0x1ec   : >> { %v2673_v43 = vsub.f32 0.0, %v4848_v49  ;;  %v2046_v22 = vadd.f32 %v1954_v9, %v1766_v42  ;;  %v2234_v31 = vpop.f32.mrf.mxu3  ;;  %v1677_v10 = vpop.f32.mrf.mxu1 }
 0x1ed   : >> { %v1767_v8 = vadd.f32 %v1677_v10, %v4533_v18 }
 0x1ee   : >> { %v4017_v54 = vpop.eup %4016  ;;  %v2706_v52 = vmul.f32 1.442695, %v2673_v43  ;;  %v2326_v37 = vadd.f32 %v2234_v31, %v2046_v22 }
 0x1ef   : >> { %v2517_v16 = vpop.f32.mrf.mxu0  ;;  %v2768_v7 = vadd.f32 1.0, %v4017_v54  ;;  %3781 = vmatmul.msk.f32.gmra.mxu1 %vm250_vm1, %v3811_v4 }
 0x1f0   : >> { %4018 = vpow2.f32 %v2706_v52  ;;  %v2606_v63 = vadd.f32 %v2514_v51, %v2326_v37  ;;  %3847 = vmatmul.msk.f32.gmra.mxu2 %vm250_vm1, %v4852_v58  ;;  %v3946_v51 = vld [vmem:[%s4232_s7 + $0xc6] sm:$0xff] }
 0x1f1   : >> { %4020 = vrcp.f32 %v2768_v7  ;;  %3913 = vmatmul.msk.f32.gmra.mxu3 %vm250_vm1, %v3879_v1  ;;  %v2809_v31 = vand.u32 2147483647, %v2768_v7  ;;  %v2811_v10 = vand.u32 2147483648, %v2768_v7  ;;  %vm2805_vm3 = vweird.f32 %v2768_v7 }
 0x1f2   : >> { %3979 = vmatmul.msk.f32.gmra.mxu0 %vm250_vm1, %v3945_v50  ;;  %v4863_v17 = vadd.f32 %v4826_v29, %v2606_v63  ;;  %v4885_v50 = vld [vmem:[%s4232_s7 + $0xcc] sm:$0xff] }
 0x1f3   : >> { %v1957_v25 = vpop.f32.mrf.mxu2  ;;  %vm2810_vm5 = vcmp.eq.f32.partialorder %v2809_v31, 8.507059e+37 }
 0x1f4   : >> { %v2674_v19 = vsub.f32 0.0, %v4863_v17  ;;  %v2047_v21 = vadd.f32 %v1957_v25, %v1767_v8  ;;  %v2237_v4 = vpop.f32.mrf.mxu3  ;;  %v1680_v23 = vpop.f32.mrf.mxu1 }
 0x1f5   : >> { %v1768_v43 = vadd.f32 %v1680_v23, %v4543_v40 }
 0x1f6   : >> { %v4019_v57 = vpop.eup %4018  ;;  %v2708_v36 = vmul.f32 1.442695, %v2674_v19  ;;  %v2327_v32 = vadd.f32 %v2237_v4, %v2047_v21  ;;  %v3881_v19 = vld [vmem:[%s4232_s7 + $0xcd] sm:$0xff] }
 0x1f7   : >> { %v2520_v47 = vpop.f32.mrf.mxu0  ;;  %v4021_v53 = vpop.eup %4020  ;;  %v4871_v30 = vadd.f32 1.0, %v4019_v57  ;;  %3782 = vmatmul.msk.f32.gmra.mxu1 %vm250_vm1, %v3812_v15  ;;  %v3947_v4 = vld [vmem:[%s4232_s7 + $0xce] sm:$0xff]  ;;  %v2812_v57 = vor.u32 1.1754944e-38, %v2811_v10 }
 0x1f8   : >> { %v2801_v18 = vmul.f32 %v4021_v53, %v2768_v7  ;;  %4022 = vpow2.f32 %v2708_v36  ;;  %v2607_v42 = vadd.f32 %v2517_v16, %v2327_v32  ;;  %3848 = vmatmul.msk.f32.gmra.mxu2 %vm250_vm1, %v4867_v26  ;;  %vm2806_vm2 = vweird.f32 %v4021_v53 }
 0x1f9   : >> { %4024 = vrcp.f32 %v4871_v30  ;;  %3914 = vmatmul.msk.f32.gmra.mxu3 %vm250_vm1, %v3880_v24  ;;  %vm2807_vm4 = vmor %vm2805_vm3, %vm2806_vm2  ;;  %vm2820_vm7 = vweird.f32 %v4871_v30 }
 0x1fa   : >> { %3980 = vmatmul.msk.f32.gmra.mxu0 %vm250_vm1, %v3946_v51  ;;  %v2802_v9 = vsub.f32 1.0, %v2801_v18  ;;  %v4881_v22 = vadd.f32 %v4826_v29, %v2607_v42  ;;  %v2824_v42 = vand.u32 2147483647, %v4871_v30 }
 0x1fb   : >> { %v1960_v15 = vpop.f32.mrf.mxu2 }
 0x1fc   : >> { %v2803_v54 = vmul.f32 %v4021_v53, %v2802_v9  ;;  %v2675_v52 = vsub.f32 0.0, %v4881_v22  ;;  %v2048_v37 = vadd.f32 %v1960_v15, %v1768_v43  ;;  %v2240_v1 = vpop.f32.mrf.mxu3  ;;  %v1683_v16 = vpop.f32.mrf.mxu1  ;;  %v2826_v9 = vand.u32 2147483648, %v4871_v30 }
 0x1fd   : >> { %v1769_v18 = vadd.f32 %v1683_v16, %v4553_v62  ;;  %vm2825_vm9 = vcmp.eq.f32.partialorder %v2824_v42, 8.507059e+37 }
 0x1fe   : >> { %v4023_v63 = vpop.eup %4022  ;;  %v2804_v8 = vadd.f32 %v4021_v53, %v2803_v54  ;;  %v2710_v40 = vmul.f32 1.442695, %v2675_v52  ;;  %v2328_v25 = vadd.f32 %v2240_v1, %v2048_v37  ;;  %v4914_v52 = vld [vmem:[%s4232_s7 + $0xd4] sm:$0xff] }
 0x1ff   : >> { %v2523_v21 = vpop.f32.mrf.mxu0  ;;  %v4025_v23 = vpop.eup %4024  ;;  %v4890_v36 = vadd.f32 1.0, %v4023_v63  ;;  %3783 = vmatmul.msk.f32.gmra.mxu1 %vm250_vm1, %v4852_v58  ;;  %v3882_v1 = vld [vmem:[%s4232_s7 + $0xd5] sm:$0xff] }
 0x200   : >> { %v2808_v32 = vsel %vm2807_vm4, %v4021_v53, %v2804_v8  ;;  %v2816_v24 = vmul.f32 %v4025_v23, %v4871_v30  ;;  %4026 = vpow2.f32 %v2710_v40  ;;  %3849 = vmatmul.msk.f32.gmra.mxu2 %vm250_vm1, %v4885_v50  ;;  %v2608_v58 = vadd.f32 %v2520_v47, %v2328_v25  ;;  %v3948_v63 = vld [vmem:[%s4232_s7 + $0xd6] sm:$0xff] }
 0x201   : >> { %v2813_v7 = vsel %vm2810_vm5, %v2812_v57, %v2808_v32  ;;  %4028 = vrcp.f32 %v4890_v36  ;;  %3915 = vmatmul.msk.f32.gmra.mxu3 %vm250_vm1, %v3881_v19  ;;  %vm2821_vm6 = vweird.f32 %v4025_v23  ;;  %v2827_v40 = vor.u32 1.1754944e-38, %v2826_v9 }
 0x202   : >> { %3981 = vmatmul.msk.f32.gmra.mxu0 %vm250_vm1, %v3947_v4  ;;  %v3280_v51 = vmul.f32 %v2813_v7, %v4836_v44  ;;  %v2817_v53 = vsub.f32 1.0, %v2816_v24  ;;  %v4911_v10 = vadd.f32 %v4826_v29, %v2608_v58  ;;  %vm2822_vm8 = vmor %vm2820_vm7, %vm2821_vm6  ;;  %v2839_v58 = vand.u32 2147483647, %v4890_v36 }
 0x203   : >> { %v1963_v43 = vpop.f32.mrf.mxu2  ;;  %vm2835_vm11 = vweird.f32 %v4890_v36 }
 0x204   : >> { %3313 = vst.msk [vmem:[%s4899_s20] sm:$0xff] %vm250_vm1, %v3280_v51  ;;  %v2818_v31 = vmul.f32 %v4025_v23, %v2817_v53  ;;  %v2049_v15 = vadd.f32 %v1963_v43, %v1769_v18  ;;  %v2243_v44 = vpop.f32.mrf.mxu3  ;;  %v1686_v54 = vpop.f32.mrf.mxu1  ;;  %v2676_v37 = vsub.f32 0.0, %v4911_v10  ;;  %vm2840_vm13 = vcmp.eq.f32.partialorder %v2839_v58, 8.507059e+37 }
 0x205   : >> { %v1770_v7 = vadd.f32 %v1686_v54, %v4563_v14  ;;  %v3949_v54 = vld [vmem:[%s4232_s7 + $0xde] sm:$0xff] }
 0x206   : >> { %v4027_v62 = vpop.eup %4026  ;;  %v2819_v47 = vadd.f32 %v4025_v23, %v2818_v31  ;;  %v2329_v19 = vadd.f32 %v2243_v44, %v2049_v15  ;;  %v2712_v32 = vmul.f32 1.442695, %v2676_v37  ;;  %v4940_v31 = vld [vmem:[%s4232_s7 + $0xdc] sm:$0xff] }
 0x207   : >> { %v2526_v16 = vpop.f32.mrf.mxu0  ;;  %v4029_v8 = vpop.eup %4028  ;;  %v4920_v25 = vadd.f32 1.0, %v4027_v62  ;;  %3784 = vmatmul.msk.f32.gmra.mxu1 %vm250_vm1, %v4867_v26  ;;  %v2841_v26 = vand.u32 2147483648, %v4890_v36  ;;  %v3883_v15 = vld [vmem:[%s4232_s7 + $0xdd] sm:$0xff] }
 0x208   : >> { %v2823_v4 = vsel %vm2822_vm8, %v4025_v23, %v2819_v47  ;;  %v2831_v57 = vmul.f32 %v4029_v8, %v4890_v36  ;;  %3850 = vmatmul.msk.f32.gmra.mxu2 %vm250_vm1, %v4914_v52  ;;  %v2609_v51 = vadd.f32 %v2523_v21, %v2329_v19  ;;  %vm2836_vm10 = vweird.f32 %v4029_v8 }
 0x209   : >> { %v2828_v30 = vsel %vm2825_vm9, %v2827_v40, %v2823_v4  ;;  %4030 = vrcp.f32 %v4920_v25  ;;  %3916 = vmatmul.msk.f32.gmra.mxu3 %vm250_vm1, %v3882_v1  ;;  %vm2837_vm12 = vmor %vm2835_vm11, %vm2836_vm10  ;;  %v2842_v47 = vor.u32 1.1754944e-38, %v2841_v26  ;;  %vm2850_vm15 = vweird.f32 %v4920_v25 }
 0x20a   : >> { %3982 = vmatmul.msk.f32.gmra.mxu0 %vm250_vm1, %v3948_v63  ;;  %v3281_v23 = vmul.f32 %v2828_v30, %v4848_v49  ;;  %v2832_v24 = vsub.f32 1.0, %v2831_v57  ;;  %4032 = vpow2.f32 %v2712_v32  ;;  %v4937_v49 = vadd.f32 %v4826_v29, %v2609_v51 }
 0x20b   : >> { %v1966_v53 = vpop.f32.mrf.mxu2  ;;  %v2854_v30 = vand.u32 2147483647, %v4920_v25 }
 0x20c   : >> { %3314 = vst.msk [vmem:[%s4899_s20 + $0x8] sm:$0xff] %vm250_vm1, %v3281_v23  ;;  %v2833_v18 = vmul.f32 %v4029_v8, %v2832_v24  ;;  %v2050_v42 = vadd.f32 %v1966_v53, %v1770_v7  ;;  %v2246_v9 = vpop.f32.mrf.mxu3  ;;  %v1689_v43 = vpop.f32.mrf.mxu1  ;;  %v2677_v37 = vsub.f32 0.0, %v4937_v49  ;;  %v2856_v23 = vand.u32 2147483648, %v4920_v25  ;;  %v4967_v53 = vld [vmem:[%s4232_s7 + $0xe4] sm:$0xff] }
 0x20d   : >> { %vm2855_vm2 = vcmp.eq.f32.partialorder %v2854_v30, 8.507059e+37 }
 0x20e   : >> { %v2834_v14 = vadd.f32 %v4029_v8, %v2833_v18  ;;  %v2330_v21 = vadd.f32 %v2246_v9, %v2050_v42  ;;  %v2714_v57 = vmul.f32 1.442695, %v2677_v37  ;;  %v3884_v9 = vld [vmem:[%s4232_s7 + $0xe5] sm:$0xff] }
 0x20f   : >> { %v2529_v44 = vpop.f32.mrf.mxu0  ;;  %v4031_v62 = vpop.eup %4030  ;;  %3785 = vmatmul.msk.f32.gmra.mxu1 %vm250_vm1, %v4885_v50 }
 0x210   : >> { %v4033_v1 = vpop.eup %4032  ;;  %v2838_v63 = vsel %vm2837_vm12, %v4029_v8, %v2834_v14  ;;  %v2846_v40 = vmul.f32 %v4031_v62, %v4920_v25  ;;  %v2610_v19 = vadd.f32 %v2526_v16, %v2330_v21  ;;  %3851 = vmatmul.msk.f32.gmra.mxu2 %vm250_vm1, %v4940_v31  ;;  %v1771_v16 = vadd.f32 %v1689_v43, %v4573_v39  ;;  %v3950_v14 = vld [vmem:[%s4232_s7 + $0xe6] sm:$0xff] }
 0x211   : >> { %v2843_v36 = vsel %vm2840_vm13, %v2842_v47, %v2838_v63  ;;  %v4951_v4 = vadd.f32 1.0, %v4033_v1  ;;  %3917 = vmatmul.msk.f32.gmra.mxu3 %vm250_vm1, %v3883_v15  ;;  %vm2851_vm14 = vweird.f32 %v4031_v62  ;;  %v2857_v21 = vor.u32 1.1754944e-38, %v2856_v23 }
 0x212   : >> { %3983 = vmatmul.msk.f32.gmra.mxu0 %vm250_vm1, %v3949_v54  ;;  %v3282_v8 = vmul.f32 %v2843_v36, %v4863_v17  ;;  %v2847_v32 = vsub.f32 1.0, %v2846_v40  ;;  %v4958_v50 = vadd.f32 %v4826_v29, %v2610_v19  ;;  %vm2852_vm0 = vmor %vm2850_vm15, %vm2851_vm14 }
 0x213   : >> { %4034 = vrcp.f32 %v4951_v4  ;;  %v1969_v24 = vpop.f32.mrf.mxu2  ;;  %vm2865_vm4 = vweird.f32 %v4951_v4 }
 0x214   : >> { %3315 = vst.msk [vmem:[%s4899_s20 + $0x10] sm:$0xff] %vm250_vm1, %v3282_v8  ;;  %v2848_v17 = vmul.f32 %v4031_v62, %v2847_v32  ;;  %4036 = vpow2.f32 %v2714_v57  ;;  %v2678_v7 = vsub.f32 0.0, %v4958_v50  ;;  %v2051_v39 = vadd.f32 %v1969_v24, %v1771_v16  ;;  %v2249_v26 = vpop.f32.mrf.mxu3  ;;  %v1692_v51 = vpop.f32.mrf.mxu1  ;;  %v4994_v16 = vld [vmem:[%s4232_s7 + $0xec] sm:$0xff] }
 0x215   : >> { %v2871_v32 = vand.u32 2147483648, %v4951_v4 }
 0x216   : >> { %v2849_v18 = vadd.f32 %v4031_v62, %v2848_v17  ;;  %v2716_v58 = vmul.f32 1.442695, %v2678_v7  ;;  %v2331_v42 = vadd.f32 %v2249_v26, %v2051_v39  ;;  %v3885_v7 = vld [vmem:[%s4232_s7 + $0xed] sm:$0xff] }
 0x217   : >> { %v2532_v43 = vpop.f32.mrf.mxu0  ;;  %3786 = vmatmul.msk.f32.gmra.mxu1 %vm250_vm1, %v4914_v52  ;;  %v3951_v26 = vld [vmem:[%s4232_s7 + $0xee] sm:$0xff] }
 0x218   : >> { %v2853_v15 = vsel %vm2852_vm0, %v4031_v62, %v2849_v18  ;;  %4038 = vpow2.f32 %v2716_v58  ;;  %v2611_v54 = vadd.f32 %v2529_v44, %v2331_v42  ;;  %3852 = vmatmul.msk.f32.gmra.mxu2 %vm250_vm1, %v4967_v53  ;;  %v1772_v44 = vadd.f32 %v1692_v51, %v4583_v60 }
 0x219   : >> { %v4035_v25 = vpop.eup %4034  ;;  %v2858_v47 = vsel %vm2855_vm2, %v2857_v21, %v2853_v15  ;;  %3918 = vmatmul.msk.f32.gmra.mxu3 %vm250_vm1, %v3884_v9  ;;  %v2872_v42 = vor.u32 1.1754944e-38, %v2871_v32 }
 0x21a   : >> { %3984 = vmatmul.msk.f32.gmra.mxu0 %vm250_vm1, %v3950_v14  ;;  %v4037_v37 = vpop.eup %4036  ;;  %v3283_v62 = vmul.f32 %v2858_v47, %v4881_v22  ;;  %v2861_v1 = vmul.f32 %v4035_v25, %v4951_v4  ;;  %v4983_v63 = vadd.f32 %v4826_v29, %v2611_v54  ;;  %v2869_v22 = vand.u32 2147483647, %v4951_v4 }
 0x21b   : >> { %v4985_v52 = vadd.f32 1.0, %v4037_v37  ;;  %v1972_v40 = vpop.f32.mrf.mxu2  ;;  %vm2866_vm3 = vweird.f32 %v4035_v25 }
 0x21c   : >> { %3316 = vst.msk [vmem:[%s4899_s20 + $0x18] sm:$0xff] %vm250_vm1, %v3283_v62  ;;  %v2862_v19 = vsub.f32 1.0, %v2861_v1  ;;  %v2679_v36 = vsub.f32 0.0, %v4983_v63  ;;  %v2052_v57 = vadd.f32 %v1972_v40, %v1772_v44  ;;  %v2252_v8 = vpop.f32.mrf.mxu3  ;;  %v1695_v60 = vpop.f32.mrf.mxu1  ;;  %vm2867_vm5 = vmor %vm2865_vm4, %vm2866_vm3  ;;  %vm2870_vm6 = vcmp.eq.f32.partialorder %v2869_v22, 8.507059e+37  ;;  %v5017_v44 = vld [vmem:[%s4232_s7 + $0xf4] sm:$0xff] }
 0x21d   : >> { %4040 = vrcp.f32 %v4985_v52  ;;  %v1773_v14 = vadd.f32 %v1695_v60, %v4593_v11  ;;  %v2886_v22 = vand.u32 2147483648, %v4985_v52  ;;  %vm2880_vm8 = vweird.f32 %v4985_v52 }
 0x21e   : >> { %v4039_v30 = vpop.eup %4038  ;;  %v2863_v23 = vmul.f32 %v4035_v25, %v2862_v19  ;;  %v2718_v24 = vmul.f32 1.442695, %v2679_v36  ;;  %v2332_v17 = vadd.f32 %v2252_v8, %v2052_v57  ;;  %v3886_v36 = vld [vmem:[%s4232_s7 + $0xf5] sm:$0xff] }
 0x21f   : >> { %v2535_v39 = vpop.f32.mrf.mxu0  ;;  %v4998_v51 = vadd.f32 1.0, %v4039_v30  ;;  %3787 = vmatmul.msk.f32.gmra.mxu1 %vm250_vm1, %v4940_v31 }
 0x220   : >> { %v2864_v18 = vadd.f32 %v4035_v25, %v2863_v23  ;;  %4042 = vpow2.f32 %v2718_v24  ;;  %v2612_v58 = vadd.f32 %v2532_v43, %v2332_v17  ;;  %3853 = vmatmul.msk.f32.gmra.mxu2 %vm250_vm1, %v4994_v16 }
 0x221   : >> { %4044 = vrcp.f32 %v4998_v51  ;;  %3919 = vmatmul.msk.f32.gmra.mxu3 %vm250_vm1, %v3885_v7  ;;  %vm2895_vm12 = vweird.f32 %v4998_v51 }
 0x222   : >> { %3985 = vmatmul.msk.f32.gmra.mxu0 %vm250_vm1, %v3951_v26  ;;  %v2868_v9 = vsel %vm2867_vm5, %v4035_v25, %v2864_v18  ;;  %v5009_v4 = vadd.f32 %v4826_v29, %v2612_v58  ;;  %v2884_v25 = vand.u32 2147483647, %v4985_v52  ;;  %v2887_v18 = vor.u32 1.1754944e-38, %v2886_v22 }
 0x223   : >> { %v4041_v43 = vpop.eup %4040  ;;  %v2873_v31 = vsel %vm2870_vm6, %v2872_v42, %v2868_v9  ;;  %v1975_v21 = vpop.f32.mrf.mxu2  ;;  %v2901_v58 = vand.u32 2147483648, %v4998_v51 }
 0x224   : >> { %v3284_v15 = vmul.f32 %v2873_v31, %v4911_v10  ;;  %v2876_v54 = vmul.f32 %v4041_v43, %v4985_v52  ;;  %v2680_v47 = vsub.f32 0.0, %v5009_v4  ;;  %v2255_v37 = vpop.f32.mrf.mxu3  ;;  %v2053_v62 = vadd.f32 %v1975_v21, %v1773_v14  ;;  %v1698_v1 = vpop.f32.mrf.mxu1  ;;  %v3952_v10 = vld [vmem:[%s4232_s7 + $0xf6] sm:$0xff] }
 0x225   : >> { %vm2881_vm7 = vweird.f32 %v4041_v43  ;;  %vm5034_vm9 = vcmp.eq.f32.partialorder %v2884_v25, 8.507059e+37  ;;  %v2899_v52 = vand.u32 2147483647, %v4998_v51 }
 0x226   : >> { %v4043_v40 = vpop.eup %4042  ;;  %3317 = vst.msk [vmem:[%s4899_s20 + $0x20] sm:$0xff] %vm250_vm1, %v3284_v15  ;;  %v2877_v19 = vsub.f32 1.0, %v2876_v54  ;;  %v2720_v11 = vmul.f32 1.442695, %v2680_v47  ;;  %v2333_v60 = vadd.f32 %v2255_v37, %v2053_v62  ;;  %vm2882_vm10 = vmor %vm2880_vm8, %vm2881_vm7  ;;  %v5050_v54 = vld [vmem:[%s4232_s7 + $0xfc] sm:$0xff] }
 0x227   : >> { %v5022_v57 = vpop.f32.mrf.mxu0  ;;  %v4045_v8 = vpop.eup %4044  ;;  %v5026_v32 = vadd.f32 1.0, %v4043_v40  ;;  %3788 = vmatmul.msk.f32.gmra.mxu1 %vm250_vm1, %v4967_v53  ;;  %v1774_v53 = vadd.f32 %v1698_v1, %v4603_v33  ;;  %v3887_v62 = vld [vmem:[%s4232_s7 + $0xfd] sm:$0xff]  ;;  %vm2900_vm14 = vcmp.eq.f32.partialorder %v2899_v52, 8.507059e+37 }
 0x228   : >> { %v2878_v30 = vmul.f32 %v4041_v43, %v2877_v19  ;;  %v2891_v23 = vmul.f32 %v4045_v8, %v4998_v51  ;;  %4046 = vpow2.f32 %v2720_v11  ;;  %3854 = vmatmul.msk.f32.gmra.mxu2 %vm250_vm1, %v5017_v44  ;;  %v2613_v26 = vadd.f32 %v2535_v39, %v2333_v60  ;;  %v3953_v40 = vld [vmem:[%s4232_s7 + $0xfe] sm:$0xff] }
 0x229   : >> { %4048 = vrcp.f32 %v5026_v32  ;;  %3920 = vmatmul.msk.f32.gmra.mxu3 %vm250_vm1, %v3886_v36  ;;  %vm2896_vm11 = vweird.f32 %v4045_v8  ;;  %v2902_v11 = vor.u32 1.1754944e-38, %v2901_v58  ;;  %vm2910_vm0 = vweird.f32 %v5026_v32 }
 0x22a   : >> { %3986 = vmatmul.msk.f32.gmra.mxu0 %vm250_vm1, %v3952_v10  ;;  %v2879_v17 = vadd.f32 %v4041_v43, %v2878_v30  ;;  %v2892_v7 = vsub.f32 1.0, %v2891_v23  ;;  %v5045_v14 = vadd.f32 %v4826_v29, %v2613_v26  ;;  %vm2897_vm13 = vmor %vm2895_vm12, %vm2896_vm11 }
 0x22b   : >> { %v1978_v42 = vpop.f32.mrf.mxu2 }
 0x22c   : >> { %v2883_v9 = vsel %vm2882_vm10, %v4041_v43, %v2879_v17  ;;  %v2893_v31 = vmul.f32 %v4045_v8, %v2892_v7  ;;  %v2054_v21 = vadd.f32 %v1978_v42, %v1774_v53  ;;  %v2258_v15 = vpop.f32.mrf.mxu3  ;;  %v1701_v39 = vpop.f32.mrf.mxu1  ;;  %v2681_v43 = vsub.f32 0.0, %v5045_v14  ;;  %v3888_v42 = vld [vmem:[%s4232_s7 + $0x105] sm:$0xff] }
 0x22d   : >> { %v2888_v33 = vsel %vm5034_vm9, %v2887_v18, %v2883_v9  ;;  %v1775_v23 = vadd.f32 %v1701_v39, %v4613_v56  ;;  %v2914_v53 = vand.u32 2147483647, %v5026_v32  ;;  %v5081_v56 = vld [vmem:[%s4232_s7 + $0x104] sm:$0xff] }
 0x22e   : >> { %v4047_v47 = vpop.eup %4046  ;;  %v3285_v37 = vmul.f32 %v2888_v33, %v4937_v49  ;;  %v2894_v25 = vadd.f32 %v4045_v8, %v2893_v31  ;;  %v2334_v10 = vadd.f32 %v2258_v15, %v2054_v21  ;;  %v2722_v51 = vmul.f32 1.442695, %v2681_v43  ;;  %v3954_v31 = vld [vmem:[%s4232_s7 + $0x106] sm:$0xff] }
 0x22f   : >> { %v2541_v1 = vpop.f32.mrf.mxu0  ;;  %v4049_v19 = vpop.eup %4048  ;;  %v5058_v36 = vadd.f32 1.0, %v4047_v47  ;;  %3789 = vmatmul.msk.f32.gmra.mxu1 %vm250_vm1, %v4994_v16  ;;  %v2916_v16 = vand.u32 2147483648, %v5026_v32  ;;  %vm2915_vm3 = vcmp.eq.f32.partialorder %v2914_v53, 8.507059e+37 }
 0x230   : >> { %3318 = vst.msk [vmem:[%s4899_s20 + $0x28] sm:$0xff] %vm250_vm1, %v3285_v37  ;;  %v2898_v22 = vsel %vm2897_vm13, %v4045_v8, %v2894_v25  ;;  %v2906_v49 = vmul.f32 %v4049_v19, %v5026_v32  ;;  %3855 = vmatmul.msk.f32.gmra.mxu2 %vm250_vm1, %v5050_v54  ;;  %v2614_v24 = vadd.f32 %v5022_v57, %v2334_v10  ;;  %vm2911_vm15 = vweird.f32 %v4049_v19 }
 0x231   : >> { %v2903_v60 = vsel %vm2900_vm14, %v2902_v11, %v2898_v22  ;;  %4050 = vrcp.f32 %v5058_v36  ;;  %3921 = vmatmul.msk.f32.gmra.mxu3 %vm250_vm1, %v3887_v62  ;;  %vm2912_vm2 = vmor %vm2910_vm0, %vm2911_vm15  ;;  %v2917_v15 = vor.u32 1.1754944e-38, %v2916_v16  ;;  %v2929_v11 = vand.u32 2147483647, %v5058_v36 }
 0x232   : >> { %3987 = vmatmul.msk.f32.gmra.mxu0 %vm250_vm1, %v3953_v40  ;;  %v3286_v8 = vmul.f32 %v2903_v60, %v4958_v50  ;;  %v2907_v30 = vsub.f32 1.0, %v2906_v49  ;;  %4052 = vpow2.f32 %v2722_v51  ;;  %v5078_v50 = vadd.f32 %v4826_v29, %v2614_v24  ;;  %v3889_v24 = vld [vmem:[%s4232_s7 + $0x10d] sm:$0xff] }
 0x233   : >> { %v1981_v17 = vpop.f32.mrf.mxu2  ;;  %v2931_v10 = vand.u32 2147483648, %v5058_v36  ;;  %vm2925_vm5 = vweird.f32 %v5058_v36  ;;  %vm2930_vm7 = vcmp.eq.f32.partialorder %v2929_v11, 8.507059e+37 }
 0x234   : >> { %3319 = vst.msk [vmem:[%s4899_s20 + $0x30] sm:$0xff] %vm250_vm1, %v3286_v8  ;;  %v2908_v7 = vmul.f32 %v4049_v19, %v2907_v30  ;;  %v2055_v26 = vadd.f32 %v1981_v17, %v1775_v23  ;;  %v2261_v18 = vpop.f32.mrf.mxu3  ;;  %v1704_v52 = vpop.f32.mrf.mxu1  ;;  %v2682_v33 = vsub.f32 0.0, %v5078_v50  ;;  %v5108_v8 = vld [vmem:[%s4232_s7 + $0x10c] sm:$0xff] }
 0x235   : >> { %v2932_v53 = vor.u32 1.1754944e-38, %v2931_v10  ;;  %v3956_v10 = vld [vmem:[%s4232_s7 + $0x116] sm:$0xff] }
 0x236   : >> { %v2909_v58 = vadd.f32 %v4049_v19, %v2908_v7  ;;  %v2335_v57 = vadd.f32 %v2261_v18, %v2055_v26  ;;  %v2724_v62 = vmul.f32 1.442695, %v2682_v33  ;;  %v3955_v7 = vld [vmem:[%s4232_s7 + $0x10e] sm:$0xff] }
 0x237   : >> { %v2544_v9 = vpop.f32.mrf.mxu0  ;;  %v4051_v21 = vpop.eup %4050  ;;  %3790 = vmatmul.msk.f32.gmra.mxu1 %vm250_vm1, %v5017_v44 }
 0x238   : >> { %v4053_v39 = vpop.eup %4052  ;;  %v2913_v47 = vsel %vm2912_vm2, %v4049_v19, %v2909_v58  ;;  %v2921_v37 = vmul.f32 %v4051_v21, %v5058_v36  ;;  %v2615_v25 = vadd.f32 %v2541_v1, %v2335_v57  ;;  %3856 = vmatmul.msk.f32.gmra.mxu2 %vm250_vm1, %v5081_v56  ;;  %v1776_v1 = vadd.f32 %v1704_v52, %v4623_v5 }
 0x239   : >> { %v2918_v32 = vsel %vm2915_vm3, %v2917_v15, %v2913_v47  ;;  %v5092_v43 = vadd.f32 1.0, %v4053_v39  ;;  %3922 = vmatmul.msk.f32.gmra.mxu3 %vm250_vm1, %v3888_v42  ;;  %vm2926_vm4 = vweird.f32 %v4051_v21 }
 0x23a   : >> { %3988 = vmatmul.msk.f32.gmra.mxu0 %vm250_vm1, %v3954_v31  ;;  %v3287_v40 = vmul.f32 %v2918_v32, %v4983_v63  ;;  %v2922_v19 = vsub.f32 1.0, %v2921_v37  ;;  %v5099_v44 = vadd.f32 %v4826_v29, %v2615_v25  ;;  %vm2927_vm6 = vmor %vm2925_vm5, %vm2926_vm4  ;;  %v3824_v25 = vld [vmem:[%s4232_s7 + $0x114] sm:$0xff] }
 0x23b   : >> { %4054 = vrcp.f32 %v5092_v43  ;;  %v1984_v22 = vpop.f32.mrf.mxu2  ;;  %v2946_v37 = vand.u32 2147483648, %v5092_v43  ;;  %vm2940_vm9 = vweird.f32 %v5092_v43 }
 0x23c   : >> { %3320 = vst.msk [vmem:[%s4899_s20 + $0x38] sm:$0xff] %vm250_vm1, %v3287_v40  ;;  %v2923_v63 = vmul.f32 %v4051_v21, %v2922_v19  ;;  %4056 = vpow2.f32 %v2724_v62  ;;  %v2683_v49 = vsub.f32 0.0, %v5099_v44  ;;  %v2056_v5 = vadd.f32 %v1984_v22, %v1776_v1  ;;  %v2264_v51 = vpop.f32.mrf.mxu3  ;;  %v1707_v60 = vpop.f32.mrf.mxu1  ;;  %v3890_v1 = vld [vmem:[%s4232_s7 + $0x115] sm:$0xff] }
 0x23e   : >> { %v2924_v30 = vadd.f32 %v4051_v21, %v2923_v63  ;;  %v2726_v23 = vmul.f32 1.442695, %v2683_v49  ;;  %v2336_v16 = vadd.f32 %v2264_v51, %v2056_v5  ;;  %v2947_v5 = vor.u32 1.1754944e-38, %v2946_v37 }
 0x23f   : >> { %v2547_v17 = vpop.f32.mrf.mxu0  ;;  %3791 = vmatmul.msk.f32.gmra.mxu1 %vm250_vm1, %v5050_v54 }
 0x240   : >> { %v2928_v26 = vsel %vm2927_vm6, %v4051_v21, %v2924_v30  ;;  %4058 = vpow2.f32 %v2726_v23  ;;  %v2616_v18 = vadd.f32 %v2544_v9, %v2336_v16  ;;  %3857 = vmatmul.msk.f32.gmra.mxu2 %vm250_vm1, %v5108_v8  ;;  %v1777_v9 = vadd.f32 %v1707_v60, %v4633_v28 }
 0x241   : >> { %v4055_v36 = vpop.eup %4054  ;;  %v2933_v52 = vsel %vm2930_vm7, %v2932_v53, %v2928_v26  ;;  %3923 = vmatmul.msk.f32.gmra.mxu3 %vm250_vm1, %v3889_v24 }
 0x242   : >> { %3989 = vmatmul.msk.f32.gmra.mxu0 %vm250_vm1, %v3955_v7  ;;  %v4057_v58 = vpop.eup %4056  ;;  %v3288_v57 = vmul.f32 %v2933_v52, %v5009_v4  ;;  %v2936_v42 = vmul.f32 %v4055_v36, %v5092_v43  ;;  %v5124_v31 = vadd.f32 %v4826_v29, %v2616_v18  ;;  %v2944_v4 = vand.u32 2147483647, %v5092_v43 }
 0x243   : >> { %v5126_v54 = vadd.f32 1.0, %v4057_v58  ;;  %v1987_v21 = vpop.f32.mrf.mxu2  ;;  %vm2941_vm8 = vweird.f32 %v4055_v36 }
 0x244   : >> { %3321 = vst.msk [vmem:[%s4899_s20 + $0x40] sm:$0xff] %vm250_vm1, %v3288_v57  ;;  %v2937_v15 = vsub.f32 1.0, %v2936_v42  ;;  %v2684_v33 = vsub.f32 0.0, %v5124_v31  ;;  %v2057_v39 = vadd.f32 %v1987_v21, %v1777_v9  ;;  %v2267_v47 = vpop.f32.mrf.mxu3  ;;  %v1710_v28 = vpop.f32.mrf.mxu1  ;;  %vm2942_vm10 = vmor %vm2940_vm9, %vm2941_vm8  ;;  %vm2945_vm11 = vcmp.eq.f32.partialorder %v2944_v4, 8.507059e+37  ;;  %v3957_v9 = vld [vmem:[%s4232_s7 + $0x11e] sm:$0xff] }
 0x245   : >> { %4060 = vrcp.f32 %v5126_v54  ;;  %v1778_v30 = vadd.f32 %v1710_v28, %v4643_v46  ;;  %v2959_v53 = vand.u32 2147483647, %v5126_v54  ;;  %v3891_v46 = vld [vmem:[%s4232_s7 + $0x11d] sm:$0xff]  ;;  %vm2955_vm13 = vweird.f32 %v5126_v54 }
 0x246   : >> { %v4059_v32 = vpop.eup %4058  ;;  %v2938_v62 = vmul.f32 %v4055_v36, %v2937_v15  ;;  %v2728_v40 = vmul.f32 1.442695, %v2684_v33  ;;  %v2337_v19 = vadd.f32 %v2267_v47, %v2057_v39 }
 0x247   : >> { %v2550_v11 = vpop.f32.mrf.mxu0  ;;  %v5137_v22 = vadd.f32 1.0, %v4059_v32  ;;  %3792 = vmatmul.msk.f32.gmra.mxu1 %vm250_vm1, %v5081_v56  ;;  %vm5167_vm14 = vcmp.eq.f32.partialorder %v2959_v53, 8.507059e+37 }
 0x248   : >> { %v2939_v63 = vadd.f32 %v4055_v36, %v2938_v62  ;;  %4062 = vpow2.f32 %v2728_v40  ;;  %v2617_v49 = vadd.f32 %v2547_v17, %v2337_v19  ;;  %3858 = vmatmul.msk.f32.gmra.mxu2 %vm250_vm1, %v3824_v25 }
 0x249   : >> { %4064 = vrcp.f32 %v5137_v22  ;;  %3924 = vmatmul.msk.f32.gmra.mxu3 %vm250_vm1, %v3890_v1  ;;  %v2976_v62 = vand.u32 2147483648, %v5137_v22  ;;  %vm2970_vm2 = vweird.f32 %v5137_v22 }
 0x24a   : >> { %3990 = vmatmul.msk.f32.gmra.mxu0 %vm250_vm1, %v3956_v10  ;;  %v2943_v51 = vsel %vm2942_vm10, %v4055_v36, %v2939_v63  ;;  %v5147_v43 = vadd.f32 %v4826_v29, %v2617_v49  ;;  %v3825_v36 = vld [vmem:[%s4232_s7 + $0x11c] sm:$0xff] }
 0x24b   : >> { %v4061_v60 = vpop.eup %4060  ;;  %v2948_v56 = vsel %vm2945_vm11, %v2947_v5, %v2943_v51  ;;  %v1990_v23 = vpop.f32.mrf.mxu2 }
 0x24c   : >> { %v3289_v16 = vmul.f32 %v2948_v56, %v5045_v14  ;;  %v2951_v24 = vmul.f32 %v4061_v60, %v5126_v54  ;;  %v2685_v17 = vsub.f32 0.0, %v5147_v43  ;;  %v2270_v7 = vpop.f32.mrf.mxu3  ;;  %v2058_v26 = vadd.f32 %v1990_v23, %v1778_v30  ;;  %v1713_v18 = vpop.f32.mrf.mxu1 }
 0x24d   : >> { %v2961_v14 = vand.u32 2147483648, %v5126_v54  ;;  %vm2956_vm12 = vweird.f32 %v4061_v60  ;;  %v1779_v25 = vadd.f32 %v1713_v18, %v4654_v61  ;;  %v2974_v54 = vand.u32 2147483647, %v5137_v22 }
 0x24e   : >> { %v4063_v52 = vpop.eup %4062  ;;  %3322 = vst.msk [vmem:[%s4899_s20 + $0x48] sm:$0xff] %vm250_vm1, %v3289_v16  ;;  %v2952_v58 = vsub.f32 1.0, %v2951_v24  ;;  %v2730_v57 = vmul.f32 1.442695, %v2685_v17  ;;  %v2338_v33 = vadd.f32 %v2270_v7, %v2058_v26  ;;  %vm2957_vm15 = vmor %vm2955_vm13, %vm2956_vm12 }
 0x24f   : >> { %v2553_v42 = vpop.f32.mrf.mxu0  ;;  %v4065_v21 = vpop.eup %4064  ;;  %v5160_v15 = vadd.f32 1.0, %v4063_v52  ;;  %3793 = vmatmul.msk.f32.gmra.mxu1 %vm250_vm1, %v5108_v8  ;;  %v2962_v8 = vor.u32 1.1754944e-38, %v2961_v14  ;;  %vm2975_vm4 = vcmp.eq.f32.partialorder %v2974_v54, 8.507059e+37 }
 0x250   : >> { %v2953_v39 = vmul.f32 %v4061_v60, %v2952_v58  ;;  %v2966_v47 = vmul.f32 %v4065_v21, %v5137_v22  ;;  %4066 = vpow2.f32 %v2730_v57  ;;  %3859 = vmatmul.msk.f32.gmra.mxu2 %vm250_vm1, %v3825_v36  ;;  %v2618_v32 = vadd.f32 %v2550_v11, %v2338_v33 }
 0x251   : >> { %4068 = vrcp.f32 %v5160_v15  ;;  %3925 = vmatmul.msk.f32.gmra.mxu3 %vm250_vm1, %v3891_v46  ;;  %vm2971_vm0 = vweird.f32 %v4065_v21  ;;  %v2991_v36 = vand.u32 2147483648, %v5160_v15  ;;  %v2989_v46 = vand.u32 2147483647, %v5160_v15 }
 0x252   : >> { %3991 = vmatmul.msk.f32.gmra.mxu0 %vm250_vm1, %v3957_v9  ;;  %v2954_v37 = vadd.f32 %v4061_v60, %v2953_v39  ;;  %v2967_v28 = vsub.f32 1.0, %v2966_v47  ;;  %v5178_v10 = vadd.f32 %v4826_v29, %v2618_v32  ;;  %vm2972_vm3 = vmor %vm2970_vm2, %vm2971_vm0  ;;  %v2977_v29 = vor.u32 1.1754944e-38, %v2976_v62 }
 0x253   : >> { %v1993_v40 = vpop.f32.mrf.mxu2  ;;  %vm2985_vm6 = vweird.f32 %v5160_v15  ;;  %v2992_v4 = vor.u32 1.1754944e-38, %v2991_v36  ;;  %vm2990_vm8 = vcmp.eq.f32.partialorder %v2989_v46, 8.507059e+37 }
 0x254   : >> { %v2958_v19 = vsel %vm2957_vm15, %v4061_v60, %v2954_v37  ;;  %v2968_v1 = vmul.f32 %v4065_v21, %v2967_v28  ;;  %v2059_v63 = vadd.f32 %v1993_v40, %v1779_v25  ;;  %v2273_v49 = vpop.f32.mrf.mxu3  ;;  %v1716_v11 = vpop.f32.mrf.mxu1  ;;  %v2686_v30 = vsub.f32 0.0, %v5178_v10 }
 0x255   : >> { %v2963_v61 = vsel %vm5167_vm14, %v2962_v8, %v2958_v19  ;;  %v1780_v18 = vadd.f32 %v1716_v11, %v4665_v38 }
 0x256   : >> { %v4067_v5 = vpop.eup %4066  ;;  %v3290_v51 = vmul.f32 %v2963_v61, %v5078_v50  ;;  %v2969_v56 = vadd.f32 %v4065_v21, %v2968_v1  ;;  %v2339_v24 = vadd.f32 %v2273_v49, %v2059_v63  ;;  %v2732_v7 = vmul.f32 1.442695, %v2686_v30 }
 0x257   : >> { %v2556_v60 = vpop.f32.mrf.mxu0  ;;  %v4069_v23 = vpop.eup %4068  ;;  %v5186_v16 = vadd.f32 1.0, %v4067_v5 }
 0x258   : >> { %3323 = vst.msk [vmem:[%s4899_s20 + $0x50] sm:$0xff] %vm250_vm1, %v3290_v51  ;;  %v2973_v17 = vsel %vm2972_vm3, %v4065_v21, %v2969_v56  ;;  %v2981_v50 = vmul.f32 %v4069_v23, %v5160_v15  ;;  %v2619_v52 = vadd.f32 %v2553_v42, %v2339_v24  ;;  %vm2986_vm5 = vweird.f32 %v4069_v23 }
 0x259   : >> { %v2978_v53 = vsel %vm2975_vm4, %v2977_v29, %v2973_v17  ;;  %4070 = vrcp.f32 %v5186_v16  ;;  %vm2987_vm7 = vmor %vm2985_vm6, %vm2986_vm5  ;;  %v3004_v49 = vand.u32 2147483647, %v5186_v16  ;;  %v3006_v61 = vand.u32 2147483648, %v5186_v16 }
 0x25a   : >> { %v3291_v22 = vmul.f32 %v2978_v53, %v5099_v44  ;;  %v2982_v26 = vsub.f32 1.0, %v2981_v50  ;;  %4072 = vpow2.f32 %v2732_v7  ;;  %v5201_v44 = vld [vmem:[%s5460_s2] ss:$0 sm:$0xff]  ;;  %vm3000_vm10 = vweird.f32 %v5186_v16 }
 0x25b   : >> { %v1996_v58 = vpop.f32.mrf.mxu2  ;;  %v5204_v14 = vadd.f32 %v5201_v44, %v2619_v52  ;;  %v3007_v24 = vor.u32 1.1754944e-38, %v3006_v61  ;;  %vm3005_vm12 = vcmp.eq.f32.partialorder %v3004_v49, 8.507059e+37 }
 0x25c   : >> { %3324 = vst.msk [vmem:[%s4899_s20 + $0x58] sm:$0xff] %vm250_vm1, %v3291_v22  ;;  %v2983_v57 = vmul.f32 %v4069_v23, %v2982_v26  ;;  %v2060_v9 = vadd.f32 %v1996_v58, %v1780_v18  ;;  %v2276_v21 = vpop.f32.mrf.mxu3  ;;  %v1719_v38 = vpop.f32.mrf.mxu1 }
 0x25d   : >> { %v2687_v37 = vsub.f32 0.0, %v5204_v14  ;;  %v1781_v1 = vadd.f32 %v1719_v38, %v4675_v45 }
 0x25e   : >> { %v2984_v33 = vadd.f32 %v4069_v23, %v2983_v57  ;;  %v2340_v42 = vadd.f32 %v2276_v21, %v2060_v9 }
 0x25f   : >> { %v2559_v39 = vpop.f32.mrf.mxu0  ;;  %v4071_v47 = vpop.eup %4070  ;;  %v2734_v40 = vmul.f32 1.442695, %v2687_v37 }
 0x260   : >> { %v4073_v28 = vpop.eup %4072  ;;  %v2988_v25 = vsel %vm2987_vm7, %v4069_v23, %v2984_v33  ;;  %v2996_v32 = vmul.f32 %v4071_v47, %v5186_v16  ;;  %v2620_v8 = vadd.f32 %v2556_v60, %v2340_v42  ;;  %vm3001_vm9 = vweird.f32 %v4071_v47 }
 0x261   : >> { %v2993_v54 = vsel %vm2990_vm8, %v2992_v4, %v2988_v25  ;;  %v5209_v62 = vadd.f32 1.0, %v4073_v28  ;;  %vm3002_vm11 = vmor %vm3000_vm10, %vm3001_vm9 }
 0x262   : >> { %v3292_v15 = vmul.f32 %v2993_v54, %v5124_v31  ;;  %v2997_v19 = vsub.f32 1.0, %v2996_v32  ;;  %v5214_v63 = vadd.f32 %v5201_v44, %v2620_v8 }
 0x263   : >> { %4074 = vrcp.f32 %v5209_v62  ;;  %v1999_v11 = vpop.f32.mrf.mxu2  ;;  %v3019_v38 = vand.u32 2147483647, %v5209_v62  ;;  %vm3015_vm14 = vweird.f32 %v5209_v62 }
 0x264   : >> { %3325 = vst.msk [vmem:[%s4899_s20 + $0x60] sm:$0xff] %vm250_vm1, %v3292_v15  ;;  %v2998_v5 = vmul.f32 %v4071_v47, %v2997_v19  ;;  %4076 = vpow2.f32 %v2734_v40  ;;  %v2688_v31 = vsub.f32 0.0, %v5214_v63  ;;  %v2061_v51 = vadd.f32 %v1999_v11, %v1781_v1  ;;  %v2279_v56 = vpop.f32.mrf.mxu3  ;;  %v1722_v45 = vpop.f32.mrf.mxu1 }
 0x265   : >> { %v1782_v16 = vadd.f32 %v1722_v45, %v4685_v2  ;;  %vm3020_vm0 = vcmp.eq.f32.partialorder %v3019_v38, 8.507059e+37 }
 0x266   : >> { %v2999_v30 = vadd.f32 %v4071_v47, %v2998_v5  ;;  %v2736_v60 = vmul.f32 1.442695, %v2688_v31  ;;  %v2341_v23 = vadd.f32 %v2279_v56, %v2061_v51 }
 0x267   : >> { %v2562_v29 = vpop.f32.mrf.mxu0 }
 0x268   : >> { %v3003_v17 = vsel %vm3002_vm11, %v4071_v47, %v2999_v30  ;;  %4078 = vpow2.f32 %v2736_v60  ;;  %v2621_v50 = vadd.f32 %v2559_v39, %v2341_v23 }
 0x269   : >> { %v4075_v7 = vpop.eup %4074  ;;  %v3008_v53 = vsel %vm3005_vm12, %v3007_v24, %v3003_v17 }
 0x26a   : >> { %v4077_v22 = vpop.eup %4076  ;;  %v3293_v26 = vmul.f32 %v3008_v53, %v5147_v43  ;;  %v3011_v18 = vmul.f32 %v4075_v7, %v5209_v62  ;;  %v5228_v36 = vadd.f32 %v5201_v44, %v2621_v50  ;;  %v3021_v43 = vand.u32 2147483648, %v5209_v62 }
 0x26b   : >> { %v2783_v52 = vadd.f32 1.0, %v4077_v22  ;;  %v2002_v58 = vpop.f32.mrf.mxu2  ;;  %vm3016_vm13 = vweird.f32 %v4075_v7 }
 0x26c   : >> { %3326 = vst.msk [vmem:[%s4899_s20 + $0x68] sm:$0xff] %vm250_vm1, %v3293_v26  ;;  %v3012_v57 = vsub.f32 1.0, %v3011_v18  ;;  %v2689_v46 = vsub.f32 0.0, %v5228_v36  ;;  %v2062_v9 = vadd.f32 %v2002_v58, %v1782_v16  ;;  %v2282_v21 = vpop.f32.mrf.mxu3  ;;  %v1725_v33 = vpop.f32.mrf.mxu1  ;;  %vm3017_vm15 = vmor %vm3015_vm14, %vm3016_vm13  ;;  %v3022_v32 = vor.u32 1.1754944e-38, %v3021_v43 }
 0x26d   : >> { %4080 = vrcp.f32 %v2783_v52  ;;  %v1783_v19 = vadd.f32 %v1725_v33, %v4695_v6  ;;  %v3034_v5 = vand.u32 2147483647, %v2783_v52  ;;  %vm3030_vm3 = vweird.f32 %v2783_v52 }
 0x26e   : >> { %v4079_v42 = vpop.eup %4078  ;;  %v3013_v2 = vmul.f32 %v4075_v7, %v3012_v57  ;;  %v2738_v39 = vmul.f32 1.442695, %v2689_v46  ;;  %v2342_v47 = vadd.f32 %v2282_v21, %v2062_v9 }
 0x26f   : >> { %v2565_v4 = vpop.f32.mrf.mxu0  ;;  %v5235_v37 = vadd.f32 1.0, %v4079_v42  ;;  %vm5250_vm4 = vcmp.eq.f32.partialorder %v3034_v5, 8.507059e+37 }
 0x270   : >> { %v3014_v28 = vadd.f32 %v4075_v7, %v3013_v2  ;;  %4082 = vpow2.f32 %v2738_v39  ;;  %v2622_v25 = vadd.f32 %v2562_v29, %v2342_v47  ;;  %v3036_v29 = vand.u32 2147483648, %v2783_v52 }
 0x271   : >> { %4084 = vrcp.f32 %v5235_v37  ;;  %v3049_v16 = vand.u32 2147483647, %v5235_v37  ;;  %v3051_v58 = vand.u32 2147483648, %v5235_v37  ;;  %vm3045_vm7 = vweird.f32 %v5235_v37 }
 0x272   : >> { %v3018_v8 = vsel %vm3017_vm15, %v4075_v7, %v3014_v28  ;;  %v5240_v54 = vadd.f32 %v5201_v44, %v2622_v25  ;;  %v3037_v18 = vor.u32 1.1754944e-38, %v3036_v29 }
 0x273   : >> { %v4081_v40 = vpop.eup %4080  ;;  %v3023_v15 = vsel %vm3020_vm0, %v3022_v32, %v3018_v8  ;;  %v2005_v1 = vpop.f32.mrf.mxu2  ;;  %v3052_v28 = vor.u32 1.1754944e-38, %v3051_v58  ;;  %vm3050_vm9 = vcmp.eq.f32.partialorder %v3049_v16, 8.507059e+37 }
 0x274   : >> { %v3294_v49 = vmul.f32 %v3023_v15, %v5178_v10  ;;  %v3026_v62 = vmul.f32 %v4081_v40, %v2783_v52  ;;  %v2690_v61 = vsub.f32 0.0, %v5240_v54  ;;  %v2285_v11 = vpop.f32.mrf.mxu3  ;;  %v2063_v31 = vadd.f32 %v2005_v1, %v1783_v19  ;;  %v1728_v51 = vpop.f32.mrf.mxu1 }
 0x275   : >> { %vm3031_vm2 = vweird.f32 %v4081_v40  ;;  %v1784_v22 = vadd.f32 %v1728_v51, %v4705_v13 }
 0x276   : >> { %v4083_v56 = vpop.eup %4082  ;;  %3327 = vst.msk [vmem:[%s4899_s20 + $0x70] sm:$0xff] %vm250_vm1, %v3294_v49  ;;  %v3027_v45 = vsub.f32 1.0, %v3026_v62  ;;  %v2740_v30 = vmul.f32 1.442695, %v2690_v61  ;;  %v2343_v6 = vadd.f32 %v2285_v11, %v2063_v31  ;;  %vm3032_vm5 = vmor %vm3030_vm3, %vm3031_vm2 }
 0x277   : >> { %v2568_v60 = vpop.f32.mrf.mxu0  ;;  %v4085_v23 = vpop.eup %4084  ;;  %v5247_v24 = vadd.f32 1.0, %v4083_v56 }
 0x278   : >> { %v3028_v17 = vmul.f32 %v4081_v40, %v3027_v45  ;;  %v3041_v10 = vmul.f32 %v4085_v23, %v5235_v37  ;;  %4086 = vpow2.f32 %v2740_v30  ;;  %v2623_v26 = vadd.f32 %v2565_v4, %v2343_v6 }
 0x279   : >> { %4088 = vrcp.f32 %v5247_v24  ;;  %vm3046_vm6 = vweird.f32 %v4085_v23  ;;  %v3066_v49 = vand.u32 2147483648, %v5247_v24  ;;  %v3064_v5 = vand.u32 2147483647, %v5247_v24 }
 0x27a   : >> { %v3029_v7 = vadd.f32 %v4081_v40, %v3028_v17  ;;  %v3042_v53 = vsub.f32 1.0, %v3041_v10  ;;  %v5259_v9 = vadd.f32 %v5201_v44, %v2623_v26  ;;  %vm3047_vm8 = vmor %vm3045_vm7, %vm3046_vm6  ;;  %vm3060_vm11 = vweird.f32 %v5247_v24 }
 0x27b   : >> { %v2008_v57 = vpop.f32.mrf.mxu2  ;;  %vm3065_vm13 = vcmp.eq.f32.partialorder %v3064_v5, 8.507059e+37 }
 0x27c   : >> { %v3033_v52 = vsel %vm3032_vm5, %v4081_v40, %v3029_v7  ;;  %v3043_v46 = vmul.f32 %v4085_v23, %v3042_v53  ;;  %v2064_v21 = vadd.f32 %v2008_v57, %v1784_v22  ;;  %v2288_v38 = vpop.f32.mrf.mxu3  ;;  %v1731_v43 = vpop.f32.mrf.mxu1  ;;  %v2691_v39 = vsub.f32 0.0, %v5259_v9 }
 0x27d   : >> { %v3038_v13 = vsel %vm5250_vm4, %v3037_v18, %v3033_v52  ;;  %v1785_v1 = vadd.f32 %v1731_v43, %v4715_v0 }
 0x27e   : >> { %v4087_v33 = vpop.eup %4086  ;;  %v3295_v42 = vmul.f32 %v3038_v13, %v5204_v14  ;;  %v3044_v2 = vadd.f32 %v4085_v23, %v3043_v46  ;;  %v2344_v32 = vadd.f32 %v2288_v38, %v2064_v21  ;;  %v2742_v40 = vmul.f32 1.442695, %v2691_v39 }
 0x27f   : >> { %v2571_v47 = vpop.f32.mrf.mxu0  ;;  %v4089_v4 = vpop.eup %4088  ;;  %v5267_v25 = vadd.f32 1.0, %v4087_v33 }
 0x280   : >> { %3328 = vst.msk [vmem:[%s4899_s20 + $0x78] sm:$0xff] %vm250_vm1, %v3295_v42  ;;  %v3048_v8 = vsel %vm3047_vm8, %v4085_v23, %v3044_v2  ;;  %v3056_v14 = vmul.f32 %v4089_v4, %v5247_v24  ;;  %v2624_v62 = vadd.f32 %v2568_v60, %v2344_v32  ;;  %vm3061_vm10 = vweird.f32 %v4089_v4 }
 0x281   : >> { %v3053_v15 = vsel %vm3050_vm9, %v3052_v28, %v3048_v8  ;;  %4090 = vrcp.f32 %v5267_v25  ;;  %vm3062_vm12 = vmor %vm3060_vm11, %vm3061_vm10  ;;  %v3067_v60 = vor.u32 1.1754944e-38, %v3066_v49  ;;  %v3079_v58 = vand.u32 2147483647, %v5267_v25 }
 0x282   : >> { %v3296_v37 = vmul.f32 %v3053_v15, %v5214_v63  ;;  %v3057_v19 = vsub.f32 1.0, %v3056_v14  ;;  %4092 = vpow2.f32 %v2742_v40  ;;  %v5280_v56 = vadd.f32 %v5201_v44, %v2624_v62 }
 0x283   : >> { %v2011_v61 = vpop.f32.mrf.mxu2  ;;  %v3081_v57 = vand.u32 2147483648, %v5267_v25  ;;  %vm3075_vm15 = vweird.f32 %v5267_v25  ;;  %vm3080_vm2 = vcmp.eq.f32.partialorder %v3079_v58, 8.507059e+37 }
 0x284   : >> { %3329 = vst.msk [vmem:[%s4899_s20 + $0x80] sm:$0xff] %vm250_vm1, %v3296_v37  ;;  %v3058_v11 = vmul.f32 %v4089_v4, %v3057_v19  ;;  %v2065_v31 = vadd.f32 %v2011_v61, %v1785_v1  ;;  %v2291_v51 = vpop.f32.mrf.mxu3  ;;  %v1734_v63 = vpop.f32.mrf.mxu1  ;;  %v2692_v29 = vsub.f32 0.0, %v5280_v56 }
 0x285   : >> { %v1786_v18 = vadd.f32 %v1734_v63, %v4725_v12  ;;  %v3082_v2 = vor.u32 1.1754944e-38, %v3081_v57 }
 0x286   : >> { %v3059_v45 = vadd.f32 %v4089_v4, %v3058_v11  ;;  %v2345_v0 = vadd.f32 %v2291_v51, %v2065_v31  ;;  %v2744_v22 = vmul.f32 1.442695, %v2692_v29 }
 0x287   : >> { %v2574_v30 = vpop.f32.mrf.mxu0  ;;  %v4091_v23 = vpop.eup %4090 }
 0x288   : >> { %v4093_v6 = vpop.eup %4092  ;;  %v3063_v17 = vsel %vm3062_vm12, %v4089_v4, %v3059_v45  ;;  %v3071_v10 = vmul.f32 %v4091_v23, %v5267_v25  ;;  %v2625_v50 = vadd.f32 %v2571_v47, %v2345_v0  ;;  %vm3076_vm14 = vweird.f32 %v4091_v23 }
 0x289   : >> { %v3068_v7 = vsel %vm3065_vm13, %v3067_v60, %v3063_v17  ;;  %v5285_v53 = vadd.f32 1.0, %v4093_v6  ;;  %vm3077_vm0 = vmor %vm3075_vm15, %vm3076_vm14 }
 0x28a   : >> { %v3297_v24 = vmul.f32 %v3068_v7, %v5228_v36  ;;  %v3072_v26 = vsub.f32 1.0, %v3071_v10  ;;  %v5290_v16 = vadd.f32 %v5201_v44, %v2625_v50 }
 0x28b   : >> { %4094 = vrcp.f32 %v5285_v53  ;;  %v2014_v52 = vpop.f32.mrf.mxu2  ;;  %v3094_v61 = vand.u32 2147483647, %v5285_v53  ;;  %vm3090_vm4 = vweird.f32 %v5285_v53 }
 0x28c   : >> { %3330 = vst.msk [vmem:[%s4899_s20 + $0x88] sm:$0xff] %vm250_vm1, %v3297_v24  ;;  %v3073_v46 = vmul.f32 %v4091_v23, %v3072_v26  ;;  %4096 = vpow2.f32 %v2744_v22  ;;  %v2693_v36 = vsub.f32 0.0, %v5290_v16  ;;  %v2066_v21 = vadd.f32 %v2014_v52, %v1786_v18  ;;  %v2294_v38 = vpop.f32.mrf.mxu3  ;;  %v1737_v12 = vpop.f32.mrf.mxu1 }
 0x28d   : >> { %v1787_v25 = vadd.f32 %v1737_v12, %v4735_v35  ;;  %vm3095_vm6 = vcmp.eq.f32.partialorder %v3094_v61, 8.507059e+37 }
 0x28e   : >> { %v3074_v13 = vadd.f32 %v4091_v23, %v3073_v46  ;;  %v2746_v43 = vmul.f32 1.442695, %v2693_v36  ;;  %v2346_v33 = vadd.f32 %v2294_v38, %v2066_v21 }
 0x28f   : >> { %v2577_v42 = vpop.f32.mrf.mxu0 }
 0x290   : >> { %v3078_v39 = vsel %vm3077_vm0, %v4091_v23, %v3074_v13  ;;  %4098 = vpow2.f32 %v2746_v43  ;;  %v2626_v47 = vadd.f32 %v2574_v30, %v2346_v33 }
 0x291   : >> { %v4095_v4 = vpop.eup %4094  ;;  %v3083_v28 = vsel %vm3080_vm2, %v3082_v2, %v3078_v39 }
 0x292   : >> { %v4097_v32 = vpop.eup %4096  ;;  %v3298_v8 = vmul.f32 %v3083_v28, %v5240_v54  ;;  %v3086_v14 = vmul.f32 %v4095_v4, %v5285_v53  ;;  %v5304_v40 = vadd.f32 %v5201_v44, %v2626_v47  ;;  %v3096_v54 = vand.u32 2147483648, %v5285_v53 }
 0x293   : >> { %v2788_v15 = vadd.f32 1.0, %v4097_v32  ;;  %v2017_v37 = vpop.f32.mrf.mxu2  ;;  %vm3091_vm3 = vweird.f32 %v4095_v4 }
 0x294   : >> { %3331 = vst.msk [vmem:[%s4899_s20 + $0x90] sm:$0xff] %vm250_vm1, %v3298_v8  ;;  %v3087_v19 = vsub.f32 1.0, %v3086_v14  ;;  %v2694_v1 = vsub.f32 0.0, %v5304_v40  ;;  %v2067_v49 = vadd.f32 %v2017_v37, %v1787_v25  ;;  %v2297_v62 = vpop.f32.mrf.mxu3  ;;  %v1740_v11 = vpop.f32.mrf.mxu1  ;;  %vm3092_vm5 = vmor %vm3090_vm4, %vm3091_vm3  ;;  %v3097_v23 = vor.u32 1.1754944e-38, %v3096_v54 }
 0x295   : >> { %4100 = vrcp.f32 %v2788_v15  ;;  %v1788_v10 = vadd.f32 %v1740_v11, %v4745_v20  ;;  %v3109_v26 = vand.u32 2147483647, %v2788_v15  ;;  %v3111_v38 = vand.u32 2147483648, %v2788_v15 }
 0x296   : >> { %v4099_v5 = vpop.eup %4098  ;;  %v3088_v35 = vmul.f32 %v4095_v4, %v3087_v19  ;;  %v2748_v31 = vmul.f32 1.442695, %v2694_v1  ;;  %v2347_v51 = vadd.f32 %v2297_v62, %v2067_v49  ;;  %vm3105_vm8 = vweird.f32 %v2788_v15 }
 0x297   : >> { %v2580_v63 = vpop.f32.mrf.mxu0  ;;  %v5311_v45 = vadd.f32 1.0, %v4099_v5  ;;  %vm5326_vm9 = vcmp.eq.f32.partialorder %v3109_v26, 8.507059e+37  ;;  %v3112_v47 = vor.u32 1.1754944e-38, %v3111_v38 }
 0x298   : >> { %v3089_v0 = vadd.f32 %v4095_v4, %v3088_v35  ;;  %4102 = vpow2.f32 %v2748_v31  ;;  %v2627_v30 = vadd.f32 %v2577_v42, %v2347_v51 }
 0x299   : >> { %4104 = vrcp.f32 %v5311_v45  ;;  %v3126_v28 = vand.u32 2147483648, %v5311_v45  ;;  %vm3120_vm12 = vweird.f32 %v5311_v45 }
 0x29a   : >> { %v3093_v60 = vsel %vm3092_vm5, %v4095_v4, %v3089_v0  ;;  %v5316_v29 = vadd.f32 %v5201_v44, %v2627_v30  ;;  %v3124_v4 = vand.u32 2147483647, %v5311_v45 }
 0x29b   : >> { %v4101_v6 = vpop.eup %4100  ;;  %v3098_v17 = vsel %vm3095_vm6, %v3097_v23, %v3093_v60  ;;  %v2020_v50 = vpop.f32.mrf.mxu2  ;;  %v3127_v5 = vor.u32 1.1754944e-38, %v3126_v28 }
 0x29c   : >> { %v3299_v7 = vmul.f32 %v3098_v17, %v5259_v9  ;;  %v3101_v53 = vmul.f32 %v4101_v6, %v2788_v15  ;;  %v2695_v22 = vsub.f32 0.0, %v5316_v29  ;;  %v2300_v24 = vpop.f32.mrf.mxu3  ;;  %v2068_v18 = vadd.f32 %v2020_v50, %v1788_v10  ;;  %v1743_v58 = vpop.f32.mrf.mxu1 }
 0x29d   : >> { %vm3106_vm7 = vweird.f32 %v4101_v6  ;;  %v1789_v2 = vadd.f32 %v1743_v58, %v4755_v27  ;;  %vm3125_vm14 = vcmp.eq.f32.partialorder %v3124_v4, 8.507059e+37 }
 0x29e   : >> { %v4103_v57 = vpop.eup %4102  ;;  %3332 = vst.msk [vmem:[%s4899_s20 + $0x98] sm:$0xff] %vm250_vm1, %v3299_v7  ;;  %v3102_v52 = vsub.f32 1.0, %v3101_v53  ;;  %v2750_v46 = vmul.f32 1.442695, %v2695_v22  ;;  %v2348_v20 = vadd.f32 %v2300_v24, %v2068_v18  ;;  %vm3107_vm10 = vmor %vm3105_vm8, %vm3106_vm7 }
 0x29f   : >> { %v2583_v36 = vpop.f32.mrf.mxu0  ;;  %v4105_v21 = vpop.eup %4104  ;;  %v5323_v12 = vadd.f32 1.0, %v4103_v57 }
 0x2a0   : >> { %v3103_v13 = vmul.f32 %v4101_v6, %v3102_v52  ;;  %v3116_v9 = vmul.f32 %v4105_v21, %v5311_v45  ;;  %4106 = vpow2.f32 %v2750_v46  ;;  %v2628_v39 = vadd.f32 %v2580_v63, %v2348_v20 }
 0x2a1   : >> { %4108 = vrcp.f32 %v5323_v12  ;;  %vm3121_vm11 = vweird.f32 %v4105_v21  ;;  %v3141_v60 = vand.u32 2147483648, %v5323_v12  ;;  %v3139_v50 = vand.u32 2147483647, %v5323_v12 }
 0x2a2   : >> { %v3104_v33 = vadd.f32 %v4101_v6, %v3103_v13  ;;  %v3117_v42 = vsub.f32 1.0, %v3116_v9  ;;  %v5335_v25 = vadd.f32 %v5201_v44, %v2628_v39  ;;  %vm3122_vm13 = vmor %vm3120_vm12, %vm3121_vm11  ;;  %vm3135_vm0 = vweird.f32 %v5323_v12 }
 0x2a3   : >> { %v2023_v32 = vpop.f32.mrf.mxu2  ;;  %v3142_v58 = vor.u32 1.1754944e-38, %v3141_v60  ;;  %vm3140_vm3 = vcmp.eq.f32.partialorder %v3139_v50, 8.507059e+37 }
 0x2a4   : >> { %v3108_v8 = vsel %vm3107_vm10, %v4101_v6, %v3104_v33  ;;  %v3118_v14 = vmul.f32 %v4105_v21, %v3117_v42  ;;  %v2069_v15 = vadd.f32 %v2023_v32, %v1789_v2  ;;  %v2303_v37 = vpop.f32.mrf.mxu3  ;;  %v1746_v19 = vpop.f32.mrf.mxu1  ;;  %v2696_v61 = vsub.f32 0.0, %v5335_v25 }
 0x2a5   : >> { %v3113_v27 = vsel %vm5326_vm9, %v3112_v47, %v3108_v8  ;;  %v1790_v23 = vadd.f32 %v1746_v19, %v4765_v34 }
 0x2a6   : >> { %v4107_v1 = vpop.eup %4106  ;;  %v3300_v49 = vmul.f32 %v3113_v27, %v5280_v56  ;;  %v3119_v62 = vadd.f32 %v4105_v21, %v3118_v14  ;;  %v2349_v31 = vadd.f32 %v2303_v37, %v2069_v15  ;;  %v2752_v63 = vmul.f32 1.442695, %v2696_v61 }
 0x2a7   : >> { %v2586_v54 = vpop.f32.mrf.mxu0  ;;  %v4109_v11 = vpop.eup %4108  ;;  %v5343_v35 = vadd.f32 1.0, %v4107_v1 }
 0x2a8   : >> { %3333 = vst.msk [vmem:[%s4899_s20 + $0xa0] sm:$0xff] %vm250_vm1, %v3300_v49  ;;  %v3123_v51 = vsel %vm3122_vm13, %v4105_v21, %v3119_v62  ;;  %v3131_v56 = vmul.f32 %v4109_v11, %v5323_v12  ;;  %v2629_v6 = vadd.f32 %v2583_v36, %v2349_v31  ;;  %vm3136_vm15 = vweird.f32 %v4109_v11 }
 0x2a9   : >> { %v3128_v0 = vsel %vm3125_vm14, %v3127_v5, %v3123_v51  ;;  %4110 = vrcp.f32 %v5343_v35  ;;  %vm3137_vm2 = vmor %vm3135_vm0, %vm3136_vm15  ;;  %v3154_v42 = vand.u32 2147483647, %v5343_v35  ;;  %v3156_v2 = vand.u32 2147483648, %v5343_v35 }
 0x2aa   : >> { %v3301_v45 = vmul.f32 %v3128_v0, %v5290_v16  ;;  %v3132_v30 = vsub.f32 1.0, %v3131_v56  ;;  %4112 = vpow2.f32 %v2752_v63  ;;  %v5356_v22 = vadd.f32 %v5201_v44, %v2629_v6 }
 0x2ab   : >> { %v2026_v17 = vpop.f32.mrf.mxu2  ;;  %vm3150_vm5 = vweird.f32 %v5343_v35  ;;  %v3157_v15 = vor.u32 1.1754944e-38, %v3156_v2  ;;  %vm3155_vm7 = vcmp.eq.f32.partialorder %v3154_v42, 8.507059e+37 }
 0x2ac   : >> { %3334 = vst.msk [vmem:[%s4899_s20 + $0xa8] sm:$0xff] %vm250_vm1, %v3301_v45  ;;  %v3133_v10 = vmul.f32 %v4109_v11, %v3132_v30  ;;  %v2070_v7 = vadd.f32 %v2026_v17, %v1790_v23  ;;  %v2306_v53 = vpop.f32.mrf.mxu3  ;;  %v1749_v16 = vpop.f32.mrf.mxu1  ;;  %v2697_v57 = vsub.f32 0.0, %v5356_v22 }
 0x2ad   : >> { %v1791_v43 = vadd.f32 %v1749_v16, %v4775_v59 }
 0x2ae   : >> { %v3134_v24 = vadd.f32 %v4109_v11, %v3133_v10  ;;  %v2350_v34 = vadd.f32 %v2306_v53, %v2070_v7  ;;  %v2754_v13 = vmul.f32 1.442695, %v2697_v57 }
 0x2af   : >> { %v2589_v26 = vpop.f32.mrf.mxu0  ;;  %v4111_v18 = vpop.eup %4110 }
 0x2b0   : >> { %v4113_v52 = vpop.eup %4112  ;;  %v3138_v46 = vsel %vm3137_vm2, %v4109_v11, %v3134_v24  ;;  %v3146_v36 = vmul.f32 %v4111_v18, %v5343_v35  ;;  %v2630_v21 = vadd.f32 %v2586_v54, %v2350_v34  ;;  %vm3151_vm4 = vweird.f32 %v4111_v18 }
 0x2b1   : >> { %v3143_v38 = vsel %vm3140_vm3, %v3142_v58, %v3138_v46  ;;  %v5361_v20 = vadd.f32 1.0, %v4113_v52  ;;  %vm3152_vm6 = vmor %vm3150_vm5, %vm3151_vm4 }
 0x2b2   : >> { %v3302_v12 = vmul.f32 %v3143_v38, %v5304_v40  ;;  %v3147_v9 = vsub.f32 1.0, %v3146_v36  ;;  %v5366_v33 = vadd.f32 %v5201_v44, %v2630_v21 }
 0x2b3   : >> { %4114 = vrcp.f32 %v5361_v20  ;;  %v2029_v39 = vpop.f32.mrf.mxu2  ;;  %v3169_v45 = vand.u32 2147483647, %v5361_v20  ;;  %vm3165_vm9 = vweird.f32 %v5361_v20 }
 0x2b4   : >> { %3335 = vst.msk [vmem:[%s4899_s20 + $0xb0] sm:$0xff] %vm250_vm1, %v3302_v12  ;;  %v3148_v47 = vmul.f32 %v4111_v18, %v3147_v9  ;;  %4116 = vpow2.f32 %v2754_v13  ;;  %v2698_v40 = vsub.f32 0.0, %v5366_v33  ;;  %v2071_v4 = vadd.f32 %v2029_v39, %v1791_v43  ;;  %v2309_v28 = vpop.f32.mrf.mxu3  ;;  %v1752_v59 = vpop.f32.mrf.mxu1 }
 0x2b5   : >> { %v1792_v11 = vadd.f32 %v1752_v59, %v4785_v48  ;;  %vm3170_vm11 = vcmp.eq.f32.partialorder %v3169_v45, 8.507059e+37 }
 0x2b6   : >> { %v3149_v32 = vadd.f32 %v4111_v18, %v3148_v47  ;;  %v2756_v8 = vmul.f32 1.442695, %v2698_v40  ;;  %v2351_v14 = vadd.f32 %v2309_v28, %v2071_v4 }
 0x2b7   : >> { %v2592_v37 = vpop.f32.mrf.mxu0 }
 0x2b8   : >> { %v3153_v27 = vsel %vm3152_vm6, %v4111_v18, %v3149_v32  ;;  %4118 = vpow2.f32 %v2756_v8  ;;  %v2631_v19 = vadd.f32 %v2589_v26, %v2351_v14 }
 0x2b9   : >> { %v4115_v1 = vpop.eup %4114  ;;  %v3158_v49 = vsel %vm3155_vm7, %v3157_v15, %v3153_v27 }
 0x2ba   : >> { %v4117_v62 = vpop.eup %4116  ;;  %v3303_v61 = vmul.f32 %v3158_v49, %v5316_v29  ;;  %v3161_v54 = vmul.f32 %v4115_v1, %v5361_v20  ;;  %v5380_v5 = vadd.f32 %v5201_v44, %v2631_v19  ;;  %v3171_v29 = vand.u32 2147483648, %v5361_v20 }
 0x2bb   : >> { %v2793_v35 = vadd.f32 1.0, %v4117_v62  ;;  %v2032_v31 = vpop.f32.mrf.mxu2  ;;  %vm3166_vm8 = vweird.f32 %v4115_v1 }
 0x2bc   : >> { %3336 = vst.msk [vmem:[%s4899_s20 + $0xb8] sm:$0xff] %vm250_vm1, %v3303_v61  ;;  %v3162_v51 = vsub.f32 1.0, %v3161_v54  ;;  %v2699_v56 = vsub.f32 0.0, %v5380_v5  ;;  %v2072_v63 = vadd.f32 %v2032_v31, %v1792_v11  ;;  %v2312_v0 = vpop.f32.mrf.mxu3  ;;  %v1755_v30 = vpop.f32.mrf.mxu1  ;;  %vm3167_vm10 = vmor %vm3165_vm9, %vm3166_vm8  ;;  %v3172_v7 = vor.u32 1.1754944e-38, %v3171_v29 }
 0x2bd   : >> { %4120 = vrcp.f32 %v2793_v35  ;;  %v1793_v18 = vadd.f32 %v1755_v30, %v4795_v55  ;;  %v3184_v21 = vand.u32 2147483647, %v2793_v35  ;;  %v3186_v42 = vand.u32 2147483648, %v2793_v35 }
 0x2be   : >> { %v4119_v23 = vpop.eup %4118  ;;  %v3163_v48 = vmul.f32 %v4115_v1, %v3162_v51  ;;  %v2758_v60 = vmul.f32 1.442695, %v2699_v56  ;;  %v2352_v6 = vadd.f32 %v2312_v0, %v2072_v63  ;;  %vm3180_vm13 = vweird.f32 %v2793_v35 }
 0x2bf   : >> { %v5387_v17 = vadd.f32 1.0, %v4119_v23  ;;  %v2595_v53 = vpop.f32.mrf.mxu0  ;;  %vm5402_vm14 = vcmp.eq.f32.partialorder %v3184_v21, 8.507059e+37  ;;  %v3187_v32 = vor.u32 1.1754944e-38, %v3186_v42 }
 0x2c0   : >> { %v3164_v10 = vadd.f32 %v4115_v1, %v3163_v48  ;;  %4122 = vpow2.f32 %v2758_v60  ;;  %v2632_v50 = vadd.f32 %v2592_v37, %v2352_v6 }
 0x2c1   : >> { %4124 = vrcp.f32 %v5387_v17  ;;  %v3199_v8 = vand.u32 2147483647, %v5387_v17  ;;  %v3201_v14 = vand.u32 2147483648, %v5387_v17  ;;  %vm3195_vm2 = vweird.f32 %v5387_v17 }
 0x2c2   : >> { %v3168_v16 = vsel %vm3167_vm10, %v4115_v1, %v3164_v10  ;;  %v5392_v24 = vadd.f32 %v5201_v44, %v2632_v50 }
 0x2c3   : >> { %v4121_v34 = vpop.eup %4120  ;;  %v3173_v26 = vsel %vm3170_vm11, %v3172_v7, %v3168_v16  ;;  %v2035_v58 = vpop.f32.mrf.mxu2  ;;  %v3202_v51 = vor.u32 1.1754944e-38, %v3201_v14  ;;  %vm3200_vm4 = vcmp.eq.f32.partialorder %v3199_v8, 8.507059e+37 }
 0x2c4   : >> { %v3304_v57 = vmul.f32 %v3173_v26, %v5335_v25  ;;  %v3176_v52 = vmul.f32 %v4121_v34, %v2793_v35  ;;  %v2700_v46 = vsub.f32 0.0, %v5392_v24  ;;  %v2315_v36 = vpop.f32.mrf.mxu3  ;;  %v2073_v38 = vadd.f32 %v2035_v58, %v1793_v18  ;;  %v1758_v20 = vpop.f32.mrf.mxu1 }
 0x2c5   : >> { %vm3181_vm12 = vweird.f32 %v4121_v34  ;;  %v1794_v28 = vadd.f32 %v1758_v20, %v4805_v3 }
 0x2c6   : >> { %v4123_v13 = vpop.eup %4122  ;;  %3337 = vst.msk [vmem:[%s4899_s20 + $0xc0] sm:$0xff] %vm250_vm1, %v3304_v57  ;;  %v3177_v12 = vsub.f32 1.0, %v3176_v52  ;;  %v2760_v9 = vmul.f32 1.442695, %v2700_v46  ;;  %v2353_v55 = vadd.f32 %v2315_v36, %v2073_v38  ;;  %vm3182_vm15 = vmor %vm3180_vm13, %vm3181_vm12 }
 0x2c7   : >> { %v4125_v43 = vpop.eup %4124  ;;  %v5399_v2 = vadd.f32 1.0, %v4123_v13  ;;  %v2598_v37 = vpop.f32.mrf.mxu0 }
 0x2c8   : >> { %v3178_v39 = vmul.f32 %v4121_v34, %v3177_v12  ;;  %v3191_v25 = vmul.f32 %v4125_v43, %v5387_v17  ;;  %4126 = vpow2.f32 %v2760_v9  ;;  %v2633_v59 = vadd.f32 %v2595_v53, %v2353_v55 }
 0x2c9   : >> { %4128 = vrcp.f32 %v5399_v2  ;;  %vm3196_vm0 = vweird.f32 %v4125_v43  ;;  %v3216_v6 = vand.u32 2147483648, %v5399_v2  ;;  %v3214_v7 = vand.u32 2147483647, %v5399_v2 }
 0x2ca   : >> { %v3179_v40 = vadd.f32 %v4121_v34, %v3178_v39  ;;  %v3192_v4 = vsub.f32 1.0, %v3191_v25  ;;  %v5411_v1 = vadd.f32 %v5201_v44, %v2633_v59  ;;  %vm3197_vm3 = vmor %vm3195_vm2, %vm3196_vm0  ;;  %vm3210_vm6 = vweird.f32 %v5399_v2 }
 0x2cb   : >> { %v2038_v15 = vpop.f32.mrf.mxu2  ;;  %v3217_v58 = vor.u32 1.1754944e-38, %v3216_v6  ;;  %vm3215_vm8 = vcmp.eq.f32.partialorder %v3214_v7, 8.507059e+37 }
 0x2cc   : >> { %v3183_v27 = vsel %vm3182_vm15, %v4121_v34, %v3179_v40  ;;  %v3193_v19 = vmul.f32 %v4125_v43, %v3192_v4  ;;  %v2074_v49 = vadd.f32 %v2038_v15, %v1794_v28  ;;  %v2318_v62 = vpop.f32.mrf.mxu3  ;;  %v2701_v35 = vsub.f32 0.0, %v5411_v1  ;;  %v1761_v63 = vpop.f32.mrf.mxu1 }
 0x2cd   : >> { %v3188_v3 = vsel %vm5402_vm14, %v3187_v32, %v3183_v27  ;;  %v1795_v60 = vadd.f32 %v1761_v63, %v4815_v41 }
 0x2ce   : >> { %v4127_v61 = vpop.eup %4126  ;;  %v3305_v54 = vmul.f32 %v3188_v3, %v5356_v22  ;;  %v3194_v11 = vadd.f32 %v4125_v43, %v3193_v19  ;;  %v2354_v0 = vadd.f32 %v2318_v62, %v2074_v49  ;;  %v2762_v22 = vmul.f32 1.442695, %v2701_v35 }
 0x2cf   : >> { %v4129_v31 = vpop.eup %4128  ;;  %v2796_v56 = vadd.f32 1.0, %v4127_v61 }
 0x2d0   : >> { %3338 = vst.msk [vmem:[%s4899_s20 + $0xc8] sm:$0xff] %vm250_vm1, %v3305_v54  ;;  %v3198_v45 = vsel %vm3197_vm3, %v4125_v43, %v3194_v11  ;;  %v3206_v29 = vmul.f32 %v4129_v31, %v5399_v2  ;;  %v2634_v17 = vadd.f32 %v2598_v37, %v2354_v0  ;;  %vm3211_vm5 = vweird.f32 %v4129_v31 }
 0x2d1   : >> { %v3203_v30 = vsel %vm3200_vm4, %v3202_v51, %v3198_v45  ;;  %4130 = vrcp.f32 %v2796_v56  ;;  %vm3212_vm7 = vmor %vm3210_vm6, %vm3211_vm5  ;;  %v3229_v42 = vand.u32 2147483647, %v2796_v56  ;;  %v3231_v2 = vand.u32 2147483648, %v2796_v56 }
 0x2d2   : >> { %v3306_v23 = vmul.f32 %v3203_v30, %v5366_v33  ;;  %v3207_v48 = vsub.f32 1.0, %v3206_v29  ;;  %4132 = vpow2.f32 %v2762_v22  ;;  %v5429_v34 = vadd.f32 %v5201_v44, %v2634_v17  ;;  %v2601_v33 = vpop.f32.mrf.mxu0 }
 0x2d3   : >> { %v2041_v10 = vpop.f32.mrf.mxu2  ;;  %vm3225_vm10 = vweird.f32 %v2796_v56  ;;  %vm3230_vm12 = vcmp.eq.f32.partialorder %v3229_v42, 8.507059e+37 }
 0x2d4   : >> { %3339 = vst.msk [vmem:[%s4899_s20 + $0xd0] sm:$0xff] %vm250_vm1, %v3306_v23  ;;  %v3208_v50 = vmul.f32 %v4129_v31, %v3207_v48  ;;  %v2075_v53 = vadd.f32 %v2041_v10, %v1795_v60  ;;  %v2321_v16 = vpop.f32.mrf.mxu3  ;;  %v2702_v57 = vsub.f32 0.0, %v5429_v34 }
 0x2d6   : >> { %v3209_v26 = vadd.f32 %v4129_v31, %v3208_v50  ;;  %v2355_v41 = vadd.f32 %v2321_v16, %v2075_v53  ;;  %v2764_v13 = vmul.f32 1.442695, %v2702_v57 }
 0x2d7   : >> { %v4131_v18 = vpop.eup %4130 }
 0x2d8   : >> { %v4133_v52 = vpop.eup %4132  ;;  %v3213_v46 = vsel %vm3212_vm7, %v4129_v31, %v3209_v26  ;;  %v3221_v36 = vmul.f32 %v4131_v18, %v2796_v56  ;;  %v2635_v21 = vadd.f32 %v2601_v33, %v2355_v41  ;;  %vm3226_vm9 = vweird.f32 %v4131_v18 }
 0x2d9   : >> { %v3218_v38 = vsel %vm3215_vm8, %v3217_v58, %v3213_v46  ;;  %v2797_v20 = vadd.f32 1.0, %v4133_v52  ;;  %vm3227_vm11 = vmor %vm3225_vm10, %vm3226_vm9 }
 0x2da   : >> { %v3307_v12 = vmul.f32 %v3218_v38, %v5380_v5  ;;  %v3222_v9 = vsub.f32 1.0, %v3221_v36  ;;  %v5435_v43 = vadd.f32 %v5201_v44, %v2635_v21  ;;  %v3232_v5 = vor.u32 1.1754944e-38, %v3231_v2 }
 0x2db   : >> { %4134 = vrcp.f32 %v2797_v20  ;;  %v3246_v15 = vand.u32 2147483648, %v2797_v20  ;;  %v3244_v19 = vand.u32 2147483647, %v2797_v20  ;;  %vm3240_vm14 = vweird.f32 %v2797_v20 }
 0x2dc   : >> { %3340 = vst.msk [vmem:[%s4899_s20 + $0xd8] sm:$0xff] %vm250_vm1, %v3307_v12  ;;  %v3223_v55 = vmul.f32 %v4131_v18, %v3222_v9  ;;  %4136 = vpow2.f32 %v2764_v13  ;;  %v2703_v39 = vsub.f32 0.0, %v5435_v43 }
 0x2dd   : >> { %v3247_v3 = vor.u32 1.1754944e-38, %v3246_v15  ;;  %vm3245_vm0 = vcmp.eq.f32.partialorder %v3244_v19, 8.507059e+37 }
 0x2de   : >> { %v3224_v25 = vadd.f32 %v4131_v18, %v3223_v55  ;;  %v2766_v47 = vmul.f32 1.442695, %v2703_v39 }
 0x2e0   : >> { %v3228_v40 = vsel %vm3227_vm11, %v4131_v18, %v3224_v25  ;;  %4138 = vpow2.f32 %v2766_v47 }
 0x2e1   : >> { %v4135_v44 = vpop.eup %4134  ;;  %v3233_v4 = vsel %vm3230_vm12, %v3232_v5, %v3228_v40 }
 0x2e2   : >> { %v4137_v28 = vpop.eup %4136  ;;  %v3308_v59 = vmul.f32 %v3233_v4, %v5392_v24  ;;  %v3236_v32 = vmul.f32 %v4135_v44, %v2797_v20  ;;  %vm3241_vm13 = vweird.f32 %v4135_v44 }
 0x2e3   : >> { %v2798_v8 = vadd.f32 1.0, %v4137_v28  ;;  %vm3242_vm15 = vmor %vm3240_vm14, %vm3241_vm13 }
 0x2e4   : >> { %3341 = vst.msk [vmem:[%s4899_s20 + $0xe0] sm:$0xff] %vm250_vm1, %v3308_v59  ;;  %v3237_v14 = vsub.f32 1.0, %v3236_v32 }
 0x2e5   : >> { %4140 = vrcp.f32 %v2798_v8  ;;  %v3259_v56 = vand.u32 2147483647, %v2798_v8  ;;  %v3261_v63 = vand.u32 2147483648, %v2798_v8  ;;  %vm3255_vm3 = vweird.f32 %v2798_v8 }
 0x2e6   : >> { %v4139_v37 = vpop.eup %4138  ;;  %v3238_v27 = vmul.f32 %v4135_v44, %v3237_v14 }
 0x2e7   : >> { %v2799_v49 = vadd.f32 1.0, %v4139_v37  ;;  %vm3260_vm5 = vcmp.eq.f32.partialorder %v3259_v56, 8.507059e+37  ;;  %v3262_v30 = vor.u32 1.1754944e-38, %v3261_v63 }
 0x2e8   : >> { %v3239_v62 = vadd.f32 %v4135_v44, %v3238_v27 }
 0x2e9   : >> { %4142 = vrcp.f32 %v2799_v49  ;;  %v3276_v23 = vand.u32 2147483648, %v2799_v49  ;;  %v3274_v60 = vand.u32 2147483647, %v2799_v49  ;;  %vm3270_vm7 = vweird.f32 %v2799_v49 }
 0x2ea   : >> { %v3243_v61 = vsel %vm3242_vm15, %v4135_v44, %v3239_v62 }
 0x2eb   : >> { %v4141_v24 = vpop.eup %4140  ;;  %v3248_v54 = vsel %vm3245_vm0, %v3247_v3, %v3243_v61  ;;  %v3277_v50 = vor.u32 1.1754944e-38, %v3276_v23  ;;  %vm3275_vm9 = vcmp.eq.f32.partialorder %v3274_v60, 8.507059e+37 }
 0x2ec   : >> { %v3309_v11 = vmul.f32 %v3248_v54, %v5411_v1  ;;  %v3251_v35 = vmul.f32 %v4141_v24, %v2798_v8  ;;  %vm3256_vm2 = vweird.f32 %v4141_v24 }
 0x2ed   : >> { %vm3257_vm4 = vmor %vm3255_vm3, %vm3256_vm2 }
 0x2ee   : >> { %3342 = vst.msk [vmem:[%s4899_s20 + $0xe8] sm:$0xff] %vm250_vm1, %v3309_v11  ;;  %v3252_v31 = vsub.f32 1.0, %v3251_v35 }
 0x2ef   : >> { %v4143_v51 = vpop.eup %4142 }
 0x2f0   : >> { %v3253_v0 = vmul.f32 %v4141_v24, %v3252_v31  ;;  %v3266_v45 = vmul.f32 %v4143_v51, %v2799_v49  ;;  %vm3271_vm6 = vweird.f32 %v4143_v51 }
 0x2f1   : >> { %vm3272_vm8 = vmor %vm3270_vm7, %vm3271_vm6 }
 0x2f2   : >> { %v3254_v29 = vadd.f32 %v4141_v24, %v3253_v0  ;;  %v3267_v22 = vsub.f32 1.0, %v3266_v45 }
 0x2f4   : >> { %v3258_v1 = vsel %vm3257_vm4, %v4141_v24, %v3254_v29  ;;  %v3268_v48 = vmul.f32 %v4143_v51, %v3267_v22 }
 0x2f5   : >> { %v3263_v6 = vsel %vm3260_vm5, %v3262_v30, %v3258_v1 }
 0x2f6   : >> { %v3310_v17 = vmul.f32 %v3263_v6, %v5429_v34  ;;  %v3269_v10 = vadd.f32 %v4143_v51, %v3268_v48 }
 0x2f8   : >> { %3343 = vst.msk [vmem:[%s4899_s20 + $0xf0] sm:$0xff] %vm250_vm1, %v3310_v17  ;;  %v3273_v7 = vsel %vm3272_vm8, %v4143_v51, %v3269_v10  ;;  %175 = sbr.rel (!%p173_p5) target bundleno = 16 (0x10), region = 87 }
 0x2f9   : >> { %v3278_v53 = vsel %vm3275_vm9, %v3277_v50, %v3273_v7 }
 0x2fa   : >> { %v3311_v16 = vmul.f32 %v3278_v53, %v5435_v43 }
 0x2fc   : >> { %3344 = vst.msk [vmem:[%s4899_s20 + $0xf8] sm:$0xff] %vm250_vm1, %v3311_v16 }
 0x2fd PF: > { %s13_s12 = sadd.s32 1, %s4155_s12  }
 0x2fe   : > { %p10_p6 = scmp.ge.s32.totalorder %s13_s12, 4  }
 0x300   :  { %12 = sbr.rel (!%p10_p6) target bundleno = 1 (0x1), region = 98 }

</bundles_post_ra>
